<compile_context>
chip_gen: v6e
topology: v6e:2x2x1
jax: 0.10.0
libtpu: 0.0.40
codegen_flags: <defaults>
</compile_context>

<pallas_src>
import functools

import jax
import jax.numpy as jnp
from jax import lax
from jax.experimental import pallas as pl
from jax.experimental.pallas import tpu as pltpu

EPS = 1e-5


def bn_relu_conv1x1_kernel(x_ref, p_ref, w_ref, o_ref):
    # x_ref: [Cin, M]      f32  channels on sublanes, spatial (N*H*W) on lanes
    # p_ref: [Cin, 2]      f32  packed (gamma, beta)
    # w_ref: [Cin, Nblk]   f32  1x1 conv weight, pre-transposed to [Cin, Cout(_pad)]
    # o_ref: [M, Nblk]     f32  lane-dense output (last dim >= 128)
    x = x_ref[...]
    m = x.shape[1]
    inv_m = 1.0 / m  # static at trace time

    p = p_ref[...]
    gamma = p[:, 0:1]                                      # [Cin, 1]
    beta = p[:, 1:2]                                       # [Cin, 1]

    # --- BatchNorm2d, training mode (biased batch stats), single fused pass ---
    sum_x = jnp.sum(x, axis=1, keepdims=True)              # [Cin, 1] lane reduce
    sum_xx = jnp.sum(x * x, axis=1, keepdims=True)         # [Cin, 1]
    mean = sum_x * inv_m
    var = jnp.maximum(sum_xx * inv_m - mean * mean, 0.0)   # guard cancellation
    scale = lax.rsqrt(var + EPS) * gamma                   # [Cin, 1]
    shift = beta - mean * scale                            # [Cin, 1]

    # --- normalize + affine + ReLU in one VPU pass ---
    y = jnp.maximum(x * scale + shift, 0.0)                # [Cin, M]

    # --- 1x1 conv (no bias), lane-dense orientation:
    #     out[m, o] = sum_c y[c, m] * w_t[c, o]  (contract dim 0 of both) ---
    o_ref[...] = lax.dot_general(
        y, w_ref[...],
        dimension_numbers=(((0,), (0,)), ((), ())),
        preferred_element_type=jnp.float32,
    ).astype(o_ref.dtype)


def default_cout_blocks():
    """2-way Cout split only pays on v7x (2 TensorCores/chip); elsewhere grid
    steps serialize on the single TC and each extra step is pure overhead."""
    try:
        kind = jax.devices()[0].device_kind.lower().replace(" ", "")
    except Exception:
        return 1
    return 2 if ("v7" in kind or "tpu7" in kind) else 1


def prepare_params(gamma, beta, conv_w, cout_blocks=1):
    """One-time (hoisted) parameter layout prep."""
    c = gamma.shape[0]
    cout = conv_w.shape[0]
    params = jnp.stack([gamma, beta], axis=1).astype(jnp.float32)      # [Cin, 2]
    # One-time hoisted transpose: [Cout, Cin, 1, 1] -> [Cin, Cout].
    w_t = conv_w.reshape(cout, c).T.astype(jnp.float32)                # [Cin, Cout]
    if cout_blocks > 1:
        lane_quantum = 128 * cout_blocks
        cout_pad = ((cout + lane_quantum - 1) // lane_quantum) * lane_quantum
        if cout_pad != cout:
            w_t = jnp.pad(w_t, ((0, 0), (0, cout_pad - cout)))         # zero cols
    return params, w_t


@functools.partial(jax.jit, static_argnames=("cout", "cout_blocks"))
def bn_relu_conv1x1(x_nchw, params, w_t, *, cout, cout_blocks=1):
    """x_nchw: [1, C, H, W]; params: [C, 2]; w_t: [C, Cout(_pad)]."""
    n, c, h, w = x_nchw.shape
    assert n == 1, "module input is batch-1; [N,C,H,W]->[C,N*H*W] reshape needs N==1"
    m = n * h * w
    cout_pad = w_t.shape[1]
    assert cout_pad % cout_blocks == 0
    block_n = cout_pad // cout_blocks

    # NCHW (N==1) -> [Cin, M]: metadata-only reshape, no copy, no transpose.
    x2d = x_nchw.reshape(c, m).astype(jnp.float32)

    out2d = pl.pallas_call(
        bn_relu_conv1x1_kernel,
        out_shape=jax.ShapeDtypeStruct((m, cout_pad), jnp.float32),
        grid=(cout_blocks,),
        in_specs=[
            pl.BlockSpec((c, m), lambda i: (0, 0)),
            pl.BlockSpec((c, 2), lambda i: (0, 0)),
            pl.BlockSpec((c, block_n), lambda i: (0, i)),
        ],
        out_specs=pl.BlockSpec((m, block_n), lambda i: (0, i)),
        cost_estimate=pl.CostEstimate(
            flops=2 * m * c * cout_pad + 8 * m * c,
            transcendentals=0,
            bytes_accessed=(m * c + c * cout_pad + m * cout_pad + 2 * c) * 4,
        ),
        compiler_params=pltpu.CompilerParams(
            dimension_semantics=("parallel",),
        ),
    )(x2d, params, w_t)

    if cout_pad != cout:
        out2d = out2d[:, :cout]   # drop zero-padded Cout columns (v7x split path)

    # [M, Cout] -> [1, Cout, H, W]: one tiny (~78 KB) transpose XLA fuses downstream.
    return out2d.T.reshape(n, cout, h, w)


def reference(x_nchw, gamma, beta, conv_w):
    """Pure-JAX reference matching PyTorch training-mode BN -> ReLU -> 1x1 conv."""
    x = x_nchw.astype(jnp.float32)
    mean = jnp.mean(x, axis=(0, 2, 3), keepdims=True)
    var = jnp.mean((x - mean) ** 2, axis=(0, 2, 3), keepdims=True)  # biased
    y = (x - mean) / jnp.sqrt(var + EPS)
    y = y * gamma.reshape(1, -1, 1, 1) + beta.reshape(1, -1, 1, 1)
    y = jnp.maximum(y, 0.0)
    w2d = conv_w.reshape(conv_w.shape[0], conv_w.shape[1])
    return jnp.einsum("nchw,oc->nohw", y, w2d)


if __name__ == "__main__":
    N, C, H, W = 1, 400, 7, 7   # shapes implied by the module
    COUT = 400

    key = jax.random.PRNGKey(0)
    kx, kg, kb, kw = jax.random.split(key, 4)

    x = jax.random.normal(kx, (N, C, H, W), dtype=jnp.float32)
    gamma = 1.0 + 0.1 * jax.random.normal(kg, (C,), dtype=jnp.float32)
    beta = 0.1 * jax.random.normal(kb, (C,), dtype=jnp.float32)
    conv_w = jax.random.normal(kw, (COUT, C, 1, 1), dtype=jnp.float32) * (1.0 / jnp.sqrt(C))

    cout_blocks = default_cout_blocks()

    # One-time parameter prep (hoisted out of the hot path).
    params, w_t = prepare_params(gamma, beta, conv_w, cout_blocks=cout_blocks)
    params, w_t = jax.block_until_ready((params, w_t))

    out = jax.block_until_ready(
        bn_relu_conv1x1(x, params, w_t, cout=COUT, cout_blocks=cout_blocks))
    ref = jax.block_until_ready(reference(x, gamma, beta, conv_w))

    assert out.shape == (N, COUT, H, W), out.shape
    err = float(jnp.max(jnp.abs(out - ref)))
    assert jnp.allclose(out, ref, atol=1e-3, rtol=1e-3), err
    print("KERNEL_OK")
</pallas_src>

<mosaic_0001>
module attributes {stable_mosaic.version = 11 : i64} {
  func.func @bn_relu_conv1x1_kernel(%arg0: i32, %arg1: memref<400x49xf32, #tpu.memory_space<vmem>>, %arg2: memref<400x2xf32, #tpu.memory_space<vmem>>, %arg3: memref<400x400xf32, #tpu.memory_space<vmem>>, %arg4: memref<49x400xf32, #tpu.memory_space<vmem>>) attributes {dimension_semantics = [#tpu.dimension_semantics<parallel>], iteration_bounds = array<i64: 1>, scalar_prefetch = 0 : i64, scratch_operands = 0 : i64, tpu.core_type = #tpu.core_type<tc>, window_params = [{pipeline_mode = #tpu.pipeline_mode<synchronous>, transform_indices = @transform_0, window_bounds = array<i64: 400, 49>}, {pipeline_mode = #tpu.pipeline_mode<synchronous>, transform_indices = @transform_1, window_bounds = array<i64: 400, 2>}, {transform_indices = @transform_2, window_bounds = array<i64: 400, 400>}, {transform_indices = @transform_3, window_bounds = array<i64: 49, 400>}]} {
    %c0 = arith.constant 0 : index
    %c0_0 = arith.constant 0 : index
    %0 = vector.load %arg1[%c0, %c0_0] : memref<400x49xf32, #tpu.memory_space<vmem>>, vector<400x49xf32>
    %c0_1 = arith.constant 0 : index
    %c0_2 = arith.constant 0 : index
    %1 = vector.load %arg2[%c0_1, %c0_2] : memref<400x2xf32, #tpu.memory_space<vmem>>, vector<400x2xf32>
    %2 = vector.extract_strided_slice %1 {offsets = [0, 0], sizes = [400, 1], strides = [1, 1]} : vector<400x2xf32> to vector<400x1xf32>
    %3 = vector.extract_strided_slice %1 {offsets = [0, 1], sizes = [400, 1], strides = [1, 1]} : vector<400x2xf32> to vector<400x1xf32>
    %cst = arith.constant dense<0.000000e+00> : vector<400xf32>
    %4 = vector.multi_reduction <add>, %0, %cst [1] : vector<400x49xf32> to vector<400xf32>
    %5 = vector.shape_cast %4 : vector<400xf32> to vector<400x1xf32>
    %6 = arith.mulf %0, %0 : vector<400x49xf32>
    %cst_3 = arith.constant dense<0.000000e+00> : vector<400xf32>
    %7 = vector.multi_reduction <add>, %6, %cst_3 [1] : vector<400x49xf32> to vector<400xf32>
    %8 = vector.shape_cast %7 : vector<400xf32> to vector<400x1xf32>
    %cst_4 = arith.constant 0.0204081628 : f32
    %9 = vector.broadcast %cst_4 : f32 to vector<400x1xf32>
    %10 = arith.mulf %5, %9 : vector<400x1xf32>
    %cst_5 = arith.constant 0.0204081628 : f32
    %11 = vector.broadcast %cst_5 : f32 to vector<400x1xf32>
    %12 = arith.mulf %8, %11 : vector<400x1xf32>
    %13 = arith.mulf %10, %10 : vector<400x1xf32>
    %14 = arith.subf %12, %13 : vector<400x1xf32>
    %cst_6 = arith.constant 0.000000e+00 : f32
    %15 = vector.broadcast %cst_6 : f32 to vector<400x1xf32>
    %16 = arith.maximumf %14, %15 : vector<400x1xf32>
    %cst_7 = arith.constant 9.99999974E-6 : f32
    %17 = vector.broadcast %cst_7 : f32 to vector<400x1xf32>
    %18 = arith.addf %16, %17 : vector<400x1xf32>
    %19 = math.rsqrt %18 : vector<400x1xf32>
    %20 = arith.mulf %19, %2 : vector<400x1xf32>
    %21 = arith.mulf %10, %20 : vector<400x1xf32>
    %22 = arith.subf %3, %21 : vector<400x1xf32>
    %23 = vector.broadcast %20 : vector<400x1xf32> to vector<400x49xf32>
    %24 = arith.mulf %0, %23 : vector<400x49xf32>
    %25 = vector.broadcast %22 : vector<400x1xf32> to vector<400x49xf32>
    %26 = arith.addf %24, %25 : vector<400x49xf32>
    %cst_8 = arith.constant 0.000000e+00 : f32
    %27 = vector.broadcast %cst_8 : f32 to vector<400x49xf32>
    %28 = arith.maximumf %26, %27 : vector<400x49xf32>
    %c0_9 = arith.constant 0 : index
    %c0_10 = arith.constant 0 : index
    %29 = vector.load %arg3[%c0_9, %c0_10] : memref<400x400xf32, #tpu.memory_space<vmem>>, vector<400x400xf32>
    %cst_11 = arith.constant dense<0.000000e+00> : vector<49x400xf32>
    %30 = tpu.matmul %28, %29, %cst_11 {dimension_numbers = #tpu.dot_dimension_numbers<[0], [0], [1], [1], [0, 1, 1, 1], [], []>} : vector<400x49xf32>, vector<400x400xf32>, vector<49x400xf32> -> vector<49x400xf32>
    %c0_12 = arith.constant 0 : index
    %c0_13 = arith.constant 0 : index
    %31 = vector.load %arg4[%c0_12, %c0_13] : memref<49x400xf32, #tpu.memory_space<vmem>>, vector<49x400xf32>
    tpu.vector_store %arg4[%c0_12, %c0_13], %30 {strides = array<i32>} : memref<49x400xf32, #tpu.memory_space<vmem>>, vector<49x400xf32>,
    return
  }
  func.func @transform_0(%arg0: i32) -> (i32, i32) {
    %c0_i32 = arith.constant 0 : i32
    %c0_i32_0 = arith.constant 0 : i32
    %c0_i32_1 = arith.constant 0 : i32
    return %c0_i32, %c0_i32_0 : i32, i32
  }
  func.func @transform_1(%arg0: i32) -> (i32, i32) {
    %c0_i32 = arith.constant 0 : i32
    %c0_i32_0 = arith.constant 0 : i32
    %c0_i32_1 = arith.constant 0 : i32
    return %c0_i32, %c0_i32_0 : i32, i32
  }
  func.func @transform_2(%arg0: i32) -> (i32, i32) {
    %c0_i32 = arith.constant 0 : i32
    %c0_i32_0 = arith.constant 0 : i32
    return %c0_i32, %arg0 : i32, i32
  }
  func.func @transform_3(%arg0: i32) -> (i32, i32) {
    %c0_i32 = arith.constant 0 : i32
    %c0_i32_0 = arith.constant 0 : i32
    return %c0_i32, %arg0 : i32, i32
  }
}

</mosaic_0001>

<bundles_post_ra>
// kernel: bn_relu_conv1x1.1
= control target key start
LH: loop header
LB: loop body
LE: loop exit
PB: predicated region body
PF: predicated region fallthrough
CT: control target
= control target key end

     0   :  { %vm114_vm0 = vcmask 400384   ;;  %s2898_s12 = smov 1   ;;  %vm2143_vm1 = vcmask 130048   ;;  %vm2620_vm2 = vcmask 122880   ;;  %s5825_s0 = inlined_call_operand.vmem [shape: f32[400,49], index: 0, kind: input, shape index: {}]   ;;  %s5826_s1 = inlined_call_operand.vmem [shape: f32[400,2], index: 1, kind: input, shape index: {}]   ;;  %s5827_s2 = inlined_call_operand.vmem [shape: f32[400,400], index: 2, kind: input, shape index: {}]   ;;  %s5828_s3 = inlined_call_operand.vmem [shape: f32[49,400], index: 3, kind: output, shape index: {}]  }
   0x1   :  { %v2923_v0 = vld [vmem:[%s5825_s0 + $0x10] sm:$0xff]  ;;  %v2928_v1 = vld [vmem:[%s5825_s0] sm:$0xff]  ;;  %v2933_v2 = vld [vmem:[%s5825_s0 + $0x18] sm:$0xff] }
   0x2   :  { %v121_v3 = vsel %vm114_vm0, %v2923_v0, 0.0  ;;  %v115_v4 = vsel %vm114_vm0, %v2928_v1, 0.0  ;;  %v2942_v5 = vld [vmem:[%s5825_s0 + $0x8] sm:$0xff]  ;;  %v124_v6 = vsel %vm114_vm0, %v2933_v2, 0.0  ;;  %v2956_v9 = vld [vmem:[%s5825_s0 + $0x20] sm:$0xff]  ;;  %v2965_v12 = vld [vmem:[%s5825_s0 + $0x38] sm:$0xff] }
   0x3   :  { %122 = vadd.xlane.f32.xlu1 %v121_v3  ;;  %116 = vadd.xlane.f32.xlu0 %v115_v4  ;;  %v118_v7 = vsel %vm114_vm0, %v2942_v5, 0.0  ;;  %v2951_v8 = vld [vmem:[%s5825_s0 + $0x28] sm:$0xff]  ;;  %v127_v11 = vsel %vm114_vm0, %v2956_v9, 0.0  ;;  %v2970_v13 = vld [vmem:[%s5825_s0 + $0x30] sm:$0xff]  ;;  %v136_v14 = vsel %vm114_vm0, %v2965_v12, 0.0  ;;  %v2984_v17 = vld [vmem:[%s5825_s0 + $0x40] sm:$0xff] }
   0x4   :  { %v130_v10 = vsel %vm114_vm0, %v2951_v8, 0.0  ;;  %v133_v15 = vsel %vm114_vm0, %v2970_v13, 0.0  ;;  %v2979_v16 = vld [vmem:[%s5825_s0 + $0x48] sm:$0xff]  ;;  %v139_v19 = vsel %vm114_vm0, %v2984_v17, 0.0  ;;  %v2993_v20 = vld [vmem:[%s5825_s0 + $0x58] sm:$0xff]  ;;  %v2998_v21 = vld [vmem:[%s5825_s0 + $0x50] sm:$0xff] }
   0x5   :  { %v142_v18 = vsel %vm114_vm0, %v2979_v16, 0.0  ;;  %v148_v22 = vsel %vm114_vm0, %v2993_v20, 0.0  ;;  %v145_v23 = vsel %vm114_vm0, %v2998_v21, 0.0  ;;  %v3007_v24 = vld [vmem:[%s5825_s0 + $0x68] sm:$0xff]  ;;  %v3012_v25 = vld [vmem:[%s5825_s0 + $0x60] sm:$0xff]  ;;  %v3021_v28 = vld [vmem:[%s5825_s0 + $0x78] sm:$0xff] }
   0x6   :  { %v154_v26 = vsel %vm114_vm0, %v3007_v24, 0.0  ;;  %v151_v27 = vsel %vm114_vm0, %v3012_v25, 0.0  ;;  %v3026_v29 = vld [vmem:[%s5825_s0 + $0x70] sm:$0xff]  ;;  %v160_v30 = vsel %vm114_vm0, %v3021_v28, 0.0  ;;  %v3035_v32 = vld [vmem:[%s5825_s0 + $0x88] sm:$0xff]  ;;  %v3040_v33 = vld [vmem:[%s5825_s0 + $0x80] sm:$0xff] }
   0x7   :  { %125 = vadd.xlane.f32.xlu1 %v124_v6  ;;  %119 = vadd.xlane.f32.xlu0 %v118_v7  ;;  %v157_v31 = vsel %vm114_vm0, %v3026_v29, 0.0  ;;  %v166_v34 = vsel %vm114_vm0, %v3035_v32, 0.0  ;;  %v163_v35 = vsel %vm114_vm0, %v3040_v33, 0.0  ;;  %v3049_v36 = vld [vmem:[%s5825_s0 + $0x98] sm:$0xff]  ;;  %v3054_v37 = vld [vmem:[%s5825_s0 + $0x90] sm:$0xff]  ;;  %v3063_v40 = vld [vmem:[%s5825_s0 + $0xa8] sm:$0xff] }
   0x8   :  { %v172_v38 = vsel %vm114_vm0, %v3049_v36, 0.0  ;;  %v169_v39 = vsel %vm114_vm0, %v3054_v37, 0.0  ;;  %v3068_v41 = vld [vmem:[%s5825_s0 + $0xa0] sm:$0xff]  ;;  %v178_v42 = vsel %vm114_vm0, %v3063_v40, 0.0  ;;  %v3077_v44 = vld [vmem:[%s5825_s0 + $0xb8] sm:$0xff]  ;;  %v3082_v45 = vld [vmem:[%s5825_s0 + $0xb0] sm:$0xff] }
   0x9   :  { %v175_v43 = vsel %vm114_vm0, %v3068_v41, 0.0  ;;  %v184_v46 = vsel %vm114_vm0, %v3077_v44, 0.0  ;;  %v181_v47 = vsel %vm114_vm0, %v3082_v45, 0.0  ;;  %v3091_v48 = vld [vmem:[%s5825_s0 + $0xc8] sm:$0xff]  ;;  %v3096_v49 = vld [vmem:[%s5825_s0 + $0xc0] sm:$0xff]  ;;  %v3105_v52 = vld [vmem:[%s5825_s0 + $0xd8] sm:$0xff] }
   0xa   :  { %v190_v50 = vsel %vm114_vm0, %v3091_v48, 0.0  ;;  %v187_v51 = vsel %vm114_vm0, %v3096_v49, 0.0  ;;  %v3110_v53 = vld [vmem:[%s5825_s0 + $0xd0] sm:$0xff]  ;;  %v196_v54 = vsel %vm114_vm0, %v3105_v52, 0.0  ;;  %v3119_v56 = vld [vmem:[%s5825_s0 + $0xe8] sm:$0xff]  ;;  %v3124_v57 = vld [vmem:[%s5825_s0 + $0xe0] sm:$0xff] }
   0xb   :  { %131 = vadd.xlane.f32.xlu1 %v130_v10  ;;  %128 = vadd.xlane.f32.xlu0 %v127_v11  ;;  %v193_v55 = vsel %vm114_vm0, %v3110_v53, 0.0  ;;  %v202_v58 = vsel %vm114_vm0, %v3119_v56, 0.0  ;;  %v199_v59 = vsel %vm114_vm0, %v3124_v57, 0.0  ;;  %v3133_v60 = vld [vmem:[%s5825_s0 + $0xf8] sm:$0xff]  ;;  %v3138_v61 = vld [vmem:[%s5825_s0 + $0xf0] sm:$0xff]  ;;  %v3147_v3 = vld [vmem:[%s5825_s0 + $0x108] sm:$0xff] }
   0xc   :  { %v208_v62 = vsel %vm114_vm0, %v3133_v60, 0.0  ;;  %v205_v63 = vsel %vm114_vm0, %v3138_v61, 0.0  ;;  %v3152_v4 = vld [vmem:[%s5825_s0 + $0x100] sm:$0xff]  ;;  %v214_v6 = vsel %vm114_vm0, %v3147_v3, 0.0  ;;  %v3161_v10 = vld [vmem:[%s5825_s0 + $0x118] sm:$0xff]  ;;  %v3166_v11 = vld [vmem:[%s5825_s0 + $0x110] sm:$0xff] }
   0xd   :  { %v211_v7 = vsel %vm114_vm0, %v3152_v4, 0.0 }
   0xf   :  { %137 = vadd.xlane.f32.xlu1 %v136_v14  ;;  %134 = vadd.xlane.f32.xlu0 %v133_v15  ;;  %v220_v14 = vsel %vm114_vm0, %v3161_v10, 0.0  ;;  %v217_v15 = vsel %vm114_vm0, %v3166_v11, 0.0 }
  0x13   :  { %143 = vadd.xlane.f32.xlu1 %v142_v18  ;;  %140 = vadd.xlane.f32.xlu0 %v139_v19  ;;  %v3175_v18 = vld [vmem:[%s5825_s0 + $0x128] sm:$0xff]  ;;  %v3180_v19 = vld [vmem:[%s5825_s0 + $0x120] sm:$0xff] }
  0x17   :  { %149 = vadd.xlane.f32.xlu1 %v148_v22  ;;  %146 = vadd.xlane.f32.xlu0 %v145_v23  ;;  %v226_v22 = vsel %vm114_vm0, %v3175_v18, 0.0  ;;  %v223_v23 = vsel %vm114_vm0, %v3180_v19, 0.0 }
  0x1b   :  { %155 = vadd.xlane.f32.xlu1 %v154_v26  ;;  %152 = vadd.xlane.f32.xlu0 %v151_v27  ;;  %v3189_v26 = vld [vmem:[%s5825_s0 + $0x138] sm:$0xff]  ;;  %v3194_v27 = vld [vmem:[%s5825_s0 + $0x130] sm:$0xff] }
  0x1f   :  { %161 = vadd.xlane.f32.xlu1 %v160_v30  ;;  %158 = vadd.xlane.f32.xlu0 %v157_v31  ;;  %v232_v30 = vsel %vm114_vm0, %v3189_v26, 0.0  ;;  %v229_v31 = vsel %vm114_vm0, %v3194_v27, 0.0 }
  0x23   :  { %167 = vadd.xlane.f32.xlu1 %v166_v34  ;;  %164 = vadd.xlane.f32.xlu0 %v163_v35  ;;  %v3203_v34 = vld [vmem:[%s5825_s0 + $0x148] sm:$0xff]  ;;  %v3208_v35 = vld [vmem:[%s5825_s0 + $0x140] sm:$0xff] }
  0x27   :  { %173 = vadd.xlane.f32.xlu1 %v172_v38  ;;  %170 = vadd.xlane.f32.xlu0 %v169_v39  ;;  %v238_v38 = vsel %vm114_vm0, %v3203_v34, 0.0  ;;  %v235_v39 = vsel %vm114_vm0, %v3208_v35, 0.0 }
  0x2b   :  { %179 = vadd.xlane.f32.xlu1 %v178_v42  ;;  %176 = vadd.xlane.f32.xlu0 %v175_v43  ;;  %v3217_v42 = vld [vmem:[%s5825_s0 + $0x158] sm:$0xff]  ;;  %v3222_v43 = vld [vmem:[%s5825_s0 + $0x150] sm:$0xff] }
  0x2f   :  { %185 = vadd.xlane.f32.xlu1 %v184_v46  ;;  %182 = vadd.xlane.f32.xlu0 %v181_v47  ;;  %v244_v46 = vsel %vm114_vm0, %v3217_v42, 0.0  ;;  %v241_v47 = vsel %vm114_vm0, %v3222_v43, 0.0 }
  0x33   :  { %191 = vadd.xlane.f32.xlu1 %v190_v50  ;;  %188 = vadd.xlane.f32.xlu0 %v187_v51  ;;  %v3231_v50 = vld [vmem:[%s5825_s0 + $0x168] sm:$0xff]  ;;  %v3236_v51 = vld [vmem:[%s5825_s0 + $0x160] sm:$0xff] }
  0x37   :  { %197 = vadd.xlane.f32.xlu1 %v196_v54  ;;  %194 = vadd.xlane.f32.xlu0 %v193_v55  ;;  %v250_v54 = vsel %vm114_vm0, %v3231_v50, 0.0  ;;  %v247_v55 = vsel %vm114_vm0, %v3236_v51, 0.0 }
  0x3b   :  { %203 = vadd.xlane.f32.xlu1 %v202_v58  ;;  %200 = vadd.xlane.f32.xlu0 %v199_v59  ;;  %v3245_v58 = vld [vmem:[%s5825_s0 + $0x178] sm:$0xff]  ;;  %v3250_v59 = vld [vmem:[%s5825_s0 + $0x170] sm:$0xff] }
  0x3f   :  { %209 = vadd.xlane.f32.xlu1 %v208_v62  ;;  %206 = vadd.xlane.f32.xlu0 %v205_v63  ;;  %v256_v62 = vsel %vm114_vm0, %v3245_v58, 0.0  ;;  %v253_v63 = vsel %vm114_vm0, %v3250_v59, 0.0 }
  0x43   :  { %215 = vadd.xlane.f32.xlu1 %v214_v6  ;;  %212 = vadd.xlane.f32.xlu0 %v211_v7  ;;  %v3259_v6 = vld [vmem:[%s5825_s0 + $0x188] sm:$0xff]  ;;  %v3264_v7 = vld [vmem:[%s5825_s0 + $0x180] sm:$0xff] }
  0x47   :  { %221 = vadd.xlane.f32.xlu1 %v220_v14  ;;  %218 = vadd.xlane.f32.xlu0 %v217_v15  ;;  %v262_v14 = vsel %vm114_vm0, %v3259_v6, 0.0  ;;  %v259_v15 = vsel %vm114_vm0, %v3264_v7, 0.0 }
  0x4b   :  { %227 = vadd.xlane.f32.xlu1 %v226_v22  ;;  %224 = vadd.xlane.f32.xlu0 %v223_v23  ;;  %v266_v22 = vmul.f32 %v2942_v5, %v2942_v5  ;;  %v265_v23 = vmul.f32 %v2928_v1, %v2928_v1  ;;  %v270_v1 = vmul.f32 %v2951_v8, %v2951_v8 }
  0x4f   :  { %233 = vadd.xlane.f32.xlu1 %v232_v30  ;;  %230 = vadd.xlane.f32.xlu0 %v229_v31  ;;  %v318_v30 = vsel %vm114_vm0, %v266_v22, 0.0  ;;  %v315_v31 = vsel %vm114_vm0, %v265_v23, 0.0  ;;  %v277_v23 = vmul.f32 %v3012_v25, %v3012_v25  ;;  %v282_v25 = vmul.f32 %v3035_v32, %v3035_v32 }
  0x53   :  { %239 = vadd.xlane.f32.xlu1 %v238_v38  ;;  %236 = vadd.xlane.f32.xlu0 %v235_v39  ;;  %v268_v38 = vmul.f32 %v2933_v2, %v2933_v2  ;;  %v267_v39 = vmul.f32 %v2923_v0, %v2923_v0  ;;  %v272_v0 = vmul.f32 %v2965_v12, %v2965_v12 }
  0x55   :  { %v321_v5 = vsel %vm114_vm0, %v267_v39, 0.0  ;;  %v281_v39 = vmul.f32 %v3040_v33, %v3040_v33  ;;  %v286_v33 = vmul.f32 %v3063_v40, %v3063_v40 }
  0x57   :  { %245 = vadd.xlane.f32.xlu1 %v244_v46  ;;  %242 = vadd.xlane.f32.xlu0 %v241_v47  ;;  %v324_v46 = vsel %vm114_vm0, %v268_v38, 0.0  ;;  %v269_v47 = vmul.f32 %v2956_v9, %v2956_v9  ;;  %v274_v9 = vmul.f32 %v2979_v16, %v2979_v16 }
  0x59   :  { %v327_v2 = vsel %vm114_vm0, %v269_v47, 0.0  ;;  %v285_v47 = vmul.f32 %v3068_v41, %v3068_v41 }
  0x5b   :  { %251 = vadd.xlane.f32.xlu1 %v250_v54  ;;  %248 = vadd.xlane.f32.xlu0 %v247_v55  ;;  %v330_v54 = vsel %vm114_vm0, %v270_v1, 0.0  ;;  %v271_v55 = vmul.f32 %v2970_v13, %v2970_v13  ;;  %v276_v13 = vmul.f32 %v2993_v20, %v2993_v20  ;;  %v351_v20 = vsel %vm114_vm0, %v277_v23, 0.0 }
  0x5c   :  { %v293_v23 = vmul.f32 %v3124_v57, %v3124_v57 }
  0x5d   :  { %v333_v8 = vsel %vm114_vm0, %v271_v55, 0.0  ;;  %v348_v22 = vsel %vm114_vm0, %v276_v13, 0.0  ;;  %v287_v55 = vmul.f32 %v3082_v45, %v3082_v45  ;;  %v292_v13 = vmul.f32 %v3105_v52, %v3105_v52 }
  0x5f   :  { %257 = vadd.xlane.f32.xlu1 %v256_v62  ;;  %254 = vadd.xlane.f32.xlu0 %v253_v63  ;;  %v336_v62 = vsel %vm114_vm0, %v272_v0, 0.0  ;;  %v273_v63 = vmul.f32 %v2984_v17, %v2984_v17  ;;  %v278_v17 = vmul.f32 %v3007_v24, %v3007_v24  ;;  %v288_v0 = vmul.f32 %v3077_v44, %v3077_v44 }
  0x61   :  { %v339_v12 = vsel %vm114_vm0, %v273_v63, 0.0  ;;  %v289_v63 = vmul.f32 %v3096_v49, %v3096_v49 }
  0x63   :  { %263 = vadd.xlane.f32.xlu1 %v262_v14  ;;  %260 = vadd.xlane.f32.xlu0 %v259_v15  ;;  %v342_v14 = vsel %vm114_vm0, %v274_v9, 0.0  ;;  %v275_v15 = vmul.f32 %v2998_v21, %v2998_v21  ;;  %v280_v21 = vmul.f32 %v3021_v28, %v3021_v28  ;;  %v363_v28 = vsel %vm114_vm0, %v281_v39, 0.0 }
  0x64   :  { %v290_v9 = vmul.f32 %v3091_v48, %v3091_v48  ;;  %v297_v39 = vmul.f32 %v3152_v4, %v3152_v4 }
  0x65   :  { %v345_v16 = vsel %vm114_vm0, %v275_v15, 0.0  ;;  %v360_v38 = vsel %vm114_vm0, %v280_v21, 0.0  ;;  %v291_v15 = vmul.f32 %v3110_v53, %v3110_v53  ;;  %v296_v21 = vmul.f32 %v3133_v60, %v3133_v60 }
  0x67   :  { %319 = vadd.xlane.f32.xlu1 %v318_v30  ;;  %316 = vadd.xlane.f32.xlu0 %v315_v31  ;;  %v354_v30 = vsel %vm114_vm0, %v278_v17, 0.0  ;;  %v279_v31 = vmul.f32 %v3026_v29, %v3026_v29  ;;  %v284_v29 = vmul.f32 %v3049_v36, %v3049_v36  ;;  %v294_v17 = vmul.f32 %v3119_v56, %v3119_v56 }
  0x69   :  { %v357_v24 = vsel %vm114_vm0, %v279_v31, 0.0  ;;  %v372_v1 = vsel %vm114_vm0, %v284_v29, 0.0  ;;  %v295_v31 = vmul.f32 %v3138_v61, %v3138_v61  ;;  %v300_v29 = vmul.f32 %v3161_v10, %v3161_v10 }
  0x6b   :  { %325 = vadd.xlane.f32.xlu1 %v324_v46  ;;  %322 = vadd.xlane.f32.xlu0 %v321_v5  ;;  %v366_v46 = vsel %vm114_vm0, %v282_v25, 0.0  ;;  %v283_v5 = vmul.f32 %v3054_v37, %v3054_v37  ;;  %v378_v37 = vsel %vm114_vm0, %v286_v33, 0.0  ;;  %v298_v25 = vmul.f32 %v3147_v3, %v3147_v3 }
  0x6c   :  { %v302_v33 = vmul.f32 %v3175_v18, %v3175_v18 }
  0x6d   :  { %v369_v32 = vsel %vm114_vm0, %v283_v5, 0.0  ;;  %v299_v5 = vmul.f32 %v3166_v11, %v3166_v11 }
  0x6f   :  { %331 = vadd.xlane.f32.xlu1 %v330_v54  ;;  %328 = vadd.xlane.f32.xlu0 %v327_v2  ;;  %v375_v2 = vsel %vm114_vm0, %v285_v47, 0.0  ;;  %v301_v47 = vmul.f32 %v3180_v19, %v3180_v19 }
  0x73   :  { %337 = vadd.xlane.f32.xlu1 %v336_v62  ;;  %334 = vadd.xlane.f32.xlu0 %v333_v8  ;;  %v384_v62 = vsel %vm114_vm0, %v288_v0, 0.0  ;;  %v381_v8 = vsel %vm114_vm0, %v287_v55, 0.0  ;;  %v304_v0 = vmul.f32 %v3189_v26, %v3189_v26  ;;  %v303_v55 = vmul.f32 %v3194_v27, %v3194_v27 }
  0x77   :  { %343 = vadd.xlane.f32.xlu1 %v342_v14  ;;  %340 = vadd.xlane.f32.xlu0 %v339_v12  ;;  %v390_v14 = vsel %vm114_vm0, %v290_v9, 0.0  ;;  %v387_v12 = vsel %vm114_vm0, %v289_v63, 0.0  ;;  %v306_v9 = vmul.f32 %v3203_v34, %v3203_v34  ;;  %v305_v63 = vmul.f32 %v3208_v35, %v3208_v35 }
  0x7b   :  { %349 = vadd.xlane.f32.xlu1 %v348_v22  ;;  %346 = vadd.xlane.f32.xlu0 %v345_v16  ;;  %v396_v22 = vsel %vm114_vm0, %v292_v13, 0.0  ;;  %v393_v16 = vsel %vm114_vm0, %v291_v15, 0.0  ;;  %v308_v13 = vmul.f32 %v3217_v42, %v3217_v42  ;;  %v307_v15 = vmul.f32 %v3222_v43, %v3222_v43 }
  0x7f   :  { %355 = vadd.xlane.f32.xlu1 %v354_v30  ;;  %352 = vadd.xlane.f32.xlu0 %v351_v20  ;;  %v402_v30 = vsel %vm114_vm0, %v294_v17, 0.0  ;;  %v399_v20 = vsel %vm114_vm0, %v293_v23, 0.0  ;;  %v310_v17 = vmul.f32 %v3231_v50, %v3231_v50  ;;  %v309_v23 = vmul.f32 %v3236_v51, %v3236_v51 }
  0x83   :  { %361 = vadd.xlane.f32.xlu1 %v360_v38  ;;  %358 = vadd.xlane.f32.xlu0 %v357_v24  ;;  %v408_v38 = vsel %vm114_vm0, %v296_v21, 0.0  ;;  %v405_v24 = vsel %vm114_vm0, %v295_v31, 0.0  ;;  %v312_v21 = vmul.f32 %v3245_v58, %v3245_v58  ;;  %v311_v31 = vmul.f32 %v3250_v59, %v3250_v59 }
  0x87   :  { %367 = vadd.xlane.f32.xlu1 %v366_v46  ;;  %364 = vadd.xlane.f32.xlu0 %v363_v28  ;;  %v414_v46 = vsel %vm114_vm0, %v298_v25, 0.0  ;;  %v411_v28 = vsel %vm114_vm0, %v297_v39, 0.0  ;;  %v314_v25 = vmul.f32 %v3259_v6, %v3259_v6  ;;  %v313_v39 = vmul.f32 %v3264_v7, %v3264_v7 }
  0x8b   :  { %373 = vadd.xlane.f32.xlu1 %v372_v1  ;;  %370 = vadd.xlane.f32.xlu0 %v369_v32  ;;  %v420_v1 = vsel %vm114_vm0, %v300_v29, 0.0  ;;  %v417_v32 = vsel %vm114_vm0, %v299_v5, 0.0 }
  0x8c   :  { %v3334_v54 = vpop.xlane.xlu1 %122  ;;  %v3336_v36 = vpop.xlane.xlu0 %116 }
  0x8f   :  { %379 = vadd.xlane.f32.xlu1 %v378_v37  ;;  %376 = vadd.xlane.f32.xlu0 %v375_v2  ;;  %v426_v37 = vsel %vm114_vm0, %v302_v33, 0.0  ;;  %v423_v2 = vsel %vm114_vm0, %v301_v47, 0.0 }
  0x90   :  { %v3344_v40 = vpop.xlane.xlu1 %125  ;;  %v3346_v41 = vpop.xlane.xlu0 %119 }
  0x93   :  { %385 = vadd.xlane.f32.xlu1 %v384_v62  ;;  %382 = vadd.xlane.f32.xlu0 %v381_v8  ;;  %v432_v62 = vsel %vm114_vm0, %v304_v0, 0.0  ;;  %v429_v8 = vsel %vm114_vm0, %v303_v55, 0.0 }
  0x94   :  { %v3354_v44 = vpop.xlane.xlu1 %131  ;;  %v3356_v45 = vpop.xlane.xlu0 %128 }
  0x97   :  { %391 = vadd.xlane.f32.xlu1 %v390_v14  ;;  %388 = vadd.xlane.f32.xlu0 %v387_v12  ;;  %v438_v14 = vsel %vm114_vm0, %v306_v9, 0.0  ;;  %v435_v12 = vsel %vm114_vm0, %v305_v63, 0.0 }
  0x98   :  { %v3364_v48 = vpop.xlane.xlu1 %137  ;;  %v3366_v49 = vpop.xlane.xlu0 %134 }
  0x9b   :  { %397 = vadd.xlane.f32.xlu1 %v396_v22  ;;  %394 = vadd.xlane.f32.xlu0 %v393_v16  ;;  %v444_v22 = vsel %vm114_vm0, %v308_v13, 0.0  ;;  %v441_v16 = vsel %vm114_vm0, %v307_v15, 0.0  ;;  %v3517_v13 = vmul.f32 0.020408163, %v3334_v54  ;;  %v3520_v15 = vmul.f32 0.020408163, %v3336_v36 }
  0x9c   :  { %v3374_v52 = vpop.xlane.xlu1 %143  ;;  %v3376_v53 = vpop.xlane.xlu0 %140  ;;  %v3542_v36 = vmul.f32 0.020408163, %v3366_v49 }
  0x9d   :  { %v3556_v49 = vmul.f32 0.020408163, %v3376_v53 }
  0x9f   :  { %403 = vadd.xlane.f32.xlu1 %v402_v30  ;;  %400 = vadd.xlane.f32.xlu0 %v399_v20  ;;  %v450_v30 = vsel %vm114_vm0, %v310_v17, 0.0  ;;  %v447_v20 = vsel %vm114_vm0, %v309_v23, 0.0  ;;  %v3529_v17 = vmul.f32 0.020408163, %v3354_v44  ;;  %v3532_v23 = vmul.f32 0.020408163, %v3356_v45 }
  0xa0   :  { %v3384_v56 = vpop.xlane.xlu1 %149  ;;  %v3386_v57 = vpop.xlane.xlu0 %146  ;;  %v567_v44 = vmul.f32 %v3517_v13, %v3517_v13  ;;  %v565_v45 = vmul.f32 %v3520_v15, %v3520_v15 }
  0xa3   :  { %409 = vadd.xlane.f32.xlu1 %v408_v38  ;;  %406 = vadd.xlane.f32.xlu0 %v405_v24  ;;  %v456_v38 = vsel %vm114_vm0, %v312_v21, 0.0  ;;  %v453_v24 = vsel %vm114_vm0, %v311_v31, 0.0  ;;  %v3562_v21 = vmul.f32 %v3529_v17, %v3529_v17  ;;  %v3565_v31 = vmul.f32 0.020408163, %v3384_v56 }
  0xa4   :  { %v3394_v60 = vpop.xlane.xlu1 %155  ;;  %v3396_v61 = vpop.xlane.xlu0 %152 }
  0xa7   :  { %415 = vadd.xlane.f32.xlu1 %v414_v46  ;;  %412 = vadd.xlane.f32.xlu0 %v411_v28  ;;  %v462_v46 = vsel %vm114_vm0, %v314_v25, 0.0  ;;  %v459_v28 = vsel %vm114_vm0, %v313_v39, 0.0  ;;  %v3579_v25 = vmul.f32 0.020408163, %v3394_v60  ;;  %v3582_v39 = vmul.f32 0.020408163, %v3396_v61 }
  0xa8   :  { %v3404_v3 = vpop.xlane.xlu1 %161  ;;  %v3406_v4 = vpop.xlane.xlu0 %158 }
  0xa9   :  { %5885 = vst [vmem:[#allocation13_spill] sm:$0xff] %v3579_v25  ;;  %v3597_v60 = vmul.f32 0.020408163, %v3404_v3  ;;  %v3600_v61 = vmul.f32 0.020408163, %v3406_v4  ;;  %v3615_v3 = vmul.f32 %v3579_v25, %v3579_v25  ;;  %v3619_v4 = vmul.f32 %v3582_v39, %v3582_v39 }
  0xab   :  { %421 = vadd.xlane.f32.xlu1 %v420_v1  ;;  %418 = vadd.xlane.f32.xlu0 %v417_v32  ;;  %5886 = vst [vmem:[#allocation14_spill] sm:$0xff] %v3597_v60  ;;  %5887 = vst [vmem:[#allocation15_spill] sm:$0xff] %v3600_v61 }
  0xac   :  { %v3414_v10 = vpop.xlane.xlu1 %167  ;;  %v3416_v11 = vpop.xlane.xlu0 %164 }
  0xaf   :  { %427 = vadd.xlane.f32.xlu1 %v426_v37  ;;  %424 = vadd.xlane.f32.xlu0 %v423_v2 }
  0xb0   :  { %v3424_v18 = vpop.xlane.xlu1 %173  ;;  %v3426_v19 = vpop.xlane.xlu0 %170 }
  0xb3   :  { %433 = vadd.xlane.f32.xlu1 %v432_v62  ;;  %430 = vadd.xlane.f32.xlu0 %v429_v8 }
  0xb4   :  { %v3434_v26 = vpop.xlane.xlu1 %179  ;;  %v3436_v27 = vpop.xlane.xlu0 %176 }
  0xb7   :  { %439 = vadd.xlane.f32.xlu1 %v438_v14  ;;  %436 = vadd.xlane.f32.xlu0 %v435_v12 }
  0xb8   :  { %v3444_v34 = vpop.xlane.xlu1 %185  ;;  %v3446_v35 = vpop.xlane.xlu0 %182 }
  0xbb   :  { %445 = vadd.xlane.f32.xlu1 %v444_v22  ;;  %442 = vadd.xlane.f32.xlu0 %v441_v16  ;;  %v3523_v22 = vmul.f32 0.020408163, %v3344_v40  ;;  %v3526_v16 = vmul.f32 0.020408163, %v3346_v41  ;;  %v3545_v40 = vmul.f32 0.020408163, %v3374_v52 }
  0xbc   :  { %v3454_v42 = vpop.xlane.xlu1 %191  ;;  %v3456_v43 = vpop.xlane.xlu0 %188  ;;  %v5829_v41 = vmov 0  }
  0xbd   :  { %2644 = vset.pattern.permute.xlu0 %v5829_v41  ;;  %2645 = vset.pattern.permute.xlu1 %v5829_v41  ;;  %v566_v52 = vmul.f32 %v3526_v16, %v3526_v16 }
  0xbf   :  { %451 = vadd.xlane.f32.xlu1 %v450_v30  ;;  %448 = vadd.xlane.f32.xlu0 %v447_v20  ;;  %v3535_v30 = vmul.f32 0.020408163, %v3364_v48  ;;  %v568_v48 = vmul.f32 %v3523_v22, %v3523_v22 }
  0xc0   :  { %v3464_v50 = vpop.xlane.xlu1 %197  ;;  %v3466_v51 = vpop.xlane.xlu0 %194 }
  0xc1   :  { %v3576_v53 = vmul.f32 %v3535_v30, %v3535_v30 }
  0xc3   :  { %457 = vadd.xlane.f32.xlu1 %v456_v38  ;;  %454 = vadd.xlane.f32.xlu0 %v453_v24  ;;  %v3568_v38 = vmul.f32 0.020408163, %v3386_v57  ;;  %v3572_v24 = vmul.f32 %v3532_v23, %v3532_v23  ;;  %v3586_v57 = vmul.f32 %v3542_v36, %v3542_v36 }
  0xc4   :  { %v3474_v58 = vpop.xlane.xlu1 %203  ;;  %v3476_v59 = vpop.xlane.xlu0 %200 }
  0xc7   :  { %463 = vadd.xlane.f32.xlu1 %v462_v46  ;;  %460 = vadd.xlane.f32.xlu0 %v459_v28  ;;  %v3590_v28 = vmul.f32 %v3545_v40, %v3545_v40 }
  0xc8   :  { %v3480_v29 = vpop.xlane.xlu1 %209  ;;  %v3482_v5 = vpop.xlane.xlu0 %206 }
  0xcc   :  { %v3484_v6 = vpop.xlane.xlu1 %215  ;;  %v3486_v1 = vpop.xlane.xlu0 %212 }
  0xd0   :  { %v3488_v7 = vpop.xlane.xlu1 %221  ;;  %v3490_v32 = vpop.xlane.xlu0 %218 }
  0xd4   :  { %v3492_v33 = vpop.xlane.xlu1 %227  ;;  %v3494_v47 = vpop.xlane.xlu0 %224 }
  0xd8   :  { %v3496_v37 = vpop.xlane.xlu1 %233  ;;  %v3498_v2 = vpop.xlane.xlu0 %230 }
  0xd9   :  { %5874 = vst [vmem:[#allocation2_spill] sm:$0xff] %v3498_v2 }
  0xdc   :  { %v3500_v0 = vpop.xlane.xlu1 %239  ;;  %v3502_v55 = vpop.xlane.xlu0 %236 }
  0xdd   :  { %5875 = vst [vmem:[#allocation3_spill] sm:$0xff] %v3500_v0  ;;  %5876 = vst [vmem:[#allocation4_spill] sm:$0xff] %v3502_v55 }
  0xe0   :  { %v3504_v62 = vpop.xlane.xlu1 %245  ;;  %v3506_v8 = vpop.xlane.xlu0 %242 }
  0xe1   :  { %5877 = vst [vmem:[#allocation5_spill] sm:$0xff] %v3504_v62  ;;  %5878 = vst [vmem:[#allocation6_spill] sm:$0xff] %v3506_v8 }
  0xe4   :  { %v3508_v9 = vpop.xlane.xlu1 %251  ;;  %v3510_v63 = vpop.xlane.xlu0 %248 }
  0xe5   :  { %5879 = vst [vmem:[#allocation7_spill] sm:$0xff] %v3508_v9  ;;  %5880 = vst [vmem:[#allocation8_spill] sm:$0xff] %v3510_v63  ;;  %v3625_v9 = vmul.f32 0.020408163, %v3424_v18  ;;  %v3640_v18 = vmul.f32 0.020408163, %v3426_v19 }
  0xe7   :  { %5890 = vst [vmem:[#allocation18_spill] sm:$0xff] %v3625_v9 }
  0xe8   :  { %v3512_v14 = vpop.xlane.xlu1 %257  ;;  %v3514_v12 = vpop.xlane.xlu0 %254 }
  0xe9   :  { %5881 = vst [vmem:[#allocation9_spill] sm:$0xff] %v3512_v14  ;;  %5882 = vst [vmem:[#allocation10_spill] sm:$0xff] %v3514_v12  ;;  %v3603_v12 = vmul.f32 0.020408163, %v3414_v10  ;;  %v3607_v14 = vmul.f32 %v3565_v31, %v3565_v31  ;;  %v3622_v10 = vmul.f32 0.020408163, %v3416_v11 }
  0xeb   :  { %5888 = vst [vmem:[#allocation16_spill] sm:$0xff] %v3603_v12  ;;  %5889 = vst [vmem:[#allocation17_spill] sm:$0xff] %v3622_v10  ;;  %v3637_v11 = vmul.f32 %v3603_v12, %v3603_v12  ;;  %v3654_v12 = vmul.f32 0.020408163, %v3436_v27 }
  0xec   :  { %v3537_v54 = vpop.xlane.xlu1 %263  ;;  %v3539_v20 = vpop.xlane.xlu0 %260 }
  0xed   :  { %5883 = vst [vmem:[#allocation11_spill] sm:$0xff] %v3537_v54  ;;  %5884 = vst [vmem:[#allocation12_spill] sm:$0xff] %v3539_v20  ;;  %v3594_v54 = vmul.f32 %v3556_v49, %v3556_v49 }
  0xf0   :  { %v320_v46 = vpop.xlane.xlu1 %319  ;;  %v317_v56 = vpop.xlane.xlu0 %316 }
  0xf1   :  { %v516_v41 = vmul.f32 0.020408163, %v320_v46  ;;  %v515_v20 = vmul.f32 0.020408163, %v317_v56  ;;  %v3611_v46 = vmul.f32 %v3568_v38, %v3568_v38 }
  0xf3   :  { %v616_v56 = vsub.f32 %v516_v41, %v566_v52  ;;  %v615_v63 = vsub.f32 %v515_v20, %v565_v45  ;;  %v3629_v45 = vmul.f32 %v3597_v60, %v3597_v60  ;;  %v3633_v52 = vmul.f32 %v3600_v61, %v3600_v61 }
  0xf4   :  { %v326_v8 = vpop.xlane.xlu1 %325  ;;  %v323_v62 = vpop.xlane.xlu0 %322  ;;  %v3648_v60 = vmul.f32 %v3625_v9, %v3625_v9  ;;  %v3651_v61 = vmul.f32 0.020408163, %v3434_v26  ;;  %v3664_v26 = vmul.f32 %v3640_v18, %v3640_v18 }
  0xf5   :  { %v666_v55 = vmax.f32 %v616_v56, 0.0  ;;  %v665_v0 = vmax.f32 %v615_v63, 0.0  ;;  %v518_v41 = vmul.f32 0.020408163, %v326_v8  ;;  %v517_v20 = vmul.f32 0.020408163, %v323_v62 }
  0xf6   :  { %v3644_v62 = vmul.f32 %v3622_v10, %v3622_v10 }
  0xf7   :  { %v716_v25 = vadd.f32 1e-05, %v666_v55  ;;  %v715_v56 = vadd.f32 1e-05, %v665_v0  ;;  %v618_v63 = vsub.f32 %v518_v41, %v568_v48  ;;  %v617_v8 = vsub.f32 %v517_v20, %v567_v44 }
  0xf8   :  { %v332_v19 = vpop.xlane.xlu1 %331  ;;  %v329_v2 = vpop.xlane.xlu0 %328  ;;  %v3657_v48 = vmul.f32 0.020408163, %v3444_v34  ;;  %v3660_v41 = vmul.f32 0.020408163, %v3446_v35  ;;  %v3673_v34 = vmul.f32 %v3654_v12, %v3654_v12  ;;  %v3676_v35 = vmul.f32 0.020408163, %v3454_v42 }
  0xf9   :  { %2729 = vrsqrt.f32 %v716_v25  ;;  %v668_v0 = vmax.f32 %v618_v63, 0.0  ;;  %v667_v55 = vmax.f32 %v617_v8, 0.0  ;;  %v520_v44 = vmul.f32 0.020408163, %v332_v19 }
  0xfa   :  { %5891 = vst [vmem:[#allocation19_spill] sm:$0xff] %v3657_v48  ;;  %5892 = vst [vmem:[#allocation20_spill] sm:$0xff] %v3660_v41  ;;  %2731 = vrsqrt.f32 %v715_v56  ;;  %v519_v20 = vmul.f32 0.020408163, %v329_v2  ;;  %v3669_v25 = vmul.f32 %v3651_v61, %v3651_v61  ;;  %v3688_v42 = vmul.f32 0.020408163, %v3456_v43 }
  0xfb   :  { %v718_v27 = vadd.f32 1e-05, %v668_v0  ;;  %v717_v9 = vadd.f32 1e-05, %v667_v55  ;;  %v620_v10 = vsub.f32 %v520_v44, %v3562_v21  ;;  %5893 = vst [vmem:[#allocation21_spill] sm:$0xff] %v3676_v35  ;;  %v3681_v21 = vmul.f32 %v3657_v48, %v3657_v48 }
  0xfc   :  { %v619_v2 = vsub.f32 %v519_v20, %v3572_v24  ;;  %v338_v56 = vpop.xlane.xlu1 %337  ;;  %v335_v63 = vpop.xlane.xlu0 %334  ;;  %v3685_v55 = vmul.f32 %v3660_v41, %v3660_v41  ;;  %5894 = vst [vmem:[#allocation22_spill] sm:$0xff] %v3688_v42 }
  0xfd   :  { %2733 = vrsqrt.f32 %v718_v27  ;;  %v670_v8 = vmax.f32 %v620_v10, 0.0  ;;  %v522_v19 = vmul.f32 0.020408163, %v338_v56  ;;  %v521_v0 = vmul.f32 0.020408163, %v335_v63 }
  0xfe   :  { %2735 = vrsqrt.f32 %v717_v9  ;;  %v669_v44 = vmax.f32 %v619_v2, 0.0  ;;  %v3694_v27 = vmul.f32 %v3676_v35, %v3676_v35  ;;  %v3697_v56 = vmul.f32 0.020408163, %v3464_v50 }
  0xff   :  { %v720_v24 = vadd.f32 1e-05, %v670_v8  ;;  %v622_v20 = vsub.f32 %v522_v19, %v3576_v53  ;;  %v621_v10 = vsub.f32 %v521_v0, %v3586_v57  ;;  %v3700_v63 = vmul.f32 0.020408163, %v3466_v51 }
 0x100   :  { %5895 = vst [vmem:[#allocation23_spill] sm:$0xff] %v3697_v56  ;;  %v719_v9 = vadd.f32 1e-05, %v669_v44  ;;  %v344_v2 = vpop.xlane.xlu1 %343  ;;  %v341_v48 = vpop.xlane.xlu0 %340  ;;  %v3703_v53 = vmul.f32 0.020408163, %v3474_v58  ;;  %v3710_v50 = vmul.f32 %v3688_v42, %v3688_v42 }
 0x101   :  { %5896 = vst [vmem:[#allocation24_spill] sm:$0xff] %v3700_v63  ;;  %2737 = vrsqrt.f32 %v720_v24  ;;  %v672_v43 = vmax.f32 %v622_v20, 0.0  ;;  %v671_v8 = vmax.f32 %v621_v10, 0.0  ;;  %v524_v41 = vmul.f32 0.020408163, %v344_v2 }
 0x102   :  { %5897 = vst [vmem:[#allocation25_spill] sm:$0xff] %v3703_v53  ;;  %v3706_v57 = vmul.f32 0.020408163, %v3476_v59  ;;  %2739 = vrsqrt.f32 %v719_v9  ;;  %v523_v19 = vmul.f32 0.020408163, %v341_v48  ;;  %v3715_v24 = vmul.f32 %v3697_v56, %v3697_v56  ;;  %v65_v9 = vld [vmem:[%s5826_s1 + $0x8] sm:$0xff] }
 0x103   :  { %v722_v51 = vadd.f32 1e-05, %v672_v43  ;;  %v721_v0 = vadd.f32 1e-05, %v671_v8  ;;  %v624_v44 = vsub.f32 %v524_v41, %v3590_v28  ;;  %v3719_v58 = vmul.f32 %v3700_v63, %v3700_v63  ;;  %v64_v43 = vld [vmem:[%s5826_s1] sm:$0xff] }
 0x104   :  { %5898 = vst [vmem:[#allocation26_spill] sm:$0xff] %v3706_v57  ;;  %v3722_v59 = vmul.f32 0.020408163, %v3480_v29  ;;  %v623_v48 = vsub.f32 %v523_v19, %v3594_v54  ;;  %v350_v20 = vpop.xlane.xlu1 %349  ;;  %v347_v10 = vpop.xlane.xlu0 %346  ;;  %v3733_v29 = vmul.f32 %v3703_v53, %v3703_v53  ;;  %v3737_v54 = vmul.f32 %v3706_v57, %v3706_v57 }
 0x105   :  { %2741 = vrsqrt.f32 %v722_v51  ;;  %v674_v28 = vmax.f32 %v624_v44, 0.0  ;;  %v526_v41 = vmul.f32 0.020408163, %v350_v20  ;;  %v525_v2 = vmul.f32 0.020408163, %v347_v10 }
 0x106   :  { %v2730_v8 = vpop.eup %2729  ;;  %2743 = vrsqrt.f32 %v721_v0  ;;  %v673_v19 = vmax.f32 %v623_v48, 0.0  ;;  %v3745_v63 = vmul.f32 %v3722_v59, %v3722_v59  ;;  %v3748_v53 = vmul.f32 0.020408163, %v3482_v5 }
 0x107   :  { %v2732_v56 = vpop.eup %2731  ;;  %v724_v51 = vadd.f32 1e-05, %v674_v28  ;;  %v626_v44 = vsub.f32 %v526_v41, %v3607_v14  ;;  %v625_v20 = vsub.f32 %v525_v2, %v3611_v46  ;;  %v3741_v10 = vmul.f32 %v2730_v8, %v65_v9  ;;  %v66_v46 = vld [vmem:[%s5826_s1 + $0x10] sm:$0xff] }
 0x108   :  { %v723_v35 = vadd.f32 1e-05, %v673_v19  ;;  %v356_v57 = vpop.xlane.xlu1 %355  ;;  %v353_v42 = vpop.xlane.xlu0 %352  ;;  %v3750_v0 = vmul.f32 %v2732_v56, %v64_v43  ;;  %v67_v56 = vld [vmem:[%s5826_s1 + $0x18] sm:$0xff] }
 0x109   :  { %2745 = vrsqrt.f32 %v724_v51  ;;  %v676_v48 = vmax.f32 %v626_v44, 0.0  ;;  %v675_v28 = vmax.f32 %v625_v20, 0.0  ;;  %v528_v14 = vmul.f32 0.020408163, %v356_v57 }
 0x10a   :  { %v2734_v9 = vpop.eup %2733  ;;  %2747 = vrsqrt.f32 %v723_v35  ;;  %v527_v41 = vmul.f32 0.020408163, %v353_v42  ;;  %v866_v5 = vmul.f32 %v3741_v10, %v3526_v16  ;;  %v865_v2 = vmul.f32 %v3750_v0, %v3520_v15 }
 0x10b   :  { %v2736_v43 = vpop.eup %2735  ;;  %v3763_v57 = vmul.f32 0.020408163, %v3484_v6  ;;  %v726_v8 = vadd.f32 1e-05, %v676_v48  ;;  %v725_v19 = vadd.f32 1e-05, %v675_v28  ;;  %v628_v51 = vsub.f32 %v528_v14, %v3615_v3 }
 0x10c   :  { %v3768_v35 = vmul.f32 %v3748_v53, %v3748_v53  ;;  %v3771_v16 = vmul.f32 0.020408163, %v3486_v1  ;;  %v627_v15 = vsub.f32 %v527_v41, %v3619_v4  ;;  %967 = vrot.lane.b32.xlu1 %v866_v5, %s2898_s12  ;;  %965 = vrot.lane.b32.xlu0 %v865_v2, %s2898_s12  ;;  %v362_v6 = vpop.xlane.xlu1 %361  ;;  %v359_v42 = vpop.xlane.xlu0 %358  ;;  %v3776_v44 = vmul.f32 %v2736_v43, %v66_v46  ;;  %v68_v3 = vld [vmem:[%s5826_s1 + $0x20] sm:$0xff]  ;;  %v69_v4 = vld [vmem:[%s5826_s1 + $0x28] sm:$0xff] }
 0x10d   :  { %2749 = vrsqrt.f32 %v726_v8  ;;  %v678_v20 = vmax.f32 %v628_v51, 0.0  ;;  %v530_v48 = vmul.f32 0.020408163, %v362_v6  ;;  %v529_v1 = vmul.f32 0.020408163, %v359_v42 }
 0x10e   :  { %5899 = vst [vmem:[#allocation27_spill] sm:$0xff] %v3776_v44  ;;  %v2738_v28 = vpop.eup %2737  ;;  %2751 = vrsqrt.f32 %v725_v19  ;;  %v677_v14 = vmax.f32 %v627_v15, 0.0  ;;  %v867_v41 = vmul.f32 %v3776_v44, %v3517_v13  ;;  %v3786_v46 = vmul.f32 %v2734_v9, %v67_v56 }
 0x10f   :  { %v2740_v5 = vpop.eup %2739  ;;  %v3790_v2 = vmul.f32 %v3763_v57, %v3763_v57  ;;  %v728_v43 = vadd.f32 1e-05, %v678_v20  ;;  %v630_v8 = vsub.f32 %v530_v48, %v3629_v45  ;;  %v629_v51 = vsub.f32 %v529_v1, %v3633_v52  ;;  %v70_v45 = vld [vmem:[%s5826_s1 + $0x30] sm:$0xff] }
 0x110   :  { %v3796_v6 = vmul.f32 %v3771_v16, %v3771_v16  ;;  %v727_v19 = vadd.f32 1e-05, %v677_v14  ;;  %969 = vrot.lane.b32.xlu1 %v867_v41, %s2898_s12  ;;  %v368_v13 = vpop.xlane.xlu1 %367  ;;  %v365_v9 = vpop.xlane.xlu0 %364  ;;  %v3799_v56 = vmul.f32 %v2740_v5, %v68_v3  ;;  %v3801_v15 = vmul.f32 %v2738_v28, %v69_v4  ;;  %v71_v4 = vld [vmem:[%s5826_s1 + $0x38] sm:$0xff] }
 0x111   :  { %2753 = vrsqrt.f32 %v728_v43  ;;  %v680_v42 = vmax.f32 %v630_v8, 0.0  ;;  %v679_v20 = vmax.f32 %v629_v51, 0.0  ;;  %v532_v44 = vmul.f32 0.020408163, %v368_v13 }
 0x112   :  { %v2742_v52 = vpop.eup %2741  ;;  %2755 = vrsqrt.f32 %v727_v19  ;;  %v531_v48 = vmul.f32 0.020408163, %v365_v9  ;;  %v868_v1 = vmul.f32 %v3786_v46, %v3523_v22  ;;  %v869_v3 = vmul.f32 %v3799_v56, %v3532_v23 }
 0x113   :  { %v2744_v28 = vpop.eup %2743  ;;  %v3814_v14 = vmul.f32 0.020408163, %v3488_v7  ;;  %v730_v41 = vadd.f32 1e-05, %v680_v42  ;;  %v729_v5 = vadd.f32 1e-05, %v679_v20  ;;  %v632_v43 = vsub.f32 %v532_v44, %v3637_v11 }
 0x114   :  { %v3818_v8 = vmul.f32 0.020408163, %v3490_v32  ;;  %v631_v22 = vsub.f32 %v531_v48, %v3644_v62  ;;  %971 = vrot.lane.b32.xlu1 %v868_v1, %s2898_s12  ;;  %973 = vrot.lane.b32.xlu0 %v869_v3, %s2898_s12  ;;  %v374_v23 = vpop.xlane.xlu1 %373  ;;  %v371_v51 = vpop.xlane.xlu0 %370  ;;  %v870_v19 = vmul.f32 %v3801_v15, %v3529_v17  ;;  %v3825_v7 = vmul.f32 %v2744_v28, %v70_v45  ;;  %v72_v11 = vld [vmem:[%s5826_s1 + $0x40] sm:$0xff]  ;;  %v73_v62 = vld [vmem:[%s5826_s1 + $0x48] sm:$0xff] }
 0x115   :  { %2757 = vrsqrt.f32 %v730_v41  ;;  %v682_v32 = vmax.f32 %v632_v43, 0.0  ;;  %v534_v44 = vmul.f32 0.020408163, %v374_v23  ;;  %v533_v13 = vmul.f32 0.020408163, %v371_v51 }
 0x116   :  { %v2746_v9 = vpop.eup %2745  ;;  %2759 = vrsqrt.f32 %v729_v5  ;;  %v681_v42 = vmax.f32 %v631_v22, 0.0  ;;  %v871_v17 = vmul.f32 %v3825_v7, %v3542_v36  ;;  %v3835_v20 = vmul.f32 %v2742_v52, %v71_v4 }
 0x117   :  { %v2748_v45 = vpop.eup %2747  ;;  %v3839_v48 = vmul.f32 %v3814_v14, %v3814_v14  ;;  %v732_v1 = vadd.f32 1e-05, %v682_v32  ;;  %v634_v3 = vsub.f32 %v534_v44, %v3648_v60  ;;  %v633_v28 = vsub.f32 %v533_v13, %v3664_v26  ;;  %v74_v26 = vld [vmem:[%s5826_s1 + $0x50] sm:$0xff]  ;;  %v75_v44 = vld [vmem:[%s5826_s1 + $0x58] sm:$0xff] }
 0x118   :  { %v3845_v41 = vmul.f32 %v3818_v8, %v3818_v8  ;;  %v731_v5 = vadd.f32 1e-05, %v681_v42  ;;  %975 = vrot.lane.b32.xlu1 %v870_v19, %s2898_s12  ;;  %977 = vrot.lane.b32.xlu0 %v871_v17, %s2898_s12  ;;  %v380_v36 = vpop.xlane.xlu1 %379  ;;  %v377_v52 = vpop.xlane.xlu0 %376  ;;  %v3849_v4 = vmul.f32 %v2748_v45, %v72_v11  ;;  %v3851_v43 = vmul.f32 %v2746_v9, %v73_v62 }
 0x119   :  { %2761 = vrsqrt.f32 %v732_v1  ;;  %v684_v22 = vmax.f32 %v634_v3, 0.0  ;;  %v683_v60 = vmax.f32 %v633_v28, 0.0  ;;  %v536_v23 = vmul.f32 0.020408163, %v380_v36 }
 0x11a   :  { %v2750_v51 = vpop.eup %2749  ;;  %2763 = vrsqrt.f32 %v731_v5  ;;  %v535_v32 = vmul.f32 0.020408163, %v377_v52  ;;  %v872_v19 = vmul.f32 %v3835_v20, %v3535_v30  ;;  %v873_v11 = vmul.f32 %v3849_v4, %v3556_v49 }
 0x11b   :  { %v2752_v13 = vpop.eup %2751  ;;  %v3864_v62 = vmul.f32 0.020408163, %v3492_v33  ;;  %v734_v9 = vadd.f32 1e-05, %v684_v22  ;;  %v733_v42 = vadd.f32 1e-05, %v683_v60  ;;  %v636_v17 = vsub.f32 %v536_v23, %v3669_v25 }
 0x11c   :  { %v3868_v45 = vmul.f32 0.020408163, %v3494_v47  ;;  %v635_v30 = vsub.f32 %v535_v32, %v3673_v34  ;;  %979 = vrot.lane.b32.xlu1 %v872_v19, %s2898_s12  ;;  %981 = vrot.lane.b32.xlu0 %v873_v11, %s2898_s12  ;;  %v386_v49 = vpop.xlane.xlu1 %385  ;;  %v383_v1 = vpop.xlane.xlu0 %382  ;;  %v874_v3 = vmul.f32 %v3851_v43, %v3545_v40  ;;  %v3875_v33 = vmul.f32 %v2752_v13, %v74_v26  ;;  %v76_v25 = vld [vmem:[%s5826_s1 + $0x60] sm:$0xff]  ;;  %v77_v34 = vld [vmem:[%s5826_s1 + $0x68] sm:$0xff] }
 0x11d   :  { %2765 = vrsqrt.f32 %v734_v9  ;;  %v686_v47 = vmax.f32 %v636_v17, 0.0  ;;  %v538_v28 = vmul.f32 0.020408163, %v386_v49  ;;  %v537_v5 = vmul.f32 0.020408163, %v383_v1 }
 0x11e   :  { %v2754_v36 = vpop.eup %2753  ;;  %2767 = vrsqrt.f32 %v733_v42  ;;  %v685_v52 = vmax.f32 %v635_v30, 0.0  ;;  %v875_v40 = vmul.f32 %v3875_v33, %v3568_v38  ;;  %v3885_v22 = vmul.f32 %v2750_v51, %v75_v44 }
 0x11f   :  { %v2756_v60 = vpop.eup %2755  ;;  %v3889_v23 = vmul.f32 %v3864_v62, %v3864_v62  ;;  %v736_v26 = vadd.f32 1e-05, %v686_v47  ;;  %v638_v32 = vsub.f32 %v538_v28, %v3681_v21  ;;  %v637_v19 = vsub.f32 %v537_v5, %v3685_v55  ;;  %v78_v55 = vld [vmem:[%s5826_s1 + $0x70] sm:$0xff] }
 0x120   :  { %v3895_v11 = vmul.f32 %v3868_v45, %v3868_v45  ;;  %v735_v13 = vadd.f32 1e-05, %v685_v52  ;;  %983 = vrot.lane.b32.xlu1 %v874_v3, %s2898_s12  ;;  %985 = vrot.lane.b32.xlu0 %v875_v40, %s2898_s12  ;;  %v392_v38 = vpop.xlane.xlu1 %391  ;;  %v389_v51 = vpop.xlane.xlu0 %388  ;;  %v3899_v44 = vmul.f32 %v2756_v60, %v76_v25  ;;  %v3901_v9 = vmul.f32 %v2754_v36, %v77_v34  ;;  %v79_v25 = vld [vmem:[%s5826_s1 + $0x78] sm:$0xff]  ;;  %v5900_v52 = vld [vmem:[#allocation2_spill] sm:$0xff] }
 0x121   :  { %2769 = vrsqrt.f32 %v736_v26  ;;  %v688_v42 = vmax.f32 %v638_v32, 0.0  ;;  %v687_v21 = vmax.f32 %v637_v19, 0.0  ;;  %v540_v17 = vmul.f32 0.020408163, %v392_v38  ;;  %v5901_v26 = vld [vmem:[#allocation13_spill] sm:$0xff]  ;;  %v3935_v38 = vld [vmem:[%s5826_s1 + $0x88] sm:$0xff] }
 0x122   :  { %v2758_v30 = vpop.eup %2757  ;;  %2771 = vrsqrt.f32 %v735_v13  ;;  %v539_v49 = vmul.f32 0.020408163, %v389_v51  ;;  %v876_v1 = vmul.f32 %v3885_v22, %v3565_v31  ;;  %v877_v3 = vmul.f32 %v3899_v44, %v3582_v39  ;;  %5903 = vst [vmem:[#allocation13_spill] sm:$0xff] %v3935_v38 }
 0x123   :  { %v2760_v47 = vpop.eup %2759  ;;  %v3914_v28 = vmul.f32 0.020408163, %v3496_v37  ;;  %v738_v5 = vadd.f32 1e-05, %v688_v42  ;;  %v737_v34 = vadd.f32 1e-05, %v687_v21  ;;  %v640_v36 = vsub.f32 %v540_v17, %v3694_v27 }
 0x124   :  { %v3918_v40 = vmul.f32 0.020408163, %v5900_v52  ;;  %v639_v31 = vsub.f32 %v539_v49, %v3710_v50  ;;  %987 = vrot.lane.b32.xlu1 %v876_v1, %s2898_s12  ;;  %989 = vrot.lane.b32.xlu0 %v877_v3, %s2898_s12  ;;  %v398_v39 = vpop.xlane.xlu1 %397  ;;  %v395_v60 = vpop.xlane.xlu0 %394  ;;  %v878_v32 = vmul.f32 %v3901_v9, %v5901_v26  ;;  %v3925_v37 = vmul.f32 %v2760_v47, %v78_v55  ;;  %v3930_v27 = vld [vmem:[%s5826_s1 + $0x80] sm:$0xff]  ;;  %v5904_v21 = vld [vmem:[#allocation15_spill] sm:$0xff] }
 0x125   :  { %5902 = vst [vmem:[#allocation2_spill] sm:$0xff] %v3930_v27  ;;  %2773 = vrsqrt.f32 %v738_v5  ;;  %v690_v19 = vmax.f32 %v640_v36, 0.0  ;;  %v542_v13 = vmul.f32 0.020408163, %v398_v39  ;;  %v541_v50 = vmul.f32 0.020408163, %v395_v60 }
 0x126   :  { %v2762_v51 = vpop.eup %2761  ;;  %2775 = vrsqrt.f32 %v737_v34  ;;  %v689_v42 = vmax.f32 %v639_v31, 0.0  ;;  %v879_v17 = vmul.f32 %v3925_v37, %v5904_v21  ;;  %v3939_v55 = vmul.f32 %v2758_v30, %v79_v25  ;;  %v82_v60 = vld [vmem:[%s5826_s1 + $0x90] sm:$0xff] }
 0x127   :  { %v2764_v49 = vpop.eup %2763  ;;  %v3943_v1 = vmul.f32 %v3914_v28, %v3914_v28  ;;  %v740_v3 = vadd.f32 1e-05, %v690_v19  ;;  %v642_v47 = vsub.f32 %v542_v13, %v3715_v24  ;;  %v641_v5 = vsub.f32 %v541_v50, %v3719_v58  ;;  %v5905_v19 = vld [vmem:[#allocation14_spill] sm:$0xff]  ;;  %v5906_v50 = vld [vmem:[#allocation17_spill] sm:$0xff] }
 0x128   :  { %v3949_v36 = vmul.f32 %v3918_v40, %v3918_v40  ;;  %v739_v34 = vadd.f32 1e-05, %v689_v42  ;;  %991 = vrot.lane.b32.xlu1 %v878_v32, %s2898_s12  ;;  %993 = vrot.lane.b32.xlu0 %v879_v17, %s2898_s12  ;;  %v404_v30 = vpop.xlane.xlu1 %403  ;;  %v401_v25 = vpop.xlane.xlu0 %400  ;;  %v3954_v52 = vmul.f32 %v2764_v49, %v3930_v27  ;;  %v3957_v31 = vmul.f32 %v2762_v51, %v3935_v38  ;;  %v83_v51 = vld [vmem:[%s5826_s1 + $0x98] sm:$0xff]  ;;  %v5907_v17 = vld [vmem:[#allocation3_spill] sm:$0xff]  ;;  %v5909_v38 = vld [vmem:[#allocation16_spill] sm:$0xff] }
 0x129   :  { %2777 = vrsqrt.f32 %v740_v3  ;;  %v692_v24 = vmax.f32 %v642_v47, 0.0  ;;  %v691_v58 = vmax.f32 %v641_v5, 0.0  ;;  %v544_v39 = vmul.f32 0.020408163, %v404_v30 }
 0x12a   :  { %v2766_v26 = vpop.eup %2765  ;;  %2779 = vrsqrt.f32 %v739_v34  ;;  %v543_v32 = vmul.f32 0.020408163, %v401_v25  ;;  %v880_v13 = vmul.f32 %v3939_v55, %v5905_v19  ;;  %v881_v42 = vmul.f32 %v3954_v52, %v5906_v50  ;;  %v5908_v34 = vld [vmem:[#allocation4_spill] sm:$0xff] }
 0x12b   :  { %v2768_v21 = vpop.eup %2767  ;;  %v3970_v49 = vmul.f32 0.020408163, %v5907_v17  ;;  %v742_v3 = vadd.f32 1e-05, %v692_v24  ;;  %v741_v47 = vadd.f32 1e-05, %v691_v58  ;;  %v644_v5 = vsub.f32 %v544_v39, %v3733_v29 }
 0x12c   :  { %v3974_v30 = vmul.f32 0.020408163, %v5908_v34  ;;  %v643_v25 = vsub.f32 %v543_v32, %v3737_v54  ;;  %995 = vrot.lane.b32.xlu1 %v880_v13, %s2898_s12  ;;  %997 = vrot.lane.b32.xlu0 %v881_v42, %s2898_s12  ;;  %v410_v19 = vpop.xlane.xlu1 %409  ;;  %v407_v50 = vpop.xlane.xlu0 %406  ;;  %v882_v27 = vmul.f32 %v3957_v31, %v5909_v38  ;;  %v3981_v17 = vmul.f32 %v2768_v21, %v82_v60  ;;  %v3986_v29 = vld [vmem:[%s5826_s1 + $0xa0] sm:$0xff]  ;;  %v3991_v39 = vld [vmem:[%s5826_s1 + $0xa8] sm:$0xff] }
 0x12d   :  { %5910 = vst [vmem:[#allocation15_spill] sm:$0xff] %v3986_v29  ;;  %2781 = vrsqrt.f32 %v742_v3  ;;  %v694_v24 = vmax.f32 %v644_v5, 0.0  ;;  %v546_v58 = vmul.f32 0.020408163, %v410_v19  ;;  %v545_v54 = vmul.f32 0.020408163, %v407_v50 }
 0x12e   :  { %5911 = vst [vmem:[#allocation14_spill] sm:$0xff] %v3991_v39  ;;  %v2770_v32 = vpop.eup %2769  ;;  %2783 = vrsqrt.f32 %v741_v47  ;;  %v693_v13 = vmax.f32 %v643_v25, 0.0  ;;  %v883_v38 = vmul.f32 %v3981_v17, %v3640_v18  ;;  %v3995_v60 = vmul.f32 %v2766_v26, %v83_v51 }
 0x12f   :  { %v2772_v42 = vpop.eup %2771  ;;  %v3999_v21 = vmul.f32 %v3970_v49, %v3970_v49  ;;  %v744_v3 = vadd.f32 1e-05, %v694_v24  ;;  %v646_v5 = vsub.f32 %v546_v58, %v3745_v63  ;;  %v645_v34 = vsub.f32 %v545_v54, %v3768_v35  ;;  %v4018_v24 = vld [vmem:[%s5826_s1 + $0xb0] sm:$0xff]  ;;  %v5915_v54 = vld [vmem:[#allocation18_spill] sm:$0xff] }
 0x130   :  { %v4005_v19 = vmul.f32 %v3974_v30, %v3974_v30  ;;  %v743_v47 = vadd.f32 1e-05, %v693_v13  ;;  %999 = vrot.lane.b32.xlu1 %v882_v27, %s2898_s12  ;;  %1001 = vrot.lane.b32.xlu0 %v883_v38, %s2898_s12  ;;  %v416_v18 = vpop.xlane.xlu1 %415  ;;  %v413_v26 = vpop.xlane.xlu0 %412  ;;  %v4010_v51 = vmul.f32 %v2772_v42, %v3986_v29  ;;  %v4013_v25 = vmul.f32 %v2770_v32, %v3991_v39  ;;  %v4027_v32 = vld [vmem:[%s5826_s1 + $0xb8] sm:$0xff] }
 0x131   :  { %2785 = vrsqrt.f32 %v744_v3  ;;  %v696_v63 = vmax.f32 %v646_v5, 0.0  ;;  %v695_v35 = vmax.f32 %v645_v34, 0.0  ;;  %v548_v50 = vmul.f32 0.020408163, %v416_v18  ;;  %5914 = vst [vmem:[#allocation4_spill] sm:$0xff] %v4018_v24  ;;  %5916 = vst [vmem:[#allocation16_spill] sm:$0xff] %v4027_v32 }
 0x132   :  { %5912 = vst [vmem:[#allocation17_spill] sm:$0xff] %v4010_v51  ;;  %5913 = vst [vmem:[#allocation3_spill] sm:$0xff] %v4013_v25  ;;  %v2774_v27 = vpop.eup %2773  ;;  %2787 = vrsqrt.f32 %v743_v47  ;;  %v547_v58 = vmul.f32 0.020408163, %v413_v26  ;;  %v884_v13 = vmul.f32 %v3995_v60, %v5915_v54  ;;  %v885_v38 = vmul.f32 %v4010_v51, %v3654_v12  ;;  %v5917_v3 = vld [vmem:[#allocation5_spill] sm:$0xff]  ;;  %v5918_v26 = vld [vmem:[#allocation6_spill] sm:$0xff] }
 0x133   :  { %v2776_v42 = vpop.eup %2775  ;;  %v4030_v5 = vmul.f32 0.020408163, %v5917_v3  ;;  %v746_v34 = vadd.f32 1e-05, %v696_v63  ;;  %v745_v18 = vadd.f32 1e-05, %v695_v35  ;;  %v648_v47 = vsub.f32 %v548_v50, %v3790_v2 }
 0x134   :  { %v4034_v39 = vmul.f32 0.020408163, %v5918_v26  ;;  %v647_v54 = vsub.f32 %v547_v58, %v3796_v6  ;;  %1003 = vrot.lane.b32.xlu1 %v884_v13, %s2898_s12  ;;  %1005 = vrot.lane.b32.xlu0 %v885_v38, %s2898_s12  ;;  %v422_v12 = vpop.xlane.xlu1 %421  ;;  %v419_v29 = vpop.xlane.xlu0 %418  ;;  %v886_v51 = vmul.f32 %v4013_v25, %v3651_v61  ;;  %v4042_v3 = vmul.f32 %v2776_v42, %v4018_v24  ;;  %v4047_v2 = vld [vmem:[%s5826_s1 + $0xc0] sm:$0xff]  ;;  %v4052_v50 = vld [vmem:[%s5826_s1 + $0xc8] sm:$0xff]  ;;  %v5922_v13 = vld [vmem:[#allocation20_spill] sm:$0xff] }
 0x135   :  { %5920 = vst [vmem:[#allocation5_spill] sm:$0xff] %v4047_v2  ;;  %2789 = vrsqrt.f32 %v746_v34  ;;  %v698_v63 = vmax.f32 %v648_v47, 0.0  ;;  %v550_v6 = vmul.f32 0.020408163, %v422_v12  ;;  %v549_v35 = vmul.f32 0.020408163, %v419_v29 }
 0x136   :  { %5919 = vst [vmem:[#allocation18_spill] sm:$0xff] %v4042_v3  ;;  %5921 = vst [vmem:[#allocation6_spill] sm:$0xff] %v4052_v50  ;;  %v2778_v58 = vpop.eup %2777  ;;  %2791 = vrsqrt.f32 %v745_v18  ;;  %v697_v61 = vmax.f32 %v647_v54, 0.0  ;;  %v887_v38 = vmul.f32 %v4042_v3, %v5922_v13  ;;  %v4057_v42 = vmul.f32 %v2774_v27, %v4027_v32 }
 0x137   :  { %v2780_v26 = vpop.eup %2779  ;;  %v4061_v34 = vmul.f32 %v4030_v5, %v4030_v5  ;;  %v748_v29 = vadd.f32 1e-05, %v698_v63  ;;  %v650_v47 = vsub.f32 %v550_v6, %v3839_v48  ;;  %v649_v12 = vsub.f32 %v549_v35, %v3845_v41  ;;  %v4080_v35 = vld [vmem:[%s5826_s1 + $0xd0] sm:$0xff] }
 0x138   :  { %5923 = vst [vmem:[#allocation20_spill] sm:$0xff] %v4057_v42  ;;  %v4067_v18 = vmul.f32 %v4034_v39, %v4034_v39  ;;  %v747_v54 = vadd.f32 1e-05, %v697_v61  ;;  %1007 = vrot.lane.b32.xlu1 %v886_v51, %s2898_s12  ;;  %1009 = vrot.lane.b32.xlu0 %v887_v38, %s2898_s12  ;;  %v428_v27 = vpop.xlane.xlu1 %427  ;;  %v425_v13 = vpop.xlane.xlu0 %424  ;;  %v4072_v32 = vmul.f32 %v2780_v26, %v4047_v2  ;;  %5926 = vst [vmem:[#allocation30_spill] sm:$0xff] %v4080_v35  ;;  %v5927_v38 = vld [vmem:[#allocation19_spill] sm:$0xff]  ;;  %v5928_v26 = vld [vmem:[#allocation22_spill] sm:$0xff] }
 0x139   :  { %v4075_v63 = vmul.f32 %v2778_v58, %v4052_v50  ;;  %2793 = vrsqrt.f32 %v748_v29  ;;  %v700_v48 = vmax.f32 %v650_v47, 0.0  ;;  %v699_v41 = vmax.f32 %v649_v12, 0.0  ;;  %v4089_v58 = vld [vmem:[%s5826_s1 + $0xd8] sm:$0xff]  ;;  %v5930_v47 = vld [vmem:[#allocation7_spill] sm:$0xff] }
 0x13a   :  { %5924 = vst [vmem:[#allocation28_spill] sm:$0xff] %v4072_v32  ;;  %v552_v6 = vmul.f32 0.020408163, %v428_v27  ;;  %v2782_v51 = vpop.eup %2781  ;;  %2795 = vrsqrt.f32 %v747_v54  ;;  %v551_v61 = vmul.f32 0.020408163, %v425_v13  ;;  %v888_v24 = vmul.f32 %v4057_v42, %v5927_v38  ;;  %5929 = vst [vmem:[#allocation19_spill] sm:$0xff] %v4089_v58 }
 0x13b   :  { %5925 = vst [vmem:[#allocation29_spill] sm:$0xff] %v4075_v63  ;;  %v889_v2 = vmul.f32 %v4072_v32, %v5928_v26  ;;  %v2784_v29 = vpop.eup %2783  ;;  %v4092_v12 = vmul.f32 0.020408163, %v5930_v47  ;;  %v750_v27 = vadd.f32 1e-05, %v700_v48  ;;  %v5931_v13 = vld [vmem:[#allocation8_spill] sm:$0xff] }
 0x13c   :  { %v749_v50 = vadd.f32 1e-05, %v699_v41  ;;  %v652_v54 = vsub.f32 %v552_v6, %v3889_v23  ;;  %v4096_v3 = vmul.f32 0.020408163, %v5931_v13  ;;  %v651_v38 = vsub.f32 %v551_v61, %v3895_v11  ;;  %1011 = vrot.lane.b32.xlu1 %v888_v24, %s2898_s12  ;;  %v434_v26 = vpop.xlane.xlu1 %433  ;;  %v431_v32 = vpop.xlane.xlu0 %430  ;;  %v5932_v42 = vld [vmem:[#allocation21_spill] sm:$0xff]  ;;  %v4109_v23 = vld [vmem:[%s5826_s1 + $0xe0] sm:$0xff] }
 0x13d   :  { %1013 = vrot.lane.b32.xlu0 %v889_v2, %s2898_s12  ;;  %v890_v25 = vmul.f32 %v4075_v63, %v5932_v42  ;;  %v4104_v47 = vmul.f32 %v2784_v29, %v4080_v35  ;;  %5934 = vst [vmem:[#allocation7_spill] sm:$0xff] %v4109_v23  ;;  %2797 = vrsqrt.f32 %v750_v27  ;;  %v554_v11 = vmul.f32 0.020408163, %v434_v26  ;;  %v4114_v24 = vld [vmem:[%s5826_s1 + $0xe8] sm:$0xff]  ;;  %v5936_v6 = vld [vmem:[#allocation24_spill] sm:$0xff] }
 0x13e   :  { %v702_v48 = vmax.f32 %v652_v54, 0.0  ;;  %v553_v41 = vmul.f32 0.020408163, %v431_v32  ;;  %5935 = vst [vmem:[#allocation8_spill] sm:$0xff] %v4114_v24  ;;  %v2786_v2 = vpop.eup %2785  ;;  %2799 = vrsqrt.f32 %v749_v50  ;;  %v701_v42 = vmax.f32 %v651_v38, 0.0 }
 0x13f   :  { %5933 = vst [vmem:[#allocation22_spill] sm:$0xff] %v4104_v47  ;;  %v891_v61 = vmul.f32 %v4104_v47, %v5936_v6  ;;  %v4119_v29 = vmul.f32 %v2782_v51, %v4089_v58  ;;  %v2788_v13 = vpop.eup %2787  ;;  %v4123_v27 = vmul.f32 %v4092_v12, %v4092_v12  ;;  %v654_v54 = vsub.f32 %v554_v11, %v3943_v1 }
 0x140   :  { %v752_v32 = vadd.f32 1e-05, %v702_v48  ;;  %v653_v26 = vsub.f32 %v553_v41, %v3949_v36  ;;  %v4129_v50 = vmul.f32 %v4096_v3, %v4096_v3  ;;  %v751_v38 = vadd.f32 1e-05, %v701_v42  ;;  %1015 = vrot.lane.b32.xlu1 %v890_v25, %s2898_s12  ;;  %v440_v51 = vpop.xlane.xlu1 %439  ;;  %v437_v6 = vpop.xlane.xlu0 %436  ;;  %v4142_v41 = vld [vmem:[%s5826_s1 + $0xf0] sm:$0xff] }
 0x141   :  { %5937 = vst [vmem:[#allocation21_spill] sm:$0xff] %v4119_v29  ;;  %1017 = vrot.lane.b32.xlu0 %v891_v61, %s2898_s12  ;;  %v4134_v58 = vmul.f32 %v2788_v13, %v4109_v23  ;;  %v4137_v48 = vmul.f32 %v2786_v2, %v4114_v24  ;;  %v704_v1 = vmax.f32 %v654_v54, 0.0  ;;  %v556_v11 = vmul.f32 0.020408163, %v440_v51  ;;  %5940 = vst [vmem:[#allocation32_spill] sm:$0xff] %v4142_v41  ;;  %v5941_v61 = vld [vmem:[#allocation23_spill] sm:$0xff] }
 0x142   :  { %2801 = vrsqrt.f32 %v752_v32  ;;  %v703_v36 = vmax.f32 %v653_v26, 0.0  ;;  %v2790_v25 = vpop.eup %2789  ;;  %v555_v42 = vmul.f32 0.020408163, %v437_v6  ;;  %v892_v35 = vmul.f32 %v4119_v29, %v5941_v61  ;;  %v5942_v13 = vld [vmem:[#allocation26_spill] sm:$0xff]  ;;  %v4151_v2 = vld [vmem:[%s5826_s1 + $0xf8] sm:$0xff] }
 0x143   :  { %5938 = vst [vmem:[#allocation24_spill] sm:$0xff] %v4134_v58  ;;  %5939 = vst [vmem:[#allocation31_spill] sm:$0xff] %v4137_v48  ;;  %2803 = vrsqrt.f32 %v751_v38  ;;  %v893_v63 = vmul.f32 %v4134_v58, %v5942_v13  ;;  %v2792_v32 = vpop.eup %2791  ;;  %v5944_v54 = vld [vmem:[#allocation9_spill] sm:$0xff]  ;;  %v754_v51 = vadd.f32 1e-05, %v704_v1  ;;  %v656_v38 = vsub.f32 %v556_v11, %v3999_v21  ;;  %v5945_v6 = vld [vmem:[#allocation10_spill] sm:$0xff] }
 0x144   :  { %5943 = vst [vmem:[#allocation23_spill] sm:$0xff] %v4151_v2  ;;  %v4154_v26 = vmul.f32 0.020408163, %v5944_v54  ;;  %v753_v24 = vadd.f32 1e-05, %v703_v36  ;;  %v655_v61 = vsub.f32 %v555_v42, %v4005_v19  ;;  %1019 = vrot.lane.b32.xlu1 %v892_v35, %s2898_s12  ;;  %v446_v13 = vpop.xlane.xlu1 %445  ;;  %v443_v58 = vpop.xlane.xlu0 %442  ;;  %v5946_v29 = vld [vmem:[#allocation25_spill] sm:$0xff]  ;;  %v4166_v54 = vmul.f32 %v2792_v32, %v4142_v41 }
 0x145   :  { %v4158_v23 = vmul.f32 0.020408163, %v5945_v6  ;;  %1021 = vrot.lane.b32.xlu0 %v893_v63, %s2898_s12  ;;  %v894_v47 = vmul.f32 %v4137_v48, %v5946_v29  ;;  %v4171_v21 = vld [vmem:[%s5826_s1 + $0x100] sm:$0xff]  ;;  %2805 = vrsqrt.f32 %v754_v51  ;;  %v706_v1 = vmax.f32 %v656_v38, 0.0  ;;  %v4176_v63 = vld [vmem:[%s5826_s1 + $0x108] sm:$0xff] }
 0x146   :  { %5947 = vst [vmem:[#allocation26_spill] sm:$0xff] %v4171_v21  ;;  %v558_v19 = vmul.f32 0.020408163, %v446_v13  ;;  %v557_v36 = vmul.f32 0.020408163, %v443_v58  ;;  %v2794_v35 = vpop.eup %2793  ;;  %2807 = vrsqrt.f32 %v753_v24  ;;  %v705_v29 = vmax.f32 %v655_v61, 0.0 }
 0x147   :  { %v895_v11 = vmul.f32 %v4166_v54, %v3748_v53  ;;  %v4181_v42 = vmul.f32 %v2790_v25, %v4151_v2  ;;  %v2796_v32 = vpop.eup %2795  ;;  %v612_v51 = vmul.f32 %v4154_v26, %v4154_v26  ;;  %v756_v38 = vadd.f32 1e-05, %v706_v1 }
 0x148   :  { %v658_v58 = vsub.f32 %v558_v19, %v4061_v34  ;;  %v657_v6 = vsub.f32 %v557_v36, %v4067_v18  ;;  %v611_v13 = vmul.f32 %v4158_v23, %v4158_v23  ;;  %v755_v24 = vadd.f32 1e-05, %v705_v29  ;;  %1023 = vrot.lane.b32.xlu1 %v894_v47, %s2898_s12  ;;  %v452_v53 = vpop.xlane.xlu1 %451  ;;  %v449_v25 = vpop.xlane.xlu0 %448  ;;  %v4200_v19 = vld [vmem:[%s5826_s1 + $0x110] sm:$0xff] }
 0x149   :  { %1025 = vrot.lane.b32.xlu0 %v895_v11, %s2898_s12  ;;  %v4192_v61 = vmul.f32 %v2796_v32, %v4171_v21  ;;  %v4195_v2 = vmul.f32 %v2794_v35, %v4176_v63  ;;  %2809 = vrsqrt.f32 %v756_v38  ;;  %v560_v18 = vmul.f32 0.020408163, %v452_v53  ;;  %5948 = vst [vmem:[#allocation9_spill] sm:$0xff] %v4200_v19  ;;  %v4209_v35 = vld [vmem:[%s5826_s1 + $0x118] sm:$0xff]  ;;  %v5949_v38 = vld [vmem:[#allocation11_spill] sm:$0xff] }
 0x14a   :  { %v708_v34 = vmax.f32 %v658_v58, 0.0  ;;  %v707_v1 = vmax.f32 %v657_v6, 0.0  ;;  %v2798_v47 = vpop.eup %2797  ;;  %2811 = vrsqrt.f32 %v755_v24  ;;  %v559_v36 = vmul.f32 0.020408163, %v449_v25  ;;  %v5950_v25 = vld [vmem:[#allocation12_spill] sm:$0xff] }
 0x14b   :  { %v896_v29 = vmul.f32 %v4181_v42, %v3722_v59  ;;  %v897_v11 = vmul.f32 %v4192_v61, %v3771_v16  ;;  %v2800_v32 = vpop.eup %2799  ;;  %v4212_v58 = vmul.f32 0.020408163, %v5949_v38  ;;  %v660_v24 = vsub.f32 %v560_v18, %v4123_v27  ;;  %v4229_v27 = vld [vmem:[%s5826_s1 + $0x120] sm:$0xff]  ;;  %v4234_v18 = vld [vmem:[%s5826_s1 + $0x128] sm:$0xff] }
 0x14c   :  { %v758_v6 = vadd.f32 1e-05, %v708_v34  ;;  %v757_v53 = vadd.f32 1e-05, %v707_v1  ;;  %v4216_v41 = vmul.f32 0.020408163, %v5950_v25  ;;  %v659_v59 = vsub.f32 %v559_v36, %v4129_v50  ;;  %v458_v16 = vpop.xlane.xlu1 %457  ;;  %v455_v48 = vpop.xlane.xlu0 %454 }
 0x14d   :  { %1027 = vrot.lane.b32.xlu1 %v896_v29, %s2898_s12  ;;  %1029 = vrot.lane.b32.xlu0 %v897_v11, %s2898_s12  ;;  %v898_v21 = vmul.f32 %v4195_v2, %v3763_v57  ;;  %v4224_v38 = vmul.f32 %v2800_v32, %v4200_v19  ;;  %v710_v34 = vmax.f32 %v660_v24, 0.0  ;;  %v562_v50 = vmul.f32 0.020408163, %v458_v16 }
 0x14e   :  { %2813 = vrsqrt.f32 %v758_v6  ;;  %v561_v1 = vmul.f32 0.020408163, %v455_v48  ;;  %v709_v57 = vmax.f32 %v659_v59, 0.0  ;;  %v4239_v11 = vmul.f32 %v2798_v47, %v4209_v35 }
 0x14f   :  { %v2802_v36 = vpop.eup %2801  ;;  %2815 = vrsqrt.f32 %v757_v53  ;;  %v899_v29 = vmul.f32 %v4224_v38, %v3818_v8  ;;  %v614_v6 = vmul.f32 %v4212_v58, %v4212_v58  ;;  %v760_v24 = vadd.f32 1e-05, %v710_v34 }
 0x150   :  { %v2804_v32 = vpop.eup %2803  ;;  %v662_v48 = vsub.f32 %v562_v50, %v612_v51  ;;  %v661_v25 = vsub.f32 %v561_v1, %v611_v13  ;;  %v613_v16 = vmul.f32 %v4216_v41, %v4216_v41  ;;  %v759_v19 = vadd.f32 1e-05, %v709_v57  ;;  %v464_v53 = vpop.xlane.xlu1 %463  ;;  %v4256_v50 = vld [vmem:[%s5826_s1 + $0x130] sm:$0xff] }
 0x151   :  { %1031 = vrot.lane.b32.xlu1 %v898_v21, %s2898_s12  ;;  %1033 = vrot.lane.b32.xlu0 %v899_v29, %s2898_s12  ;;  %v461_v8 = vpop.xlane.xlu0 %460  ;;  %v4248_v47 = vmul.f32 %v2804_v32, %v4229_v27  ;;  %v4251_v59 = vmul.f32 %v2802_v36, %v4234_v18  ;;  %2817 = vrsqrt.f32 %v760_v24  ;;  %v564_v13 = vmul.f32 0.020408163, %v464_v53 }
 0x152   :  { %v712_v34 = vmax.f32 %v662_v48, 0.0  ;;  %v711_v51 = vmax.f32 %v661_v25, 0.0  ;;  %v2806_v21 = vpop.eup %2805  ;;  %2819 = vrsqrt.f32 %v759_v19  ;;  %v563_v1 = vmul.f32 0.020408163, %v461_v8  ;;  %v4265_v25 = vld [vmem:[%s5826_s1 + $0x138] sm:$0xff] }
 0x153   :  { %v900_v57 = vmul.f32 %v4239_v11, %v3814_v14  ;;  %v901_v29 = vmul.f32 %v4248_v47, %v3868_v45  ;;  %v2808_v36 = vpop.eup %2807  ;;  %v664_v48 = vsub.f32 %v564_v13, %v614_v6  ;;  %v902_v45 = vmul.f32 %v4251_v59, %v3864_v62  ;;  %v4277_v6 = vld [vmem:[%s5826_s1 + $0x140] sm:$0xff]  ;;  %v4287_v62 = vld [vmem:[%s5826_s1 + $0x148] sm:$0xff] }
 0x154   :  { %v762_v32 = vadd.f32 1e-05, %v712_v34  ;;  %v761_v24 = vadd.f32 1e-05, %v711_v51  ;;  %v663_v53 = vsub.f32 %v563_v1, %v613_v16  ;;  %v4270_v19 = vmul.f32 %v2808_v36, %v4256_v50 }
 0x155   :  { %1035 = vrot.lane.b32.xlu1 %v900_v57, %s2898_s12  ;;  %1037 = vrot.lane.b32.xlu0 %v901_v29, %s2898_s12  ;;  %v714_v14 = vmax.f32 %v664_v48, 0.0  ;;  %v4282_v51 = vmul.f32 %v2806_v21, %v4265_v25 }
 0x156   :  { %2821 = vrsqrt.f32 %v762_v32  ;;  %v2810_v8 = vpop.eup %2809  ;;  %v713_v16 = vmax.f32 %v663_v53, 0.0  ;;  %v903_v34 = vmul.f32 %v4270_v19, %v3918_v40  ;;  %v4297_v40 = vld [vmem:[%s5826_s1 + $0x150] sm:$0xff]  ;;  %v4309_v53 = vld [vmem:[%s5826_s1 + $0x158] sm:$0xff] }
 0x157   :  { %2823 = vrsqrt.f32 %v761_v24  ;;  %v2812_v13 = vpop.eup %2811  ;;  %v764_v1 = vadd.f32 1e-05, %v714_v14  ;;  %v904_v36 = vmul.f32 %v4282_v51, %v3914_v28  ;;  %v4304_v24 = vmul.f32 %v2810_v8, %v4287_v62  ;;  %v4319_v28 = vld [vmem:[%s5826_s1 + $0x160] sm:$0xff] }
 0x158   :  { %v763_v57 = vadd.f32 1e-05, %v713_v16  ;;  %v4292_v29 = vmul.f32 %v2812_v13, %v4277_v6  ;;  %v4331_v13 = vld [vmem:[%s5826_s1 + $0x168] sm:$0xff] }
 0x159   :  { %1039 = vrot.lane.b32.xlu1 %v902_v45, %s2898_s12  ;;  %1041 = vrot.lane.b32.xlu0 %v903_v34, %s2898_s12  ;;  %2825 = vrsqrt.f32 %v764_v1  ;;  %v906_v45 = vmul.f32 %v4304_v24, %v3970_v49  ;;  %v4341_v49 = vld [vmem:[%s5826_s1 + $0x170] sm:$0xff] }
 0x15a   :  { %2827 = vrsqrt.f32 %v763_v57  ;;  %v905_v32 = vmul.f32 %v4292_v29, %v3974_v30 }
 0x15b   :  { %v2814_v21 = vpop.eup %2813 }
 0x15c   :  { %v2816_v48 = vpop.eup %2815  ;;  %v4326_v16 = vmul.f32 %v2814_v21, %v4309_v53 }
 0x15d   :  { %1043 = vrot.lane.b32.xlu1 %v904_v36, %s2898_s12  ;;  %1045 = vrot.lane.b32.xlu0 %v905_v32, %s2898_s12  ;;  %v4314_v14 = vmul.f32 %v2816_v48, %v4297_v40  ;;  %v4353_v48 = vld [vmem:[%s5826_s1 + $0x178] sm:$0xff] }
 0x15e   :  { %v2818_v30 = vpop.eup %2817  ;;  %v908_v57 = vmul.f32 %v4326_v16, %v4030_v5  ;;  %v4363_v5 = vld [vmem:[%s5826_s1 + $0x180] sm:$0xff] }
 0x15f   :  { %v907_v8 = vmul.f32 %v4314_v14, %v4034_v39  ;;  %v2820_v34 = vpop.eup %2819  ;;  %v4348_v36 = vmul.f32 %v2818_v30, %v4331_v13 }
 0x160   :  { %v4336_v1 = vmul.f32 %v2820_v34, %v4319_v28 }
 0x161   :  { %1047 = vrot.lane.b32.xlu1 %v906_v45, %s2898_s12  ;;  %1049 = vrot.lane.b32.xlu0 %v907_v8, %s2898_s12  ;;  %v910_v30 = vmul.f32 %v4348_v36, %v4092_v12 }
 0x162   :  { %v909_v21 = vmul.f32 %v4336_v1, %v4096_v3 }
 0x163   :  { %v2822_v39 = vpop.eup %2821 }
 0x164   :  { %v2824_v32 = vpop.eup %2823  ;;  %v4370_v34 = vmul.f32 %v2822_v39, %v4353_v48 }
 0x165   :  { %1051 = vrot.lane.b32.xlu1 %v908_v57, %s2898_s12  ;;  %1053 = vrot.lane.b32.xlu0 %v909_v21, %s2898_s12  ;;  %v4358_v45 = vmul.f32 %v2824_v32, %v4341_v49  ;;  %v4375_v21 = vld [vmem:[%s5826_s1 + $0x188] sm:$0xff] }
 0x166   :  { %v2826_v3 = vpop.eup %2825  ;;  %v912_v12 = vmul.f32 %v4370_v34, %v4154_v26  ;;  %v5951_v26 = vld [vmem:[#allocation27_spill] sm:$0xff] }
 0x167   :  { %v911_v8 = vmul.f32 %v4358_v45, %v4158_v23  ;;  %v2828_v57 = vpop.eup %2827  ;;  %v4387_v39 = vmul.f32 %v2826_v3, %v4375_v21 }
 0x168   :  { %v4380_v32 = vmul.f32 %v2828_v57, %v4363_v5  ;;  %v5960_v57 = vld [vmem:[#allocation28_spill] sm:$0xff] }
 0x169   :  { %1055 = vrot.lane.b32.xlu1 %v910_v30, %s2898_s12  ;;  %1057 = vrot.lane.b32.xlu0 %v911_v8, %s2898_s12  ;;  %v914_v30 = vmul.f32 %v4387_v39, %v4212_v58 }
 0x16a   :  { %v913_v23 = vmul.f32 %v4380_v32, %v4216_v41 }
 0x16d   :  { %1059 = vrot.lane.b32.xlu1 %v912_v12, %s2898_s12  ;;  %1061 = vrot.lane.b32.xlu0 %v913_v23, %s2898_s12 }
 0x171   :  { %1063 = vrot.lane.b32.xlu1 %v914_v30, %s2898_s12  ;;  %1167 = vperm.xlu0 %2644, %v3750_v0  }
 0x175   :  { %1172 = vperm.xlu1 %2645, %v3741_v10   ;;  %1182 = vperm.xlu0 %2644, %v3786_v46  }
 0x179   :  { %1177 = vperm.xlu1 %2645, %v5951_v26   ;;  %1192 = vperm.xlu0 %2644, %v3801_v15  }
 0x17d   :  { %1187 = vperm.xlu1 %2645, %v3799_v56   ;;  %1202 = vperm.xlu0 %2644, %v3835_v20  }
 0x17e   :  { %v4401_v41 = vpop.permute.xlu1 %967  ;;  %v4405_v58 = vpop.permute.xlu0 %965 }
 0x181   :  { %1197 = vperm.xlu1 %2645, %v3825_v7   ;;  %1212 = vperm.xlu0 %2644, %v3851_v43  }
 0x182   :  { %v4407_v0 = vpop.permute.xlu1 %969 }
 0x185   :  { %1207 = vperm.xlu1 %2645, %v3849_v4   ;;  %1222 = vperm.xlu0 %2644, %v3885_v22  }
 0x186   :  { %v4411_v10 = vpop.permute.xlu1 %971  ;;  %v4413_v46 = vpop.permute.xlu0 %973 }
 0x189   :  { %1217 = vperm.xlu1 %2645, %v3875_v33   ;;  %1232 = vperm.xlu0 %2644, %v3901_v9  }
 0x18a   :  { %v4417_v56 = vpop.permute.xlu1 %975  ;;  %v4419_v15 = vpop.permute.xlu0 %977 }
 0x18d   :  { %1227 = vperm.xlu1 %2645, %v3899_v44   ;;  %1242 = vperm.xlu0 %2644, %v3939_v55   ;;  %v5954_v44 = vld [vmem:[#allocation3_spill] sm:$0xff]  ;;  %v5956_v55 = vld [vmem:[#allocation17_spill] sm:$0xff] }
 0x18e   :  { %v4423_v7 = vpop.permute.xlu1 %979  ;;  %v4425_v20 = vpop.permute.xlu0 %981 }
 0x191   :  { %1237 = vperm.xlu1 %2645, %v3925_v37   ;;  %1252 = vperm.xlu0 %2644, %v3957_v31   ;;  %v5957_v31 = vld [vmem:[#allocation20_spill] sm:$0xff] }
 0x192   :  { %v4429_v4 = vpop.permute.xlu1 %983  ;;  %v4431_v43 = vpop.permute.xlu0 %985 }
 0x193   :  { %5952 = vst [vmem:[#allocation10_spill] sm:$0xff] %v4429_v4  ;;  %v5971_v4 = vmov 1  }
 0x195   :  { %1247 = vperm.xlu1 %2645, %v3954_v52   ;;  %1262 = vperm.xlu0 %2644, %v3995_v60   ;;  %v5959_v60 = vld [vmem:[#allocation18_spill] sm:$0xff] }
 0x196   :  { %v4435_v33 = vpop.permute.xlu1 %987  ;;  %v4437_v22 = vpop.permute.xlu0 %989 }
 0x197   :  { %5953 = vst [vmem:[#allocation25_spill] sm:$0xff] %v4437_v22 }
 0x199   :  { %1257 = vperm.xlu1 %2645, %v3981_v17   ;;  %1272 = vperm.xlu0 %2644, %v5954_v44  }
 0x19a   :  { %v4441_v9 = vpop.permute.xlu1 %991  ;;  %v4443_v37 = vpop.permute.xlu0 %993 }
 0x19b   :  { %5955 = vst [vmem:[#allocation11_spill] sm:$0xff] %v4441_v9 }
 0x19d   :  { %1267 = vperm.xlu1 %2645, %v5956_v55   ;;  %1282 = vperm.xlu0 %2644, %v5957_v31  }
 0x19e   :  { %v4447_v3 = vpop.permute.xlu1 %995  ;;  %v4449_v52 = vpop.permute.xlu0 %997 }
 0x19f   :  { %5958 = vst [vmem:[#allocation12_spill] sm:$0xff] %v4447_v3 }
 0x1a1   :  { %1277 = vperm.xlu1 %2645, %v5959_v60   ;;  %1327 = vperm.xlu0 %2644, %v4192_v61  }
 0x1a2   :  { %v4453_v8 = vpop.permute.xlu1 %999  ;;  %v4455_v17 = vpop.permute.xlu0 %1001 }
 0x1a5   :  { %1287 = vperm.xlu1 %2645, %v5960_v57   ;;  %1342 = vperm.xlu0 %2644, %v4239_v11   ;;  %v5872_v11 = vmov 1  }
 0x1a6   :  { %v4459_v12 = vpop.permute.xlu1 %1003  ;;  %v4461_v23 = vpop.permute.xlu0 %1005 }
 0x1a9   :  { %1332 = vperm.xlu1 %2645, %v4195_v2   ;;  %1357 = vperm.xlu0 %2644, %v4270_v19  }
 0x1aa   :  { %v4465_v30 = vpop.permute.xlu1 %1007  ;;  %v4467_v26 = vpop.permute.xlu0 %1009 }
 0x1ad   :  { %1337 = vperm.xlu1 %2645, %v4224_v38   ;;  %1372 = vperm.xlu0 %2644, %v4304_v24   ;;  %v5964_v24 = vld [vmem:[#allocation22_spill] sm:$0xff] }
 0x1ae   :  { %v4471_v61 = vpop.permute.xlu1 %1011 }
 0x1af   :  { %v4473_v44 = vpop.permute.xlu0 %1013 }
 0x1b1   :  { %1387 = vperm.xlu0 %2644, %v4336_v1   ;;  %2646 = vset.pattern.permute.xlu1 %v5872_v11  ;;  %v5967_v1 = vld [vmem:[#allocation21_spill] sm:$0xff] }
 0x1b2   :  { %v4477_v2 = vpop.permute.xlu1 %1015 }
 0x1b3   :  { %5961 = vst [vmem:[#allocation27_spill] sm:$0xff] %v4477_v2  ;;  %v4479_v19 = vpop.permute.xlu0 %1017  ;;  %v5972_v2 = vmov 0  }
 0x1b4   :  { %5962 = vst [vmem:[#allocation3_spill] sm:$0xff] %v4479_v19  ;;  %v5970_v19 = vld [vmem:[#allocation9_spill] sm:$0xff] }
 0x1b5   :  { %1402 = vperm.xlu0 %2644, %v4370_v34  }
 0x1b6   :  { %v4482_v55 = vpop.permute.xlu1 %1019 }
 0x1b7   :  { %5963 = vst [vmem:[#allocation17_spill] sm:$0xff] %v4482_v55  ;;  %v4484_v38 = vpop.permute.xlu0 %1021  ;;  %v5969_v55 = vld [vmem:[#allocation26_spill] sm:$0xff] }
 0x1b9   :  { %1297 = vperm.xlu0 %2644, %v5964_v24  }
 0x1ba   :  { %v4487_v31 = vpop.permute.xlu1 %1023 }
 0x1bb   :  { %5965 = vst [vmem:[#allocation20_spill] sm:$0xff] %v4487_v31  ;;  %v4489_v60 = vpop.permute.xlu0 %1025 }
 0x1bc   :  { %5966 = vst [vmem:[#allocation18_spill] sm:$0xff] %v4489_v60 }
 0x1bd   :  { %1302 = vperm.xlu0 %2644, %v5967_v1  }
 0x1bf   :  { %v4492_v57 = vpop.permute.xlu1 %1027  ;;  %v1030_v11 = vpop.permute.xlu0 %1029 }
 0x1c0   :  { %5968 = vst [vmem:[#allocation28_spill] sm:$0xff] %v4492_v57  ;;  %v1147_v31 = vsub.f32 %v5969_v55, %v1030_v11 }
 0x1c1   :  { %1317 = vperm.xlu0 %2644, %v4166_v54  }
 0x1c3   :  { %v1032_v3 = vpop.permute.xlu1 %1031  ;;  %v1034_v9 = vpop.permute.xlu0 %1033 }
 0x1c4   :  { %v1148_v34 = vsub.f32 %v4176_v63, %v1032_v3  ;;  %v1149_v60 = vsub.f32 %v5970_v19, %v1034_v9 }
 0x1c5   :  { %1322 = vperm.xlu0 %2644, %v4181_v42  }
 0x1c6   :  { %1632 = vperm.xlu1 %2646, %v1148_v34  }
 0x1c7   :  { %v1036_v22 = vpop.permute.xlu1 %1035  ;;  %v1038_v24 = vpop.permute.xlu0 %1037 }
 0x1c8   :  { %v1150_v54 = vsub.f32 %v4209_v35, %v1036_v22  ;;  %v1151_v55 = vsub.f32 %v4229_v27, %v1038_v24 }
 0x1c9   :  { %2661 = vset.pattern.permute.xlu0 %v5971_v4 }
 0x1ca   :  { %1627 = vperm.xlu0 %2661, %v1147_v31   ;;  %1637 = vperm.xlu1 %2646, %v1149_v60  }
 0x1cb   :  { %v1040_v1 = vpop.permute.xlu1 %1039  ;;  %v1042_v57 = vpop.permute.xlu0 %1041 }
 0x1cc   :  { %v1153_v3 = vsub.f32 %v4256_v50, %v1042_v57 }
 0x1ce   :  { %1642 = vperm.xlu0 %2661, %v1150_v54   ;;  %2647 = vset.pattern.permute.xlu1 %v5972_v2 }
 0x1cf   :  { %v1044_v63 = vpop.permute.xlu1 %1043  ;;  %1347 = vperm.xlu1 %2647, %v4248_v47   ;;  %v1046_v42 = vpop.permute.xlu0 %1045  ;;  %v1152_v47 = vsub.f32 %v4234_v18, %v1040_v1 }
 0x1d2   :  { %1657 = vperm.xlu0 %2661, %v1153_v3  }
 0x1d3   :  { %v1048_v11 = vpop.permute.xlu1 %1047  ;;  %1352 = vperm.xlu1 %2647, %v4251_v59   ;;  %v1050_v9 = vpop.permute.xlu0 %1049  ;;  %v5973_v59 = vld [vmem:[#allocation2_spill] sm:$0xff] }
 0x1d4   :  { %v1156_v19 = vsub.f32 %v4287_v62, %v1048_v11  ;;  %v1131_v62 = vsub.f32 %v5973_v59, %v4449_v52 }
 0x1d6   :  { %1672 = vperm.xlu0 %2661, %v1156_v19  }
 0x1d7   :  { %v1052_v35 = vpop.permute.xlu1 %1051  ;;  %2648 = vset.pattern.permute.xlu1 %v5971_v4  ;;  %v1054_v22 = vpop.permute.xlu0 %1053 }
 0x1d8   :  { %v1159_v31 = vsub.f32 %v4319_v28, %v1054_v22  ;;  %1647 = vperm.xlu1 %2648, %v1151_v55   ;;  %v5974_v28 = vld [vmem:[#allocation13_spill] sm:$0xff]  ;;  %v1157_v55 = vsub.f32 %v4297_v40, %v1050_v9 }
 0x1d9   :  { %v1132_v57 = vsub.f32 %v5974_v28, %v4453_v8  ;;  %v1155_v8 = vsub.f32 %v4277_v6, %v1046_v42  ;;  %v2831_v6 = vld [vmem:[%s5826_s1 + $0x20] sm:$0xff]  ;;  %v2834_v40 = vld [vmem:[%s5826_s1 + $0x38] sm:$0xff] }
 0x1da   :  { %1687 = vperm.xlu0 %2661, %v1159_v31   ;;  %v1122_v9 = vsub.f32 %v2834_v40, %v4423_v7  ;;  %v2835_v7 = vld [vmem:[%s5826_s1 + $0x50] sm:$0xff] }
 0x1db   :  { %v1056_v50 = vpop.permute.xlu1 %1055  ;;  %v4515_v27 = vpop.permute.xlu0 %1057 }
 0x1dc   :  { %v1160_v60 = vsub.f32 %v4331_v13, %v1056_v50  ;;  %1652 = vperm.xlu1 %2648, %v1152_v47   ;;  %v1154_v13 = vsub.f32 %v4265_v25, %v1044_v63  ;;  %v2830_v25 = vld [vmem:[%s5826_s1 + $0x18] sm:$0xff] }
 0x1de   :  { %1692 = vperm.xlu0 %2661, %v1160_v60  }
 0x1df   :  { %v1060_v18 = vpop.permute.xlu1 %1059  ;;  %v4522_v24 = vpop.permute.xlu0 %1061 }
 0x1e0   :  { %2649 = vset.pattern.permute.xlu1 %v5972_v2  ;;  %v1162_v34 = vsub.f32 %v4353_v48, %v1060_v18  ;;  %v1118_v48 = vsub.f32 %v2830_v25, %v4411_v10  ;;  %v2832_v10 = vld [vmem:[%s5826_s1 + $0x28] sm:$0xff] }
 0x1e1   :  { %1362 = vperm.xlu1 %2649, %v4282_v51   ;;  %v2829_v51 = vld [vmem:[%s5826_s1 + $0x10] sm:$0xff]  ;;  %v1120_v11 = vsub.f32 %v2832_v10, %v4417_v56  ;;  %v1158_v56 = vsub.f32 %v4309_v53, %v1052_v35  ;;  %v1125_v35 = vsub.f32 %v2835_v7, %v4431_v43  ;;  %v5977_v43 = vld [vmem:[#allocation7_spill] sm:$0xff] }
 0x1e2   :  { %1547 = vperm.xlu0 %2661, %v1131_v62   ;;  %v1117_v52 = vsub.f32 %v2829_v51, %v4407_v0  ;;  %v1119_v0 = vsub.f32 %v2831_v6, %v4413_v46  ;;  %v2833_v46 = vld [vmem:[%s5826_s1 + $0x30] sm:$0xff]  ;;  %v1143_v18 = vsub.f32 %v5977_v43, %v4484_v38 }
 0x1e3   :  { %v5980_v7 = vld [vmem:[#allocation4_spill] sm:$0xff] }
 0x1e5   :  { %1367 = vperm.xlu1 %2649, %v4292_v29   ;;  %v4530_v29 = vpop.permute.xlu1 %1063 }
 0x1e6   :  { %1552 = vperm.xlu0 %2661, %v1132_v57   ;;  %v1164_v25 = vsub.f32 %v4375_v21, %v4530_v29 }
 0x1e9   :  { %2650 = vset.pattern.permute.xlu1 %v5971_v4 }
 0x1ea   :  { %1662 = vperm.xlu1 %2650, %v1154_v13   ;;  %1702 = vperm.xlu0 %2661, %v1162_v34  }
 0x1ec   :  { %v4532_v1 = vpop.permute.xlu0 %1167 }
 0x1ee   :  { %1667 = vperm.xlu1 %2650, %v1155_v8   ;;  %1477 = vperm.xlu0 %2661, %v1117_v52  }
 0x1f0   :  { %v4538_v54 = vpop.permute.xlu1 %1172  ;;  %v4540_v63 = vpop.permute.xlu0 %1182 }
 0x1f2   :  { %2651 = vset.pattern.permute.xlu1 %v5972_v2  ;;  %1482 = vperm.xlu0 %2661, %v1118_v48  }
 0x1f3   :  { %1377 = vperm.xlu1 %2651, %v4314_v14  }
 0x1f4   :  { %v4548_v42 = vpop.permute.xlu1 %1177  ;;  %v4550_v3 = vpop.permute.xlu0 %1192 }
 0x1f6   :  { %1487 = vperm.xlu0 %2661, %v1119_v0  }
 0x1f7   :  { %1382 = vperm.xlu1 %2651, %v4326_v16   ;;  %v1121_v16 = vsub.f32 %v2833_v46, %v4419_v15  ;;  %v5975_v15 = vld [vmem:[#allocation5_spill] sm:$0xff]  ;;  %v5978_v46 = vld [vmem:[#allocation15_spill] sm:$0xff] }
 0x1f8   :  { %v4557_v14 = vpop.permute.xlu1 %1187  ;;  %v4559_v19 = vpop.permute.xlu0 %1202  ;;  %v1139_v60 = vsub.f32 %v5975_v15, %v4473_v44  ;;  %v2836_v44 = vld [vmem:[%s5826_s1 + $0x58] sm:$0xff] }
 0x1fa   :  { %1492 = vperm.xlu0 %2661, %v1120_v11  }
 0x1fb   :  { %2652 = vset.pattern.permute.xlu1 %v5971_v4 }
 0x1fc   :  { %v4567_v22 = vpop.permute.xlu1 %1197  ;;  %1677 = vperm.xlu1 %2652, %v1157_v55   ;;  %v4569_v31 = vpop.permute.xlu0 %1212 }
 0x1fe   :  { %1497 = vperm.xlu0 %2661, %v1121_v16   ;;  %v1135_v16 = vsub.f32 %v5978_v46, %v4461_v23  ;;  %v5981_v23 = vld [vmem:[#allocation16_spill] sm:$0xff]  ;;  %v5986_v46 = vld [vmem:[#allocation10_spill] sm:$0xff] }
 0x200   :  { %1682 = vperm.xlu1 %2652, %v1158_v56   ;;  %v4576_v47 = vpop.permute.xlu0 %1222  ;;  %v4578_v50 = vpop.permute.xlu1 %1207 }
 0x202   :  { %1502 = vperm.xlu0 %2661, %v1122_v9  }
 0x204   :  { %2653 = vset.pattern.permute.xlu1 %v5972_v2  ;;  %v4583_v59 = vpop.permute.xlu0 %1232  ;;  %v4586_v53 = vpop.permute.xlu1 %1217 }
 0x205   :  { %1392 = vperm.xlu1 %2653, %v4348_v36   ;;  %v1126_v36 = vsub.f32 %v2836_v44, %v4435_v33  ;;  %v2837_v33 = vld [vmem:[%s5826_s1 + $0x70] sm:$0xff]  ;;  %v1138_v44 = vsub.f32 %v5981_v23, %v4471_v61  ;;  %v2843_v61 = vld [vmem:[%s5826_s1 + $0x40] sm:$0xff] }
 0x206   :  { %1587 = vperm.xlu0 %2661, %v1139_v60   ;;  %v1129_v34 = vsub.f32 %v2837_v33, %v4443_v37  ;;  %v5983_v33 = vld [vmem:[#allocation29_spill] sm:$0xff]  ;;  %v2845_v23 = vld [vmem:[%s5825_s0 + $0x120] sm:$0xff] }
 0x208   :  { %v4592_v62 = vpop.permute.xlu0 %1242  ;;  %v4601_v57 = vpop.permute.xlu1 %1227 }
 0x209   :  { %5976 = vst [vmem:[#allocation22_spill] sm:$0xff] %v4592_v62  ;;  %1407 = vperm.xlu1 %2653, %v4380_v32  }
 0x20a   :  { %1517 = vperm.xlu0 %2661, %v1125_v35  }
 0x20c   :  { %v4599_v28 = vpop.permute.xlu0 %1252  ;;  %v4609_v32 = vpop.permute.xlu1 %1237 }
 0x20d   :  { %1397 = vperm.xlu1 %2653, %v4358_v45   ;;  %v1163_v45 = vsub.f32 %v4363_v5, %v4522_v24  ;;  %v1161_v5 = vsub.f32 %v4341_v49, %v4515_v27  ;;  %v2840_v27 = vld [vmem:[%s5826_s1 + $0x90] sm:$0xff] }
 0x20e   :  { %1522 = vperm.xlu0 %2661, %v1126_v36   ;;  %v1133_v21 = vsub.f32 %v2840_v27, %v4455_v17  ;;  %v5979_v17 = vld [vmem:[#allocation14_spill] sm:$0xff] }
 0x20f   :  { %v1136_v9 = vsub.f32 %v5979_v17, %v4465_v30 }
 0x210   :  { %v4606_v13 = vpop.permute.xlu0 %1262  ;;  %v4626_v8 = vpop.permute.xlu1 %1247 }
 0x211   :  { %1412 = vperm.xlu1 %2653, %v4387_v39   ;;  %v2838_v39 = vld [vmem:[%s5826_s1] sm:$0xff] }
 0x212   :  { %1607 = vperm.xlu0 %2661, %v1143_v18   ;;  %v1115_v38 = vsub.f32 %v2838_v39, %v4405_v58  ;;  %v2839_v58 = vld [vmem:[%s5826_s1 + $0x8] sm:$0xff] }
 0x213   :  { %v1116_v6 = vsub.f32 %v2839_v58, %v4401_v41  ;;  %v2841_v41 = vld [vmem:[%s5826_s1 + $0x98] sm:$0xff]  ;;  %v5984_v58 = vld [vmem:[#allocation27_spill] sm:$0xff] }
 0x214   :  { %v4617_v51 = vpop.permute.xlu0 %1272  ;;  %v4632_v24 = vpop.permute.xlu1 %1257  ;;  %v1134_v11 = vsub.f32 %v2841_v41, %v4459_v12  ;;  %v1137_v12 = vsub.f32 %v5980_v7, %v4467_v26  ;;  %v2842_v26 = vld [vmem:[%s5825_s0 + $0x110] sm:$0xff]  ;;  %v5988_v7 = vld [vmem:[#allocation30_spill] sm:$0xff] }
 0x215   :  { %2654 = vset.pattern.permute.xlu1 %v5971_v4 }
 0x216   :  { %1537 = vperm.xlu0 %2661, %v1129_v34   ;;  %1707 = vperm.xlu1 %2654, %v1163_v45  }
 0x218   :  { %v4624_v52 = vpop.permute.xlu0 %1282  ;;  %v4644_v49 = vpop.permute.xlu1 %1267 }
 0x21a   :  { %1467 = vperm.xlu1 %2654, %v1115_v38   ;;  %v1123_v38 = vsub.f32 %v2843_v61, %v4425_v20  ;;  %v2847_v61 = vld [vmem:[%s5825_s0 + $0x128] sm:$0xff] }
 0x21c   :  { %v4630_v37 = vpop.permute.xlu0 %1327  ;;  %v4652_v10 = vpop.permute.xlu1 %1277 }
 0x21e   :  { %1697 = vperm.xlu1 %2654, %v1161_v5  }
 0x220   :  { %v4636_v48 = vpop.permute.xlu0 %1342  ;;  %v4662_v40 = vpop.permute.xlu1 %1287 }
 0x222   :  { %1712 = vperm.xlu1 %2654, %v1164_v25  }
 0x224   :  { %v4642_v0 = vpop.permute.xlu0 %1357  ;;  %v1333_v60 = vpop.permute.xlu1 %1332 }
 0x226   :  { %1472 = vperm.xlu1 %2654, %v1116_v6   ;;  %v5985_v6 = vld [vmem:[#allocation6_spill] sm:$0xff] }
 0x227   :  { %v1140_v27 = vsub.f32 %v5985_v6, %v5984_v58 }
 0x228   :  { %v4650_v29 = vpop.permute.xlu0 %1372  ;;  %v1338_v43 = vpop.permute.xlu1 %1337 }
 0x229   :  { %v1449_v34 = vmul.f32 %v2842_v26, %v1338_v43 }
 0x22a   :  { %1557 = vperm.xlu1 %2654, %v1133_v21  }
 0x22c   :  { %v1388_v55 = vpop.permute.xlu0 %1387 }
 0x22e   :  { %1562 = vperm.xlu1 %2654, %v1134_v11   ;;  %v2844_v11 = vld [vmem:[%s5826_s1 + $0x48] sm:$0xff] }
 0x22f   :  { %v1124_v20 = vsub.f32 %v2844_v11, %v5986_v46  ;;  %v5991_v46 = vld [vmem:[#allocation19_spill] sm:$0xff] }
 0x230   :  { %v4660_v56 = vpop.permute.xlu0 %1402 }
 0x232   :  { %1567 = vperm.xlu1 %2654, %v1135_v16  }
 0x234   :  { %v4666_v15 = vpop.permute.xlu0 %1297 }
 0x236   :  { %1572 = vperm.xlu1 %2654, %v1136_v9   ;;  %v5987_v9 = vld [vmem:[#allocation3_spill] sm:$0xff] }
 0x238   :  { %v4670_v35 = vpop.permute.xlu0 %1302 }
 0x23a   :  { %1577 = vperm.xlu1 %2654, %v1137_v12   ;;  %v1141_v12 = vsub.f32 %v5988_v7, %v5987_v9 }
 0x23c   :  { %v4674_v36 = vpop.permute.xlu0 %1317 }
 0x23e   :  { %1582 = vperm.xlu1 %2654, %v1138_v44  }
 0x240   :  { %v4676_v18 = vpop.permute.xlu0 %1322 }
 0x241   :  { %5982 = vst [vmem:[#allocation21_spill] sm:$0xff] %v4676_v18  ;;  %v1633_v30 = vpop.permute.xlu1 %1632 }
 0x242   :  { %2655 = vset.pattern.permute.xlu1 %v5972_v2 }
 0x243   :  { %1292 = vperm.xlu1 %2655, %v5983_v33   ;;  %v2846_v33 = vld [vmem:[%s5825_s0 + $0x160] sm:$0xff] }
 0x244   :  { %v1459_v26 = vmul.f32 %v2846_v33, %v1388_v55  ;;  %v5990_v55 = vld [vmem:[#allocation17_spill] sm:$0xff] }
 0x245   :  { %v1638_v45 = vpop.permute.xlu1 %1637  ;;  %v4683_v39 = vpop.permute.xlu0 %1627 }
 0x246   :  { %v4689_v5 = vadd.f32 %v1638_v45, %v1449_v34 }
 0x247   :  { %2656 = vset.pattern.permute.xlu1 %v5971_v4 }
 0x248   :  { %1507 = vperm.xlu1 %2656, %v1123_v38  }
 0x249   :  { %v4692_v25 = vpop.permute.xlu0 %1642 }
 0x24a   :  { %v1348_v21 = vpop.permute.xlu1 %1347 }
 0x24b   :  { %v1451_v44 = vmul.f32 %v2845_v23, %v1348_v21  ;;  %v5989_v21 = vld [vmem:[#allocation24_spill] sm:$0xff]  ;;  %v2849_v23 = vld [vmem:[%s5825_s0 + $0x88] sm:$0xff] }
 0x24c   :  { %1592 = vperm.xlu1 %2656, %v1140_v27  }
 0x24d   :  { %v4696_v41 = vpop.permute.xlu0 %1657 }
 0x24e   :  { %v1353_v16 = vpop.permute.xlu1 %1352 }
 0x24f   :  { %v1452_v38 = vmul.f32 %v2847_v61, %v1353_v16  ;;  %v2848_v16 = vld [vmem:[%s5825_s0 + $0x108] sm:$0xff] }
 0x250   :  { %1512 = vperm.xlu1 %2656, %v1124_v20   ;;  %v1142_v20 = vsub.f32 %v5991_v46, %v5990_v55  ;;  %v5992_v61 = vld [vmem:[#allocation31_spill] sm:$0xff] }
 0x251   :  { %v4702_v17 = vpop.permute.xlu0 %1672 }
 0x253   :  { %v1648_v43 = vpop.permute.xlu1 %1647 }
 0x254   :  { %v4712_v34 = vadd.f32 %v1648_v43, %v1451_v44  ;;  %1597 = vperm.xlu1 %2656, %v1141_v12   ;;  %v1448_v12 = vmul.f32 %v2848_v16, %v1333_v60  ;;  %v1432_v44 = vmul.f32 %v2849_v23, %v4599_v28 }
 0x255   :  { %v1688_v45 = vpop.permute.xlu0 %1687 }
 0x256   :  { %v4717_v58 = vadd.f32 %v1688_v45, %v1459_v26  ;;  %v1748_v43 = vadd.f32 %v1633_v30, %v1448_v12 }
 0x257   :  { %v1653_v6 = vpop.permute.xlu1 %1652 }
 0x258   :  { %v4719_v27 = vadd.f32 %v1653_v6, %v1452_v38  ;;  %2657 = vset.pattern.permute.xlu1 %v5972_v2  ;;  %v2850_v38 = vld [vmem:[%s5825_s0 + $0x178] sm:$0xff]  ;;  %v1798_v6 = vmax.f32 %v1748_v43, 0.0 }
 0x259   :  { %1307 = vperm.xlu1 %2657, %v5989_v21   ;;  %v4723_v11 = vpop.permute.xlu0 %1692  ;;  %v1462_v60 = vmul.f32 %v2850_v38, %v4660_v56  ;;  %v2851_v21 = vld [vmem:[%s5825_s0 + $0x138] sm:$0xff] }
 0x25c   :  { %v1363_v9 = vpop.permute.xlu1 %1362 }
 0x25d   :  { %2658 = vset.pattern.permute.xlu1 %v5971_v4  ;;  %v4728_v7 = vpop.permute.xlu0 %1547  ;;  %v1454_v28 = vmul.f32 %v2851_v21, %v1363_v9  ;;  %v2853_v9 = vld [vmem:[%s5825_s0 + $0x140] sm:$0xff] }
 0x25e   :  { %1602 = vperm.xlu1 %2658, %v1142_v20   ;;  %v5993_v20 = vld [vmem:[#allocation25_spill] sm:$0xff] }
 0x260   :  { %v1368_v33 = vpop.permute.xlu1 %1367 }
 0x261   :  { %v1553_v26 = vpop.permute.xlu0 %1552 }
 0x262   :  { %v1732_v45 = vadd.f32 %v1553_v26, %v1432_v44  ;;  %2659 = vset.pattern.permute.xlu1 %v5972_v2  ;;  %v2852_v2 = vld [vmem:[%s5826_s1 + $0x60] sm:$0xff]  ;;  %v1455_v44 = vmul.f32 %v2853_v9, %v1368_v33  ;;  %v6000_v9 = vld [vmem:[#allocation28_spill] sm:$0xff] }
 0x263   :  { %1312 = vperm.xlu1 %2659, %v5992_v61   ;;  %v1127_v16 = vsub.f32 %v2852_v2, %v5993_v20  ;;  %v5996_v61 = vld [vmem:[#allocation8_spill] sm:$0xff] }
 0x264   :  { %v1782_v30 = vmax.f32 %v1732_v45, 0.0  ;;  %v5995_v45 = vld [vmem:[#allocation20_spill] sm:$0xff] }
 0x265   :  { %v1663_v55 = vpop.permute.xlu1 %1662  ;;  %v1703_v46 = vpop.permute.xlu0 %1702  ;;  %v1144_v38 = vsub.f32 %v5996_v61, %v5995_v45  ;;  %v2855_v45 = vld [vmem:[%s5825_s0 + $0x150] sm:$0xff] }
 0x266   :  { %v4750_v12 = vpack.i.bf16 %v1782_v30, %v1798_v6  ;;  %v4752_v23 = vadd.f32 %v1663_v55, %v1454_v28  ;;  %v4754_v56 = vadd.f32 %v1703_v46, %v1462_v60  ;;  %v5997_v60 = vld [vmem:[#allocation11_spill] sm:$0xff]  ;;  %v5998_v55 = vld [vmem:[#allocation18_spill] sm:$0xff]  ;;  %v5999_v46 = vld [vmem:[#allocation32_spill] sm:$0xff] }
 0x267   :  { %2660 = vset.pattern.permute.xlu1 %v5971_v4  ;;  %v2854_v4 = vld [vmem:[%s5826_s1 + $0x68] sm:$0xff]  ;;  %v1145_v2 = vsub.f32 %v5999_v46, %v5998_v55  ;;  %v6002_v55 = vld [vmem:[#allocation12_spill] sm:$0xff] }
 0x268   :  { %5994 = vst [vmem:[#allocation26_spill] sm:$0xff] %v4754_v56  ;;  %1527 = vperm.xlu1 %2660, %v1127_v16   ;;  %v1128_v28 = vsub.f32 %v2854_v4, %v5997_v60 }
 0x269   :  { %v1668_v43 = vpop.permute.xlu1 %1667  ;;  %v4760_v26 = vpop.permute.xlu0 %1477 }
 0x26a   :  { %v1755_v6 = vadd.f32 %v1668_v43, %v1455_v44  ;;  %v6001_v44 = vld [vmem:[#allocation23_spill] sm:$0xff] }
 0x26b   :  { %v1146_v43 = vsub.f32 %v6001_v44, %v6000_v9 }
 0x26c   :  { %1612 = vperm.xlu1 %2660, %v1144_v38  }
 0x26d   :  { %v4764_v21 = vpop.permute.xlu0 %1482 }
 0x26e   :  { %v1378_v30 = vpop.permute.xlu1 %1377 }
 0x26f   :  { %v1457_v61 = vmul.f32 %v2855_v45, %v1378_v30  ;;  %v1876_v30 = vld [vmem:[%s5827_s2 + $0x1e8] sm:$0xff] }
 0x270   :  { %1532 = vperm.xlu1 %2660, %v1128_v28   ;;  %v2856_v28 = vld [vmem:[%s5826_s1 + $0x78] sm:$0xff]  ;;  %v1872_v45 = vld [vmem:[%s5827_s2 + $0x1c8] sm:$0xff]  ;;  %2165 = vmatprep.subr.mxu0 %v1876_v30 }
 0x271   :  { %v4770_v33 = vpop.permute.xlu0 %1487  ;;  %v1130_v46 = vsub.f32 %v2856_v28, %v6002_v55  ;;  %v1867_v28 = vld [vmem:[%s5827_s2 + $0x1a0] sm:$0xff] }
 0x272   :  { %v1383_v20 = vpop.permute.xlu1 %1382  ;;  %v2858_v55 = vld [vmem:[%s5825_s0 + $0xc0] sm:$0xff] }
 0x274   :  { %1617 = vperm.xlu1 %2660, %v1145_v2   ;;  %v2857_v2 = vld [vmem:[%s5825_s0 + $0x158] sm:$0xff] }
 0x275   :  { %v4774_v16 = vpop.permute.xlu0 %1492  ;;  %v1458_v9 = vmul.f32 %v2857_v2, %v1383_v20  ;;  %v1871_v20 = vld [vmem:[%s5827_s2 + $0x1c0] sm:$0xff] }
 0x277   :  { %v1678_v38 = vpop.permute.xlu1 %1677 }
 0x278   :  { %v4781_v4 = vadd.f32 %v1678_v38, %v1457_v61  ;;  %1622 = vperm.xlu1 %2660, %v1146_v43   ;;  %v1875_v43 = vld [vmem:[%s5827_s2 + $0x1e0] sm:$0xff]  ;;  %v1868_v38 = vld [vmem:[%s5827_s2 + $0x1a8] sm:$0xff] }
 0x279   :  { %v4783_v60 = vpop.permute.xlu0 %1497  ;;  %2166 = vmatpush1.msra.mxu0 %v1875_v43 }
 0x27a   :  { %2167 = vmatprep.subr.mxu0 %v1872_v45  ;;  %v1863_v45 = vld [vmem:[%s5827_s2 + $0x180] sm:$0xff] }
 0x27b   :  { %v1683_v44 = vpop.permute.xlu1 %1682  ;;  %2168 = vmatpush1.msra.mxu0 %v1871_v20 }
 0x27c   :  { %v4792_v56 = vadd.f32 %v1683_v44, %v1458_v9  ;;  %1542 = vperm.xlu1 %2660, %v1130_v46   ;;  %v1439_v46 = vmul.f32 %v2858_v55, %v4662_v40  ;;  %v1864_v9 = vld [vmem:[%s5827_s2 + $0x188] sm:$0xff]  ;;  %2169 = vmatprep.subr.mxu0 %v1868_v38  ;;  %v1859_v55 = vld [vmem:[%s5827_s2 + $0x160] sm:$0xff] }
 0x27d   :  { %v4803_v61 = vpop.permute.xlu0 %1502  ;;  %v2859_v44 = vld [vmem:[%s5825_s0 + $0x168] sm:$0xff]  ;;  %2170 = vmatpush1.msra.mxu0 %v1867_v28 }
 0x27e   :  { %v1860_v40 = vld [vmem:[%s5827_s2 + $0x168] sm:$0xff]  ;;  %2171 = vmatprep.subr.mxu0 %v1864_v9 }
 0x27f   :  { %2172 = vmatpush1.msra.mxu0 %v1863_v45  ;;  %v1856_v28 = vld [vmem:[%s5827_s2 + $0x148] sm:$0xff]  ;;  %v1999_v45 = vld [vmem:[%s5827_s2 + $0x5c0] sm:$0xff] }
 0x280   :  { %v1393_v2 = vpop.permute.xlu1 %1392  ;;  %2173 = vmatprep.subr.mxu0 %v1860_v40 }
 0x281   :  { %v1460_v30 = vmul.f32 %v2859_v44, %v1393_v2  ;;  %v1588_v43 = vpop.permute.xlu0 %1587  ;;  %v1805_v2 = vmax.f32 %v1755_v6, 0.0  ;;  %2174 = vmatpush1.msra.mxu0 %v1859_v55  ;;  %v2003_v6 = vld [vmem:[%s5827_s2 + $0x5e0] sm:$0xff]  ;;  %v1848_v55 = vld [vmem:[%s5827_s2 + $0x108] sm:$0xff] }
 0x282   :  { %v1739_v62 = vadd.f32 %v1588_v43, %v1439_v46  ;;  %v1855_v46 = vld [vmem:[%s5827_s2 + $0x140] sm:$0xff]  ;;  %2175 = vmatprep.subr.mxu0 %v1856_v28 }
 0x283   :  { %v4831_v20 = vadd.f32 %v4723_v11, %v1460_v30  ;;  %v2004_v11 = vld [vmem:[%s5827_s2 + $0x5e8] sm:$0xff]  ;;  %v1851_v43 = vld [vmem:[%s5827_s2 + $0x120] sm:$0xff]  ;;  %2176 = vmatpush1.msra.mxu0 %v1855_v46 }
 0x284   :  { %v1789_v38 = vmax.f32 %v1739_v62, 0.0  ;;  %v1408_v44 = vpop.permute.xlu1 %1407  ;;  %v1852_v62 = vld [vmem:[%s5827_s2 + $0x128] sm:$0xff]  ;;  %2272 = vmatprep.subr.mxu1 %v2004_v11  ;;  %v1847_v28 = vld [vmem:[%s5827_s2 + $0x100] sm:$0xff] }
 0x285   :  { %v2000_v30 = vld [vmem:[%s5827_s2 + $0x5c8] sm:$0xff]  ;;  %2273 = vmatpush1.msra.mxu1 %v2003_v6  ;;  %2177 = vmatprep.subr.mxu0 %v1852_v62  ;;  %v1991_v6 = vld [vmem:[%s5827_s2 + $0x580] sm:$0xff] }
 0x286   :  { %v4845_v9 = vpack.i.bf16 %v1789_v38, %v1805_v2  ;;  %2274 = vmatprep.subr.mxu1 %v2000_v30  ;;  %v1996_v2 = vld [vmem:[%s5827_s2 + $0x5a8] sm:$0xff]  ;;  %v1995_v38 = vld [vmem:[%s5827_s2 + $0x5a0] sm:$0xff]  ;;  %2178 = vmatpush1.msra.mxu0 %v1851_v43 }
 0x287   :  { %2275 = vmatpush1.msra.mxu1 %v1999_v45  ;;  %v1992_v46 = vld [vmem:[%s5827_s2 + $0x588] sm:$0xff]  ;;  %2179 = vmatprep.subr.mxu0 %v1848_v55  ;;  %v1843_v62 = vld [vmem:[%s5827_s2 + $0xe0] sm:$0xff] }
 0x288   :  { %v1398_v40 = vpop.permute.xlu1 %1397  ;;  %v1844_v11 = vld [vmem:[%s5827_s2 + $0xe8] sm:$0xff]  ;;  %2276 = vmatprep.subr.mxu1 %v1996_v2  ;;  %2180 = vmatpush1.msra.mxu0 %v1847_v28  ;;  %v1987_v55 = vld [vmem:[%s5827_s2 + $0x560] sm:$0xff] }
 0x289   :  { %2277 = vmatpush1.msra.mxu1 %v1995_v38  ;;  %v1988_v30 = vld [vmem:[%s5827_s2 + $0x568] sm:$0xff]  ;;  %2181 = vmatprep.subr.mxu0 %v1844_v11  ;;  %v1839_v2 = vld [vmem:[%s5827_s2 + $0xc0] sm:$0xff] }
 0x28a   :  { %v1840_v45 = vld [vmem:[%s5827_s2 + $0xc8] sm:$0xff]  ;;  %2278 = vmatprep.subr.mxu1 %v1992_v46  ;;  %2182 = vmatpush1.msra.mxu0 %v1843_v62  ;;  %v1835_v28 = vld [vmem:[%s5827_s2 + $0xa0] sm:$0xff] }
 0x28b   :  { %2279 = vmatpush1.msra.mxu1 %v1991_v6  ;;  %v1836_v38 = vld [vmem:[%s5827_s2 + $0xa8] sm:$0xff]  ;;  %2183 = vmatprep.subr.mxu0 %v1840_v45  ;;  %v2860_v46 = vld [vmem:[%s5825_s0 + $0x180] sm:$0xff] }
 0x28c   :  { %v1413_v43 = vpop.permute.xlu1 %1412  ;;  %2280 = vmatprep.subr.mxu1 %v1988_v30  ;;  %v1463_v11 = vmul.f32 %v2860_v46, %v1408_v44  ;;  %2184 = vmatpush1.msra.mxu0 %v1839_v2  ;;  %v1832_v6 = vld [vmem:[%s5827_s2 + $0x88] sm:$0xff]  ;;  %v1831_v30 = vld [vmem:[%s5827_s2 + $0x80] sm:$0xff] }
 0x28d   :  { %2281 = vmatpush1.msra.mxu1 %v1987_v55  ;;  %2185 = vmatprep.subr.mxu0 %v1836_v38  ;;  %v1828_v55 = vld [vmem:[%s5827_s2 + $0x68] sm:$0xff]  ;;  %v1827_v44 = vld [vmem:[%s5827_s2 + $0x60] sm:$0xff] }
 0x28e   :  { %2186 = vmatpush1.msra.mxu0 %v1835_v28  ;;  %v1824_v38 = vld [vmem:[%s5827_s2 + $0x48] sm:$0xff]  ;;  %v1823_v28 = vld [vmem:[%s5827_s2 + $0x40] sm:$0xff] }
 0x28f   :  { %2187 = vmatprep.subr.mxu0 %v1832_v6  ;;  %v1819_v6 = vld [vmem:[%s5827_s2 + $0x20] sm:$0xff] }
 0x290   :  { %2188 = vmatpush1.msra.mxu0 %v1831_v30 }
 0x291   :  { %v1708_v62 = vpop.permute.xlu1 %1707  ;;  %2189 = vmatprep.subr.mxu0 %v1828_v55  ;;  %v2862_v55 = vld [vmem:[%s5825_s0 + $0x80] sm:$0xff] }
 0x292   :  { %v1763_v45 = vadd.f32 %v1708_v62, %v1463_v11  ;;  %2190 = vmatpush1.msra.mxu0 %v1827_v44  ;;  %v1820_v11 = vld [vmem:[%s5827_s2 + $0x28] sm:$0xff]  ;;  %v2861_v62 = vld [vmem:[%s5825_s0 + $0x170] sm:$0xff]  ;;  %v1431_v44 = vmul.f32 %v2862_v55, %v4626_v8  ;;  %v2863_v8 = vld [vmem:[%s5825_s0 + $0x100] sm:$0xff] }
 0x293   :  { %2191 = vmatprep.subr.mxu0 %v1824_v38  ;;  %v1461_v30 = vmul.f32 %v2861_v62, %v1398_v40  ;;  %v1815_v38 = vld [vmem:[%s5827_s2] sm:$0xff]  ;;  %v1940_v40 = vld [vmem:[%s5827_s2 + $0x3e8] sm:$0xff] }
 0x294   :  { %v1813_v2 = vmax.f32 %v1763_v45, 0.0  ;;  %2192 = vmatpush1.msra.mxu0 %v1823_v28  ;;  %v1816_v45 = vld [vmem:[%s5827_s2 + $0x8] sm:$0xff]  ;;  %v1731_v62 = vadd.f32 %v4728_v7, %v1431_v44 }
 0x295   :  { %v4922_v46 = vpop.permute.xlu1 %1467  ;;  %2193 = vmatprep.subr.mxu0 %v1820_v11  ;;  %v1984_v28 = vld [vmem:[%s5827_s2 + $0x548] sm:$0xff]  ;;  %v1447_v11 = vmul.f32 %v2863_v8, %v4630_v37  ;;  %v1935_v8 = vld [vmem:[%s5827_s2 + $0x3c0] sm:$0xff] }
 0x296   :  { %2111 = vxpose.xlu0.b32.start [1/2] (short) (narrow) %v1813_v2, 56  ;;  %2194 = vmatpush1.msra.mxu0 %v1819_v6  ;;  %v1939_v6 = vld [vmem:[%s5827_s2 + $0x3e0] sm:$0xff]  ;;  %v1980_v55 = vld [vmem:[%s5827_s2 + $0x528] sm:$0xff] }
 0x297   :  { %2195 = vmatprep.subr.mxu0 %v1816_v45  ;;  %2282 = vmatprep.subr.mxu1 %v1984_v28  ;;  %v2864_v37 = vld [vmem:[%s5825_s0 + $0x188] sm:$0xff]  ;;  %v1979_v45 = vld [vmem:[%s5827_s2 + $0x520] sm:$0xff]  ;;  %v1747_v44 = vadd.f32 %v4683_v39, %v1447_v11 }
 0x298   :  { %2196 = vmatpush1.msra.mxu0 %v1815_v38  ;;  %v1936_v7 = vld [vmem:[%s5827_s2 + $0x3c8] sm:$0xff]  ;;  %v1931_v39 = vld [vmem:[%s5827_s2 + $0x3a0] sm:$0xff] }
 0x299   :  { %v1698_v2 = vpop.permute.xlu1 %1697  ;;  %2197 = vmatprep.subr.mxu0 %v1940_v40  ;;  %v1932_v38 = vld [vmem:[%s5827_s2 + $0x3a8] sm:$0xff]  ;;  %v1975_v40 = vld [vmem:[%s5827_s2 + $0x500] sm:$0xff] }
 0x29a   :  { %v4946_v18 = vadd.f32 %v1698_v2, %v1461_v30  ;;  %v1983_v30 = vld [vmem:[%s5827_s2 + $0x540] sm:$0xff]  ;;  %v1464_v2 = vmul.f32 %v2864_v37, %v1413_v43  ;;  %2198 = vmatpush2.msra.mxu0 %v1939_v6  ;;  %v1781_v37 = vmax.f32 %v1731_v62, 0.0  ;;  %v1972_v11 = vld [vmem:[%s5827_s2 + $0x4e8] sm:$0xff] }
 0x29b   :  { %2283 = vmatpush1.msra.mxu1 %v1983_v30  ;;  %v1976_v30 = vld [vmem:[%s5827_s2 + $0x508] sm:$0xff]  ;;  %2199 = vmatprep.subr.mxu0 %v1936_v7 }
 0x29c   :  { %2284 = vmatprep.subr.mxu1 %v1980_v55  ;;  %2200 = vmatpush2.msra.mxu0 %v1935_v8  ;;  %v1928_v62 = vld [vmem:[%s5827_s2 + $0x388] sm:$0xff]  ;;  %v1971_v55 = vld [vmem:[%s5827_s2 + $0x4e0] sm:$0xff] }
 0x29d   :  { %v1713_v28 = vpop.permute.xlu1 %1712  ;;  %2285 = vmatpush1.msra.mxu1 %v1979_v45  ;;  %2201 = vmatprep.subr.mxu0 %v1932_v38  ;;  %v1927_v45 = vld [vmem:[%s5827_s2 + $0x380] sm:$0xff]  ;;  %v1968_v8 = vld [vmem:[%s5827_s2 + $0x4c8] sm:$0xff] }
 0x29e   :  { %v1764_v43 = vadd.f32 %v1713_v28, %v1464_v2  ;;  %2286 = vmatprep.subr.mxu1 %v1976_v30  ;;  %v1797_v2 = vmax.f32 %v1747_v44, 0.0  ;;  %2202 = vmatpush2.msra.mxu0 %v1931_v39  ;;  %v1924_v28 = vld [vmem:[%s5827_s2 + $0x368] sm:$0xff]  ;;  %v1923_v44 = vld [vmem:[%s5827_s2 + $0x360] sm:$0xff]  ;;  %v2865_v30 = vld [vmem:[%s5825_s0 + $0x90] sm:$0xff] }
 0x29f   :  { %2287 = vmatpush1.msra.mxu1 %v1975_v40  ;;  %2203 = vmatprep.subr.mxu0 %v1928_v62  ;;  %v1967_v38 = vld [vmem:[%s5827_s2 + $0x4c0] sm:$0xff]  ;;  %v1433_v39 = vmul.f32 %v2865_v30, %v4632_v24  ;;  %v1964_v40 = vld [vmem:[%s5827_s2 + $0x4a8] sm:$0xff]  ;;  %v2866_v62 = vld [vmem:[%s5825_s0 + $0x118] sm:$0xff] }
 0x2a0   :  { %v1814_v6 = vmax.f32 %v1764_v43, 0.0  ;;  %2288 = vmatprep.subr.mxu1 %v1972_v11  ;;  %v2662_v43 = vpack.i.bf16 %v1781_v37, %v1797_v2  ;;  %2204 = vmatpush2.msra.mxu0 %v1927_v45  ;;  %v1920_v37 = vld [vmem:[%s5827_s2 + $0x348] sm:$0xff]  ;;  %v1963_v24 = vld [vmem:[%s5827_s2 + $0x4a0] sm:$0xff] }
 0x2a1   :  { %v5002_v7 = vpop.permute.xlu1 %1472  ;;  %2289 = vmatpush1.msra.mxu1 %v1971_v55  ;;  %2205 = vmatprep.subr.mxu0 %v1924_v28  ;;  %v1450_v55 = vmul.f32 %v2866_v62, %v4636_v48  ;;  %v1916_v45 = vld [vmem:[%s5827_s2 + $0x328] sm:$0xff]  ;;  %v1915_v28 = vld [vmem:[%s5827_s2 + $0x320] sm:$0xff]  ;;  %v2867_v48 = vld [vmem:[%s5825_s0 + $0x98] sm:$0xff] }
 0x2a2   :  { %2112 = vxpose.xlu0.b32.end [2/2] (short) (narrow) %v1814_v6, 56  ;;  %2290 = vmatprep.subr.mxu1 %v1968_v8  ;;  %v1919_v6 = vld [vmem:[%s5827_s2 + $0x340] sm:$0xff]  ;;  %v1960_v8 = vld [vmem:[%s5827_s2 + $0x488] sm:$0xff] }
 0x2a3   :  { %2206 = vmatpush2.msra.mxu0 %v1923_v44  ;;  %2291 = vmatpush1.msra.mxu1 %v1967_v38  ;;  %v1799_v44 = vmax.f32 %v4689_v5, 0.0  ;;  %v1750_v38 = vadd.f32 %v4692_v25, %v1450_v55  ;;  %v1956_v5 = vld [vmem:[%s5827_s2 + $0x468] sm:$0xff]  ;;  %v2868_v62 = vld [vmem:[%s5825_s0 + $0xa0] sm:$0xff] }
 0x2a4   :  { %2207 = vmatprep.subr.mxu0 %v1920_v37  ;;  %2292 = vmatprep.subr.mxu1 %v1964_v40  ;;  %v1959_v37 = vld [vmem:[%s5827_s2 + $0x480] sm:$0xff]  ;;  %v1435_v55 = vmul.f32 %v2868_v62, %v4644_v49 }
 0x2a5   :  { %v1558_v11 = vpop.permute.xlu1 %1557  ;;  %2663 = vxpose.xlu1.b32.start [1/16] (narrow) %v2662_v43, 56  ;;  %v1434_v43 = vmul.f32 %v2867_v48, %v4606_v13  ;;  %2208 = vmatpush2.msra.mxu0 %v1919_v6  ;;  %v1911_v13 = vld [vmem:[%s5827_s2 + $0x300] sm:$0xff]  ;;  %v1908_v6 = vld [vmem:[%s5827_s2 + $0x2e8] sm:$0xff] }
 0x2a6   :  { %v1733_v2 = vadd.f32 %v1558_v11, %v1433_v39  ;;  %v1912_v39 = vld [vmem:[%s5827_s2 + $0x308] sm:$0xff]  ;;  %2293 = vmatpush1.msra.mxu1 %v1963_v24  ;;  %2209 = vmatprep.subr.mxu0 %v1916_v45  ;;  %v1955_v24 = vld [vmem:[%s5827_s2 + $0x460] sm:$0xff] }
 0x2a7   :  { %2210 = vmatpush2.msra.mxu0 %v1915_v28  ;;  %2294 = vmatprep.subr.mxu1 %v1960_v8  ;;  %v1904_v28 = vld [vmem:[%s5827_s2 + $0x2c8] sm:$0xff]  ;;  %v1951_v49 = vld [vmem:[%s5827_s2 + $0x440] sm:$0xff] }
 0x2a8   :  { %v1783_v30 = vmax.f32 %v1733_v2, 0.0  ;;  %2211 = vmatprep.subr.mxu0 %v1912_v39  ;;  %2295 = vmatpush1.msra.mxu1 %v1959_v37  ;;  %v1800_v2 = vmax.f32 %v1750_v38, 0.0  ;;  %v1952_v8 = vld [vmem:[%s5827_s2 + $0x448] sm:$0xff]  ;;  %v2869_v39 = vld [vmem:[%s5825_s0] sm:$0xff] }
 0x2a9   :  { %v1563_v40 = vpop.permute.xlu1 %1562  ;;  %2665 = vxpose.xlu1.b32.cont [2/16] (narrow) %v4750_v12, 56  ;;  %v1907_v12 = vld [vmem:[%s5827_s2 + $0x2e0] sm:$0xff]  ;;  %2212 = vmatpush2.msra.mxu0 %v1911_v13  ;;  %v1415_v37 = vmul.f32 %v2869_v39, %v4532_v1  ;;  %v1948_v13 = vld [vmem:[%s5827_s2 + $0x428] sm:$0xff] }
 0x2aa   :  { %v2666_v25 = vpack.i.bf16 %v1783_v30, %v1799_v44  ;;  %v1734_v11 = vadd.f32 %v1563_v40, %v1434_v43  ;;  %2296 = vmatprep.subr.mxu1 %v1956_v5  ;;  %2213 = vmatprep.subr.mxu0 %v1908_v6  ;;  %v1903_v43 = vld [vmem:[%s5827_s2 + $0x2c0] sm:$0xff]  ;;  %v1900_v30 = vld [vmem:[%s5827_s2 + $0x2a8] sm:$0xff] }
 0x2ab   :  { %2214 = vmatpush2.msra.mxu0 %v1907_v12  ;;  %2297 = vmatpush1.msra.mxu1 %v1955_v24  ;;  %v1899_v40 = vld [vmem:[%s5827_s2 + $0x2a0] sm:$0xff]  ;;  %v2870_v5 = vld [vmem:[%s5825_s0 + $0xa8] sm:$0xff]  ;;  %v1715_v24 = vadd.f32 %v4922_v46, %v1415_v37 }
 0x2ac   :  { %v1784_v45 = vmax.f32 %v1734_v11, 0.0  ;;  %2215 = vmatprep.subr.mxu0 %v1904_v28  ;;  %2298 = vmatprep.subr.mxu1 %v1952_v8  ;;  %v1801_v11 = vmax.f32 %v4712_v34, 0.0  ;;  %v1896_v1 = vld [vmem:[%s5827_s2 + $0x288] sm:$0xff]  ;;  %v1947_v12 = vld [vmem:[%s5827_s2 + $0x420] sm:$0xff] }
 0x2ad   :  { %v1568_v48 = vpop.permute.xlu1 %1567  ;;  %2667 = vxpose.xlu1.b32.cont [3/16] (narrow) %v2666_v25, 56  ;;  %v1436_v25 = vmul.f32 %v2870_v5, %v4617_v51  ;;  %2216 = vmatpush2.msra.mxu0 %v1903_v43  ;;  %v1895_v51 = vld [vmem:[%s5827_s2 + $0x280] sm:$0xff]  ;;  %v1944_v34 = vld [vmem:[%s5827_s2 + $0x408] sm:$0xff]  ;;  %v1765_v37 = vmax.f32 %v1715_v24, 0.0 }
 0x2ae   :  { %v2668_v44 = vpack.i.bf16 %v1784_v45, %v1800_v2  ;;  %v1735_v38 = vadd.f32 %v1568_v48, %v1435_v55  ;;  %2299 = vmatpush1.msra.mxu1 %v1951_v49  ;;  %2217 = vmatprep.subr.mxu0 %v1900_v30  ;;  %v2871_v55 = vld [vmem:[%s5825_s0 + $0x130] sm:$0xff]  ;;  %v1892_v46 = vld [vmem:[%s5827_s2 + $0x268] sm:$0xff]  ;;  %v1943_v43 = vld [vmem:[%s5827_s2 + $0x400] sm:$0xff] }
 0x2af   :  { %v1453_v2 = vmul.f32 %v2871_v55, %v4642_v0  ;;  %2218 = vmatpush2.msra.mxu0 %v1899_v40  ;;  %2300 = vmatprep.subr.mxu1 %v1948_v13  ;;  %v2872_v8 = vld [vmem:[%s5825_s0 + $0x8] sm:$0xff]  ;;  %v1891_v0 = vld [vmem:[%s5827_s2 + $0x260] sm:$0xff]  ;;  %v2873_v49 = vld [vmem:[%s5825_s0 + $0xb0] sm:$0xff] }
 0x2b0   :  { %v1785_v6 = vmax.f32 %v1735_v38, 0.0  ;;  %v1416_v48 = vmul.f32 %v2872_v8, %v4538_v54  ;;  %2219 = vmatprep.subr.mxu0 %v1896_v1  ;;  %2301 = vmatpush1.msra.mxu1 %v1947_v12  ;;  %v1802_v54 = vmax.f32 %v4719_v27, 0.0  ;;  %v1888_v39 = vld [vmem:[%s5827_s2 + $0x248] sm:$0xff]  ;;  %v1883_v1 = vld [vmem:[%s5827_s2 + $0x220] sm:$0xff]  ;;  %v2875_v12 = vld [vmem:[%s5825_s0 + $0xb8] sm:$0xff] }
 0x2b1   :  { %v1573_v62 = vpop.permute.xlu1 %1572  ;;  %2669 = vxpose.xlu1.b32.cont [4/16] (narrow) %v2668_v44, 56  ;;  %v1437_v44 = vmul.f32 %v2873_v49, %v4652_v10  ;;  %v1753_v38 = vadd.f32 %v4696_v41, %v1453_v2  ;;  %2220 = vmatpush2.msra.mxu0 %v1895_v51  ;;  %v1887_v10 = vld [vmem:[%s5827_s2 + $0x240] sm:$0xff]  ;;  %v2012_v41 = vld [vmem:[%s5827_s2 + $0x628] sm:$0xff]  ;;  %v1438_v24 = vmul.f32 %v2875_v12, %v4624_v52 }
 0x2b2   :  { %v2670_v45 = vpack.i.bf16 %v1785_v6, %v1801_v11  ;;  %v1736_v28 = vadd.f32 %v1573_v62, %v1436_v25  ;;  %2302 = vmatprep.subr.mxu1 %v1944_v34  ;;  %v1716_v40 = vadd.f32 %v5002_v7, %v1416_v48  ;;  %2221 = vmatprep.subr.mxu0 %v1892_v46  ;;  %v1884_v25 = vld [vmem:[%s5827_s2 + $0x228] sm:$0xff]  ;;  %v2874_v7 = vld [vmem:[%s5825_s0 + $0x10] sm:$0xff]  ;;  %v2011_v6 = vld [vmem:[%s5827_s2 + $0x620] sm:$0xff] }
 0x2b3   :  { %2222 = vmatpush2.msra.mxu0 %v1891_v0  ;;  %2303 = vmatpush1.msra.mxu1 %v1943_v43  ;;  %v1417_v11 = vmul.f32 %v2874_v7, %v4548_v42  ;;  %v1803_v62 = vmax.f32 %v1753_v38, 0.0  ;;  %v2008_v42 = vld [vmem:[%s5827_s2 + $0x608] sm:$0xff]  ;;  %v2007_v46 = vld [vmem:[%s5827_s2 + $0x600] sm:$0xff]  ;;  %v1878_v0 = vld [vmem:[%s5827_s2 + $0x1f8] sm:$0xff]  ;;  %v1804_v43 = vmax.f32 %v4752_v23, 0.0 }
 0x2b4   :  { %v1786_v30 = vmax.f32 %v1736_v28, 0.0  ;;  %2223 = vmatprep.subr.mxu0 %v1888_v39  ;;  %2332 = vmatprep.subr.mxu1 %v2012_v41  ;;  %v1766_v55 = vmax.f32 %v1716_v40, 0.0  ;;  %v1880_v52 = vld [vmem:[%s5827_s2 + $0x208] sm:$0xff]  ;;  %v1879_v48 = vld [vmem:[%s5827_s2 + $0x200] sm:$0xff]  ;;  %v2881_v7 = vld [vmem:[%s5825_s0 + $0x30] sm:$0xff] }
 0x2b5   :  { %v1578_v13 = vpop.permute.xlu1 %1577  ;;  %2671 = vxpose.xlu1.b32.cont [5/16] (narrow) %v2670_v45, 56  ;;  %2224 = vmatpush2.msra.mxu0 %v1887_v10  ;;  %v1717_v34 = vadd.f32 %v4760_v26, %v1417_v11  ;;  %v2876_v26 = vld [vmem:[%s5825_s0 + $0x18] sm:$0xff]  ;;  %v2877_v23 = vld [vmem:[%s5825_s0 + $0x20] sm:$0xff]  ;;  %v2878_v40 = vld [vmem:[%s5825_s0 + $0x28] sm:$0xff]  ;;  %v1421_v11 = vmul.f32 %v2881_v7, %v4567_v22 }
 0x2b6   :  { %v2672_v27 = vpack.i.bf16 %v1786_v30, %v1802_v54  ;;  %v1737_v5 = vadd.f32 %v1578_v13, %v1437_v44  ;;  %2225 = vmatprep.subr.mxu0 %v1884_v25  ;;  %2333 = vmatpush2.msra.mxu1 %v2011_v6  ;;  %v1418_v8 = vmul.f32 %v2876_v26, %v4540_v63  ;;  %v2006_v63 = vld [vmem:[%s5827_s2 + $0x5f8] sm:$0xff]  ;;  %v2879_v41 = vld [vmem:[%s5825_s0 + $0x148] sm:$0xff]  ;;  %v2890_v7 = vld [vmem:[%s5825_s0 + $0x60] sm:$0xff] }
 0x2b7   :  { %2015 = vxpose.xlu0.b32.start [1/16] (narrow) %v1765_v37, 56  ;;  %2226 = vmatpush2.msra.mxu0 %v1883_v1  ;;  %v1767_v44 = vmax.f32 %v1717_v34, 0.0  ;;  %v1419_v39 = vmul.f32 %v2877_v23, %v4557_v14  ;;  %v1420_v13 = vmul.f32 %v2878_v40, %v4550_v3  ;;  %v2880_v25 = vld [vmem:[%s5825_s0 + $0xc8] sm:$0xff]  ;;  %v1518_v34 = vpop.permute.xlu0 %1517 }
 0x2b8   :  { %v1787_v51 = vmax.f32 %v1737_v5, 0.0  ;;  %2334 = vmatprep.subr.mxu1 %v2008_v42  ;;  %2227 = vmatprep.subr.mxu0 %v1880_v52  ;;  %v1718_v38 = vadd.f32 %v4764_v21, %v1418_v8  ;;  %v2885_v8 = vld [vmem:[%s5825_s0 + $0x48] sm:$0xff] }
 0x2b9   :  { %v1583_v2 = vpop.permute.xlu1 %1582  ;;  %2673 = vxpose.xlu1.b32.cont [6/16] (narrow) %v2672_v27, 56  ;;  %2335 = vmatpush2.msra.mxu1 %v2007_v46  ;;  %v1719_v21 = vadd.f32 %v4770_v33, %v1419_v39  ;;  %v1456_v27 = vmul.f32 %v2879_v41, %v4650_v29  ;;  %v1720_v5 = vadd.f32 %v4774_v16, %v1420_v13  ;;  %v2889_v13 = vld [vmem:[%s5825_s0 + $0x58] sm:$0xff] }
 0x2ba   :  { %v2674_v45 = vpack.i.bf16 %v1787_v51, %v1803_v62  ;;  %v1738_v28 = vadd.f32 %v1583_v2, %v1438_v24  ;;  %2228 = vmatpush2.msra.mxu0 %v1879_v48  ;;  %2379 = vmatprep.subr.mxu1 %v1878_v0  ;;  %v1768_v37 = vmax.f32 %v1718_v38, 0.0  ;;  %v1721_v16 = vadd.f32 %v4783_v60, %v1421_v11  ;;  %v2884_v2 = vld [vmem:[%s5825_s0 + $0x40] sm:$0xff] }
 0x2bb   :  { %2016 = vxpose.xlu0.b32.cont [2/16] (narrow) %v1766_v55, 56  ;;  %2486 = vmatprep.subr.mxu0 %v2006_v63  ;;  %v1769_v14 = vmax.f32 %v1719_v21, 0.0  ;;  %v1756_v33 = vadd.f32 %v4702_v17, %v1456_v27  ;;  %v1770_v1 = vmax.f32 %v1720_v5, 0.0  ;;  %v2882_v17 = vld [vmem:[%s5825_s0 + $0x38] sm:$0xff]  ;;  %v2883_v55 = vld [vmem:[%s5825_s0 + $0xd0] sm:$0xff]  ;;  %v1523_v48 = vpop.permute.xlu0 %1522 }
 0x2bc   :  { %v1788_v49 = vmax.f32 %v1738_v28, 0.0  ;;  %v1422_v24 = vmul.f32 %v2882_v17, %v4559_v19  ;;  %v1771_v42 = vmax.f32 %v1721_v16, 0.0  ;;  %v1441_v60 = vmul.f32 %v2883_v55, %v4666_v15 }
 0x2bd   :  { %2675 = vxpose.xlu1.b32.cont [7/16] (narrow) %v2674_v45, 56  ;;  %v1423_v19 = vmul.f32 %v2884_v2, %v4578_v50  ;;  %v1424_v15 = vmul.f32 %v2885_v8, %v4569_v31  ;;  %v2888_v31 = vld [vmem:[%s5825_s0 + $0xd8] sm:$0xff]  ;;  %v1810_v17 = vmax.f32 %v4831_v20, 0.0 }
 0x2be   :  { %v2676_v54 = vpack.i.bf16 %v1788_v49, %v1804_v43  ;;  %v1293_v30 = vpop.permute.xlu1 %1292  ;;  %v1722_v22 = vadd.f32 %v4803_v61, %v1422_v24  ;;  %v1807_v61 = vmax.f32 %v4781_v4, 0.0  ;;  %v2887_v4 = vld [vmem:[%s5825_s0 + $0x50] sm:$0xff] }
 0x2bf   :  { %2017 = vxpose.xlu0.b32.cont [3/16] (narrow) %v1767_v44, 56  ;;  %v1440_v3 = vmul.f32 %v2880_v25, %v1293_v30  ;;  %v2886_v44 = vld [vmem:[%s5825_s0 + $0xe0] sm:$0xff]  ;;  %v1425_v63 = vmul.f32 %v2887_v4, %v4586_v53  ;;  %v1608_v23 = vpop.permute.xlu0 %1607  ;;  %v1808_v53 = vmax.f32 %v4792_v56, 0.0  ;;  %v1809_v25 = vmax.f32 %v4717_v58, 0.0 }
 0x2c0   :  { %v1772_v52 = vmax.f32 %v1722_v22, 0.0 }
 0x2c1   :  { %2677 = vxpose.xlu1.b32.cont [8/16] (narrow) %v2676_v54, 56  ;;  %v1442_v54 = vmul.f32 %v2888_v31, %v4670_v35  ;;  %v1725_v30 = vadd.f32 %v1518_v34, %v1425_v63 }
 0x2c3   :  { %v1508_v10 = vpop.permute.xlu1 %1507  ;;  %2018 = vxpose.xlu0.b32.cont [4/16] (narrow) %v1768_v37, 56  ;;  %v1775_v27 = vmax.f32 %v1725_v30, 0.0 }
 0x2c4   :  { %v1723_v46 = vadd.f32 %v1508_v10, %v1423_v19  ;;  %v1426_v10 = vmul.f32 %v2889_v13, %v4576_v47  ;;  %v1427_v47 = vmul.f32 %v2890_v7, %v4601_v57 }
 0x2c5   :  { %2679 = vxpose.xlu1.b32.cont [9/16] (narrow) %v4845_v9, 56  ;;  %v1806_v9 = vmax.f32 %v1756_v33, 0.0 }
 0x2c6   :  { %v1773_v49 = vmax.f32 %v1723_v46, 0.0 }
 0x2c7   :  { %v1593_v6 = vpop.permute.xlu1 %1592  ;;  %2019 = vxpose.xlu0.b32.cont [5/16] (narrow) %v1769_v14, 56  ;;  %v1726_v14 = vadd.f32 %v1523_v48, %v1426_v10 }
 0x2c8   :  { %v1740_v29 = vadd.f32 %v1593_v6, %v1440_v3 }
 0x2c9   :  { %v1776_v3 = vmax.f32 %v1726_v14, 0.0  ;;  %v2005_v14 = vld [vmem:[%s5827_s2 + $0x5f0] sm:$0xff] }
 0x2ca   :  { %v1790_v12 = vmax.f32 %v1740_v29, 0.0  ;;  %v2891_v29 = vld [vmem:[%s5825_s0 + $0xe8] sm:$0xff] }
 0x2cb   :  { %v1513_v62 = vpop.permute.xlu1 %1512  ;;  %2020 = vxpose.xlu0.b32.cont [6/16] (narrow) %v1770_v1, 56 }
 0x2cc   :  { %v2680_v51 = vpack.i.bf16 %v1790_v12, %v1806_v9  ;;  %v1724_v50 = vadd.f32 %v1513_v62, %v1424_v15  ;;  %v2892_v12 = vld [vmem:[%s5825_s0 + $0x68] sm:$0xff]  ;;  %v1538_v62 = vpop.permute.xlu0 %1537 }
 0x2cd   :  { %v1428_v57 = vmul.f32 %v2892_v12, %v4583_v59  ;;  %v1862_v12 = vld [vmem:[%s5827_s2 + $0x178] sm:$0xff] }
 0x2ce   :  { %2681 = vxpose.xlu1.b32.cont [10/16] (narrow) %v2680_v51, 56  ;;  %v1774_v39 = vmax.f32 %v1724_v50, 0.0 }
 0x2cf   :  { %v1598_v45 = vpop.permute.xlu1 %1597  ;;  %2021 = vxpose.xlu0.b32.cont [7/16] (narrow) %v1771_v42, 56  ;;  %v2893_v42 = vld [vmem:[%s5825_s0 + $0x70] sm:$0xff] }
 0x2d0   :  { %v1741_v28 = vadd.f32 %v1598_v45, %v1441_v60  ;;  %v1429_v22 = vmul.f32 %v2893_v42, %v4609_v32  ;;  %v2894_v60 = vld [vmem:[%s5825_s0 + $0xf0] sm:$0xff] }
 0x2d1   :  { %v1445_v2 = vmul.f32 %v2894_v60, %v4674_v36  ;;  %v2896_v36 = vld [vmem:[%s5825_s0 + $0x78] sm:$0xff]  ;;  %v1861_v42 = vld [vmem:[%s5827_s2 + $0x170] sm:$0xff] }
 0x2d2   :  { %v1791_v26 = vmax.f32 %v1741_v28, 0.0  ;;  %v1729_v59 = vadd.f32 %v1538_v62, %v1429_v22  ;;  %v2895_v28 = vld [vmem:[%s5825_s0 + $0xf8] sm:$0xff]  ;;  %v1857_v60 = vld [vmem:[%s5827_s2 + $0x150] sm:$0xff] }
 0x2d3   :  { %2022 = vxpose.xlu0.b32.cont [8/16] (narrow) %v1772_v52, 56  ;;  %v6003_v52 = vld [vmem:[#allocation21_spill] sm:$0xff] }
 0x2d4   :  { %v2682_v0 = vpack.i.bf16 %v1791_v26, %v1807_v61  ;;  %v1308_v43 = vpop.permute.xlu1 %1307  ;;  %v1446_v32 = vmul.f32 %v2895_v28, %v6003_v52  ;;  %v1779_v46 = vmax.f32 %v1729_v59, 0.0  ;;  %v1811_v61 = vmax.f32 %v4946_v18, 0.0  ;;  %v1990_v62 = vld [vmem:[%s5827_s2 + $0x578] sm:$0xff] }
 0x2d5   :  { %v1443_v38 = vmul.f32 %v2886_v44, %v1308_v43  ;;  %v1854_v59 = vld [vmem:[%s5827_s2 + $0x138] sm:$0xff] }
 0x2d6   :  { %2683 = vxpose.xlu1.b32.cont [11/16] (narrow) %v2682_v0, 56  ;;  %v6004_v0 = vld [vmem:[#allocation22_spill] sm:$0xff]  ;;  %v1982_v52 = vld [vmem:[%s5827_s2 + $0x538] sm:$0xff] }
 0x2d7   :  { %2023 = vxpose.xlu0.b32.cont [9/16] (narrow) %v1773_v49, 56  ;;  %v1743_v21 = vadd.f32 %v1608_v23, %v1443_v38  ;;  %v1430_v43 = vmul.f32 %v2896_v36, %v6004_v0  ;;  %v6005_v49 = vld [vmem:[#allocation26_spill] sm:$0xff]  ;;  %v1846_v36 = vld [vmem:[%s5827_s2 + $0xf8] sm:$0xff] }
 0x2d8   :  { %v1812_v50 = vmax.f32 %v6005_v49, 0.0 }
 0x2d9   :  { %v1603_v37 = vpop.permute.xlu1 %1602  ;;  %v1793_v5 = vmax.f32 %v1743_v21, 0.0 }
 0x2da   :  { %v1742_v40 = vadd.f32 %v1603_v37, %v1442_v54 }
 0x2db   :  { %2024 = vxpose.xlu0.b32.cont [10/16] (narrow) %v1774_v39, 56  ;;  %v2686_v11 = vpack.i.bf16 %v1793_v5, %v1809_v25  ;;  %v1873_v5 = vld [vmem:[%s5827_s2 + $0x1d0] sm:$0xff]  ;;  %v1870_v25 = vld [vmem:[%s5827_s2 + $0x1b8] sm:$0xff] }
 0x2dc   :  { %v1792_v41 = vmax.f32 %v1742_v40, 0.0 }
 0x2de   :  { %v2684_v35 = vpack.i.bf16 %v1792_v41, %v1808_v53  ;;  %v1313_v33 = vpop.permute.xlu1 %1312  ;;  %v1877_v53 = vld [vmem:[%s5827_s2 + $0x1f0] sm:$0xff] }
 0x2df   :  { %2025 = vxpose.xlu0.b32.cont [11/16] (narrow) %v1775_v27, 56  ;;  %v1444_v1 = vmul.f32 %v2891_v29, %v1313_v33  ;;  %v1874_v27 = vld [vmem:[%s5827_s2 + $0x1d8] sm:$0xff] }
 0x2e0   :  { %2685 = vxpose.xlu1.b32.cont [12/16] (narrow) %v2684_v35, 56  ;;  %v2002_v35 = vld [vmem:[%s5827_s2 + $0x5d8] sm:$0xff] }
 0x2e3   :  { %v1528_v6 = vpop.permute.xlu1 %1527  ;;  %2026 = vxpose.xlu0.b32.cont [12/16] (narrow) %v1776_v3, 56  ;;  %v2001_v3 = vld [vmem:[%s5827_s2 + $0x5d0] sm:$0xff] }
 0x2e4   :  { %v1727_v56 = vadd.f32 %v1528_v6, %v1427_v47  ;;  %2687 = vxpose.xlu1.b32.cont [13/16] (narrow) %v2686_v11, 56  ;;  %v1998_v11 = vld [vmem:[%s5827_s2 + $0x5b8] sm:$0xff]  ;;  %v1869_v6 = vld [vmem:[%s5827_s2 + $0x1b0] sm:$0xff] }
 0x2e6   :  { %v1777_v16 = vmax.f32 %v1727_v56, 0.0 }
 0x2e7   :  { %v1613_v58 = vpop.permute.xlu1 %1612 }
 0x2e8   :  { %v1744_v9 = vadd.f32 %v1613_v58, %v1444_v1  ;;  %2027 = vxpose.xlu0.b32.cont [13/16] (narrow) %v1777_v16, 56  ;;  %v1866_v1 = vld [vmem:[%s5827_s2 + $0x198] sm:$0xff]  ;;  %v1997_v16 = vld [vmem:[%s5827_s2 + $0x5b0] sm:$0xff] }
 0x2e9   :  { %v1865_v58 = vld [vmem:[%s5827_s2 + $0x190] sm:$0xff] }
 0x2ea   :  { %v1794_v24 = vmax.f32 %v1744_v9, 0.0  ;;  %v1994_v9 = vld [vmem:[%s5827_s2 + $0x598] sm:$0xff] }
 0x2eb   :  { %v1533_v51 = vpop.permute.xlu1 %1532 }
 0x2ec   :  { %v2688_v34 = vpack.i.bf16 %v1794_v24, %v1810_v17  ;;  %v1728_v55 = vadd.f32 %v1533_v51, %v1428_v57  ;;  %v1993_v17 = vld [vmem:[%s5827_s2 + $0x590] sm:$0xff] }
 0x2ee   :  { %v1778_v19 = vmax.f32 %v1728_v55, 0.0  ;;  %2689 = vxpose.xlu1.b32.cont [14/16] (narrow) %v2688_v34, 56  ;;  %v1858_v34 = vld [vmem:[%s5827_s2 + $0x158] sm:$0xff]  ;;  %v1989_v55 = vld [vmem:[%s5827_s2 + $0x570] sm:$0xff] }
 0x2ef   :  { %v1618_v20 = vpop.permute.xlu1 %1617 }
 0x2f0   :  { %v1745_v45 = vadd.f32 %v1618_v20, %v1445_v2  ;;  %2028 = vxpose.xlu0.b32.cont [14/16] (narrow) %v1778_v19, 56  ;;  %v1986_v2 = vld [vmem:[%s5827_s2 + $0x558] sm:$0xff] }
 0x2f2   :  { %v1795_v26 = vmax.f32 %v1745_v45, 0.0  ;;  %v1985_v45 = vld [vmem:[%s5827_s2 + $0x550] sm:$0xff] }
 0x2f3   :  { %v1623_v8 = vpop.permute.xlu1 %1622 }
 0x2f4   :  { %v2690_v15 = vpack.i.bf16 %v1795_v26, %v1811_v61  ;;  %v1746_v48 = vadd.f32 %v1623_v8, %v1446_v32  ;;  %2029 = vxpose.xlu0.b32.cont [15/16] (narrow) %v1779_v46, 56  ;;  %v1853_v32 = vld [vmem:[%s5827_s2 + $0x130] sm:$0xff]  ;;  %v1850_v61 = vld [vmem:[%s5827_s2 + $0x118] sm:$0xff] }
 0x2f5   :  { %v1981_v26 = vld [vmem:[%s5827_s2 + $0x530] sm:$0xff] }
 0x2f6   :  { %v1796_v44 = vmax.f32 %v1746_v48, 0.0  ;;  %2691 = vxpose.xlu1.b32.cont [15/16] (narrow) %v2690_v15, 56  ;;  %v1849_v15 = vld [vmem:[%s5827_s2 + $0x110] sm:$0xff]  ;;  %v1978_v48 = vld [vmem:[%s5827_s2 + $0x518] sm:$0xff] }
 0x2f7   :  { %v1543_v38 = vpop.permute.xlu1 %1542 }
 0x2f8   :  { %v2692_v4 = vpack.i.bf16 %v1796_v44, %v1812_v50  ;;  %v1730_v63 = vadd.f32 %v1543_v38, %v1430_v43  ;;  %v1977_v43 = vld [vmem:[%s5827_s2 + $0x510] sm:$0xff]  ;;  %v1974_v50 = vld [vmem:[%s5827_s2 + $0x4f8] sm:$0xff] }
 0x2f9   :  { %v1845_v38 = vld [vmem:[%s5827_s2 + $0xf0] sm:$0xff] }
 0x2fa   :  { %v1780_v31 = vmax.f32 %v1730_v63, 0.0  ;;  %2693 = vxpose.xlu1.b32.end [16/16] (narrow) %v2692_v4, 56  ;;  %v1842_v63 = vld [vmem:[%s5827_s2 + $0xd8] sm:$0xff] }
 0x2fc   :  { %2030 = vxpose.xlu0.b32.end [16/16] (narrow) %v1780_v31, 56  ;;  %v1973_v31 = vld [vmem:[%s5827_s2 + $0x4f0] sm:$0xff] }
 0x31a   :  { %v5287_v18 = vpop.trf.xlu0 }
 0x31b   :  { %2626 = vmatprep.mubr.msk.f32.mxu1 %vm2143_vm1, %v5287_v18 }
 0x31e   :  { %v5291_v54 = vpop.trf.xlu0 }
 0x322   :  { %v5293_v30 = vpop.trf.xlu0 }
 0x326   :  { %v5295_v23 = vpop.trf.xlu0 }
 0x32a   :  { %v5297_v39 = vpop.trf.xlu0 }
 0x32e   :  { %v5299_v37 = vpop.trf.xlu0 }
 0x332   :  { %v5301_v21 = vpop.trf.xlu0 }
 0x33a   :  { %v5303_v40 = vpop.trf.xlu1 }
 0x33b   :  { %v2698_v13 = vunpack.i.h.bf16 %v5303_v40  ;;  %v2695_v10 = vunpack.i.l.bf16 %v5303_v40  ;;  %v1921_v40 = vld [vmem:[%s5827_s2 + $0x350] sm:$0xff] }
 0x33c   :  { %v5310_v41 = vpop.trf.xlu0 }
 0x33d   :  { %2229 = vmatprep.mubr.f32.mxu0 %v2698_v13  ;;  %2337 = vmatmul.mubr.f32.vlgmr.msra.gmra.mxu1 %v2695_v10 }
 0x33e   :  { %2380 = vmatpush1.msra.mxu1 %v1877_v53  ;;  %v5328_v33 = vpop.trf.xlu1  ;;  %2230 = vmatmul.mubr.f32.vlgmr.msra.gmra.mxu0 %v5310_v41  ;;  %v1841_v53 = vld [vmem:[%s5827_s2 + $0xd0] sm:$0xff] }
 0x33f   :  { %2381 = vmatprep.subr.mxu1 %v1874_v27  ;;  %2487 = vmatpush1.msra.mxu0 %v2005_v14  ;;  %v2703_v7 = vunpack.i.h.bf16 %v5328_v33  ;;  %v2700_v47 = vunpack.i.l.bf16 %v5328_v33  ;;  %v1970_v27 = vld [vmem:[%s5827_s2 + $0x4d8] sm:$0xff] }
 0x340   :  { %2382 = vmatpush1.msra.mxu1 %v1873_v5  ;;  %2488 = vmatprep.subr.mxu0 %v2002_v35  ;;  %v5347_v56 = vpop.trf.xlu0  ;;  %v1838_v14 = vld [vmem:[%s5827_s2 + $0xb8] sm:$0xff]  ;;  %v1969_v35 = vld [vmem:[%s5827_s2 + $0x4d0] sm:$0xff] }
 0x341   :  { %2627 = vmatprep.mubr.msk.f32.mxu1 %vm2143_vm1, %v5291_v54  ;;  %2383 = vmatprep.subr.mxu1 %v1870_v25 }
 0x342   :  { %2489 = vmatpush1.msra.mxu0 %v2001_v3  ;;  %2235 = vmatprep.mubr.f32.mxu0 %v2703_v7  ;;  %v5351_v29 = vpop.trf.xlu1  ;;  %v1966_v3 = vld [vmem:[%s5827_s2 + $0x4b8] sm:$0xff] }
 0x343   :  { %2343 = vmatmul.mubr.f32.gmra.mxu1 %v2700_v47  ;;  %2490 = vmatprep.subr.mxu0 %v1998_v11  ;;  %v2708_v57 = vunpack.i.h.bf16 %v5351_v29  ;;  %v2705_v24 = vunpack.i.l.bf16 %v5351_v29  ;;  %v1837_v11 = vld [vmem:[%s5827_s2 + $0xb0] sm:$0xff] }
 0x344   :  { %2384 = vmatpush1.msra.mxu1 %v1869_v6  ;;  %2236 = vmatmul.mubr.f32.gmra.mxu0 %v5347_v56  ;;  %v5386_v22 = vpop.trf.xlu0 }
 0x345   :  { %2385 = vmatprep.subr.mxu1 %v1866_v1  ;;  %2491 = vmatpush1.msra.mxu0 %v1997_v16  ;;  %v1834_v1 = vld [vmem:[%s5827_s2 + $0x98] sm:$0xff]  ;;  %v1965_v16 = vld [vmem:[%s5827_s2 + $0x4b0] sm:$0xff] }
 0x346   :  { %2386 = vmatpush1.msra.mxu1 %v1865_v58  ;;  %2492 = vmatprep.subr.mxu0 %v1994_v9  ;;  %v5379_v51 = vpop.trf.xlu1  ;;  %v1833_v58 = vld [vmem:[%s5827_s2 + $0x90] sm:$0xff]  ;;  %v1962_v9 = vld [vmem:[%s5827_s2 + $0x498] sm:$0xff] }
 0x347   :  { %2628 = vmatprep.mubr.msk.f32.mxu1 %vm2143_vm1, %v5293_v30  ;;  %2387 = vmatprep.subr.mxu1 %v1862_v12  ;;  %v2713_v19 = vunpack.i.h.bf16 %v5379_v51  ;;  %v2710_v28 = vunpack.i.l.bf16 %v5379_v51 }
 0x348   :  { %2493 = vmatpush1.msra.mxu0 %v1993_v17  ;;  %2241 = vmatprep.mubr.f32.mxu0 %v2708_v57  ;;  %v5423_v46 = vpop.trf.xlu0  ;;  %v1830_v17 = vld [vmem:[%s5827_s2 + $0x78] sm:$0xff] }
 0x349   :  { %2349 = vmatmul.mubr.f32.gmra.mxu1 %v2705_v24  ;;  %2494 = vmatprep.subr.mxu0 %v1990_v62 }
 0x34a   :  { %2388 = vmatpush1.msra.mxu1 %v1861_v42  ;;  %2242 = vmatmul.mubr.f32.gmra.mxu0 %v5386_v22  ;;  %v5409_v20 = vpop.trf.xlu1  ;;  %v1961_v42 = vld [vmem:[%s5827_s2 + $0x490] sm:$0xff] }
 0x34b   :  { %2389 = vmatprep.subr.mxu1 %v1858_v34  ;;  %2495 = vmatpush1.msra.mxu0 %v1989_v55  ;;  %v2718_v0 = vunpack.i.h.bf16 %v5409_v20  ;;  %v2715_v49 = vunpack.i.l.bf16 %v5409_v20  ;;  %v1958_v34 = vld [vmem:[%s5827_s2 + $0x478] sm:$0xff]  ;;  %v1829_v55 = vld [vmem:[%s5827_s2 + $0x70] sm:$0xff] }
 0x34c   :  { %2390 = vmatpush1.msra.mxu1 %v1857_v60  ;;  %2496 = vmatprep.subr.mxu0 %v1986_v2  ;;  %v5462_v4 = vpop.trf.xlu0  ;;  %v1826_v2 = vld [vmem:[%s5827_s2 + $0x58] sm:$0xff] }
 0x34d   :  { %2629 = vmatprep.mubr.msk.f32.mxu1 %vm2143_vm1, %v5295_v23  ;;  %2391 = vmatprep.subr.mxu1 %v1854_v59  ;;  %v1957_v59 = vld [vmem:[%s5827_s2 + $0x470] sm:$0xff] }
 0x34e   :  { %2497 = vmatpush1.msra.mxu0 %v1985_v45  ;;  %2247 = vmatprep.mubr.f32.mxu0 %v2713_v19  ;;  %v5433_v8 = vpop.trf.xlu1  ;;  %v1825_v45 = vld [vmem:[%s5827_s2 + $0x50] sm:$0xff] }
 0x34f   :  { %2355 = vmatmul.mubr.f32.gmra.mxu1 %v2710_v28  ;;  %2498 = vmatprep.subr.mxu0 %v1982_v52  ;;  %v2723_v5 = vunpack.i.h.bf16 %v5433_v8  ;;  %v2720_v25 = vunpack.i.l.bf16 %v5433_v8  ;;  %v1954_v52 = vld [vmem:[%s5827_s2 + $0x458] sm:$0xff] }
 0x350   :  { %2392 = vmatpush1.msra.mxu1 %v1853_v32  ;;  %2248 = vmatmul.mubr.f32.gmra.mxu0 %v5423_v46  ;;  %v5497_v6 = vpop.trf.xlu0  ;;  %v1822_v32 = vld [vmem:[%s5827_s2 + $0x38] sm:$0xff] }
 0x351   :  { %2393 = vmatprep.subr.mxu1 %v1850_v61  ;;  %2499 = vmatpush1.msra.mxu0 %v1981_v26  ;;  %v1953_v61 = vld [vmem:[%s5827_s2 + $0x450] sm:$0xff] }
 0x352   :  { %2394 = vmatpush1.msra.mxu1 %v1849_v15  ;;  %2500 = vmatprep.subr.mxu0 %v1978_v48  ;;  %v5455_v44 = vpop.trf.xlu1  ;;  %v1821_v26 = vld [vmem:[%s5827_s2 + $0x30] sm:$0xff]  ;;  %v1950_v15 = vld [vmem:[%s5827_s2 + $0x438] sm:$0xff] }
 0x353   :  { %2630 = vmatprep.mubr.msk.f32.mxu1 %vm2143_vm1, %v5297_v39  ;;  %2395 = vmatprep.subr.mxu1 %v1846_v36  ;;  %v2728_v12 = vunpack.i.h.bf16 %v5455_v44  ;;  %v2725_v62 = vunpack.i.l.bf16 %v5455_v44  ;;  %v1949_v48 = vld [vmem:[%s5827_s2 + $0x430] sm:$0xff] }
 0x354   :  { %2501 = vmatpush1.msra.mxu0 %v1977_v43  ;;  %2253 = vmatprep.mubr.f32.mxu0 %v2718_v0  ;;  %v5532_v60 = vpop.trf.xlu0  ;;  %v1817_v36 = vld [vmem:[%s5827_s2 + $0x10] sm:$0xff]  ;;  %v1946_v43 = vld [vmem:[%s5827_s2 + $0x418] sm:$0xff] }
 0x355   :  { %2361 = vmatmul.mubr.f32.gmra.mxu1 %v2715_v49  ;;  %2502 = vmatprep.subr.mxu0 %v1974_v50  ;;  %v1945_v50 = vld [vmem:[%s5827_s2 + $0x410] sm:$0xff] }
 0x356   :  { %2396 = vmatpush1.msra.mxu1 %v1845_v38  ;;  %2254 = vmatmul.mubr.f32.gmra.mxu0 %v5462_v4  ;;  %v1941_v38 = vld [vmem:[%s5827_s2 + $0x3f0] sm:$0xff] }
 0x357   :  { %2397 = vmatprep.subr.mxu1 %v1842_v63  ;;  %2503 = vmatpush1.msra.mxu0 %v1973_v31  ;;  %v2014_v63 = vld [vmem:[%s5827_s2 + $0x638] sm:$0xff] }
 0x358   :  { %2398 = vmatpush1.msra.mxu1 %v1841_v53  ;;  %2504 = vmatprep.subr.mxu0 %v1970_v27  ;;  %v1938_v31 = vld [vmem:[%s5827_s2 + $0x3d8] sm:$0xff]  ;;  %v2013_v53 = vld [vmem:[%s5827_s2 + $0x630] sm:$0xff] }
 0x359   :  { %2631 = vmatprep.mubr.msk.f32.mxu1 %vm2143_vm1, %v5299_v37  ;;  %2399 = vmatprep.subr.mxu1 %v1838_v14  ;;  %v1937_v27 = vld [vmem:[%s5827_s2 + $0x3d0] sm:$0xff]  ;;  %v2010_v14 = vld [vmem:[%s5827_s2 + $0x618] sm:$0xff] }
 0x35a   :  { %2505 = vmatpush1.msra.mxu0 %v1969_v35  ;;  %2259 = vmatprep.mubr.f32.mxu0 %v2723_v5  ;;  %v1934_v35 = vld [vmem:[%s5827_s2 + $0x3b8] sm:$0xff] }
 0x35b   :  { %2367 = vmatmul.mubr.f32.gmra.mxu1 %v2720_v25  ;;  %2506 = vmatprep.subr.mxu0 %v1966_v3  ;;  %v2009_v3 = vld [vmem:[%s5827_s2 + $0x610] sm:$0xff] }
 0x35c   :  { %2400 = vmatpush1.msra.mxu1 %v1837_v11  ;;  %2260 = vmatmul.mubr.f32.gmra.mxu0 %v5497_v6  ;;  %v1933_v11 = vld [vmem:[%s5827_s2 + $0x3b0] sm:$0xff] }
 0x35d   :  { %2401 = vmatprep.subr.mxu1 %v1834_v1  ;;  %2507 = vmatpush1.msra.mxu0 %v1965_v16  ;;  %v1930_v1 = vld [vmem:[%s5827_s2 + $0x398] sm:$0xff]  ;;  %v1929_v16 = vld [vmem:[%s5827_s2 + $0x390] sm:$0xff] }
 0x35e   :  { %2402 = vmatpush1.msra.mxu1 %v1833_v58  ;;  %2508 = vmatprep.subr.mxu0 %v1962_v9  ;;  %v1926_v58 = vld [vmem:[%s5827_s2 + $0x378] sm:$0xff]  ;;  %v1925_v9 = vld [vmem:[%s5827_s2 + $0x370] sm:$0xff] }
 0x35f   :  { %2632 = vmatprep.mubr.msk.f32.mxu1 %vm2143_vm1, %v5301_v21  ;;  %2403 = vmatprep.subr.mxu1 %v1830_v17  ;;  %v1922_v17 = vld [vmem:[%s5827_s2 + $0x358] sm:$0xff] }
 0x360   :  { %2509 = vmatpush1.msra.mxu0 %v1961_v42  ;;  %2265 = vmatprep.mubr.f32.mxu0 %v2728_v12  ;;  %v1914_v42 = vld [vmem:[%s5827_s2 + $0x318] sm:$0xff] }
 0x361   :  { %2373 = vmatmul.mubr.f32.gmra.mxu1 %v2725_v62  ;;  %2510 = vmatprep.subr.mxu0 %v1958_v34  ;;  %v1909_v34 = vld [vmem:[%s5827_s2 + $0x2f0] sm:$0xff] }
 0x362   :  { %2404 = vmatpush1.msra.mxu1 %v1829_v55  ;;  %2266 = vmatmul.mubr.f32.gmra.mxu0 %v5532_v60  ;;  %v1906_v55 = vld [vmem:[%s5827_s2 + $0x2d8] sm:$0xff] }
 0x363   :  { %2405 = vmatprep.subr.mxu1 %v1826_v2  ;;  %2443 = vmatprep.mubr.f32.mxu1 %v2698_v13  ;;  %v1818_v13 = vld [vmem:[%s5827_s2 + $0x18] sm:$0xff]  ;;  %v1901_v2 = vld [vmem:[%s5827_s2 + $0x2b0] sm:$0xff] }
 0x364   :  { %2511 = vmatpush1.msra.mxu0 %v1957_v59  ;;  %2406 = vmatpush1.msra.mxu1 %v1825_v45  ;;  %v1898_v59 = vld [vmem:[%s5827_s2 + $0x298] sm:$0xff]  ;;  %v1893_v45 = vld [vmem:[%s5827_s2 + $0x270] sm:$0xff] }
 0x365   :  { %2512 = vmatprep.subr.mxu0 %v1954_v52  ;;  %2633 = vmatprep.mubr.msk.f32.mxu0 %vm2143_vm1, %v5287_v18  ;;  %v1942_v18 = vld [vmem:[%s5827_s2 + $0x3f8] sm:$0xff] }
 0x366   :  { %2407 = vmatprep.subr.mxu1 %v1822_v32  ;;  %2513 = vmatpush1.msra.mxu0 %v1953_v61  ;;  %v1890_v52 = vld [vmem:[%s5827_s2 + $0x258] sm:$0xff]  ;;  %v1885_v32 = vld [vmem:[%s5827_s2 + $0x230] sm:$0xff] }
 0x367   :  { %2408 = vmatpush1.msra.mxu1 %v1821_v26  ;;  %2514 = vmatprep.subr.mxu0 %v1950_v15  ;;  %v1882_v61 = vld [vmem:[%s5827_s2 + $0x218] sm:$0xff] }
 0x368   :  { %2409 = vmatprep.subr.mxu1 %v1818_v13  ;;  %2515 = vmatpush1.msra.mxu0 %v1949_v48 }
 0x369   :  { %2410 = vmatpush1.msra.mxu1 %v1817_v36  ;;  %2516 = vmatprep.subr.mxu0 %v1946_v43 }
 0x36a   :  { %2411 = vmatprep.subr.mxu1 %v1942_v18  ;;  %2517 = vmatpush1.msra.mxu0 %v1945_v50 }
 0x36b   :  { %2412 = vmatpush2.msra.mxu1 %v1941_v38  ;;  %2546 = vmatprep.subr.mxu0 %v2014_v63 }
 0x36c   :  { %2413 = vmatprep.subr.mxu1 %v1938_v31  ;;  %2547 = vmatpush2.msra.mxu0 %v2013_v53 }
 0x36d   :  { %2414 = vmatpush2.msra.mxu1 %v1937_v27  ;;  %2548 = vmatprep.subr.mxu0 %v2010_v14 }
 0x36e   :  { %2415 = vmatprep.subr.mxu1 %v1934_v35  ;;  %2549 = vmatpush2.msra.mxu0 %v2009_v3 }
 0x36f   :  { %2416 = vmatpush2.msra.mxu1 %v1933_v11  ;;  %2551 = vmatmul.mubr.f32.vlgmr.msra.gmra.mxu0 %v2695_v10  ;;  %v1917_v10 = vld [vmem:[%s5827_s2 + $0x330] sm:$0xff] }
 0x370   :  { %2417 = vmatprep.subr.mxu1 %v1930_v1  ;;  %2634 = vmatprep.mubr.msk.f32.mxu0 %vm2143_vm1, %v5291_v54  ;;  %v1918_v54 = vld [vmem:[%s5827_s2 + $0x338] sm:$0xff] }
 0x371   :  { %2418 = vmatpush2.msra.mxu1 %v1929_v16 }
 0x372   :  { %2419 = vmatprep.subr.mxu1 %v1926_v58 }
 0x373   :  { %2420 = vmatpush2.msra.mxu1 %v1925_v9  ;;  %2557 = vmatmul.mubr.f32.gmra.mxu0 %v2700_v47  ;;  %v1913_v47 = vld [vmem:[%s5827_s2 + $0x310] sm:$0xff] }
 0x374   :  { %2421 = vmatprep.subr.mxu1 %v1922_v17  ;;  %2635 = vmatprep.mubr.msk.f32.mxu0 %vm2143_vm1, %v5293_v30  ;;  %v1910_v30 = vld [vmem:[%s5827_s2 + $0x2f8] sm:$0xff] }
 0x375   :  { %2422 = vmatpush2.msra.mxu1 %v1921_v40 }
 0x376   :  { %2423 = vmatprep.subr.mxu1 %v1918_v54 }
 0x377   :  { %2424 = vmatpush2.msra.mxu1 %v1917_v10  ;;  %2563 = vmatmul.mubr.f32.gmra.mxu0 %v2705_v24  ;;  %v1905_v24 = vld [vmem:[%s5827_s2 + $0x2d0] sm:$0xff] }
 0x378   :  { %2425 = vmatprep.subr.mxu1 %v1914_v42  ;;  %2636 = vmatprep.mubr.msk.f32.mxu0 %vm2143_vm1, %v5295_v23  ;;  %v1902_v23 = vld [vmem:[%s5827_s2 + $0x2b8] sm:$0xff] }
 0x379   :  { %2426 = vmatpush2.msra.mxu1 %v1913_v47 }
 0x37a   :  { %2427 = vmatprep.subr.mxu1 %v1910_v30 }
 0x37b   :  { %2428 = vmatpush2.msra.mxu1 %v1909_v34  ;;  %2569 = vmatmul.mubr.f32.gmra.mxu0 %v2710_v28  ;;  %v1897_v28 = vld [vmem:[%s5827_s2 + $0x290] sm:$0xff] }
 0x37c   :  { %2429 = vmatprep.subr.mxu1 %v1906_v55  ;;  %2637 = vmatprep.mubr.msk.f32.mxu0 %vm2143_vm1, %v5297_v39  ;;  %v1894_v39 = vld [vmem:[%s5827_s2 + $0x278] sm:$0xff] }
 0x37d   :  { %2430 = vmatpush2.msra.mxu1 %v1905_v24 }
 0x37e   :  { %2431 = vmatprep.subr.mxu1 %v1902_v23 }
 0x37f   :  { %2432 = vmatpush2.msra.mxu1 %v1901_v2  ;;  %2575 = vmatmul.mubr.f32.gmra.mxu0 %v2715_v49  ;;  %v1889_v49 = vld [vmem:[%s5827_s2 + $0x250] sm:$0xff] }
 0x380   :  { %2433 = vmatprep.subr.mxu1 %v1898_v59  ;;  %2638 = vmatprep.mubr.msk.f32.mxu0 %vm2143_vm1, %v5299_v37  ;;  %v1886_v37 = vld [vmem:[%s5827_s2 + $0x238] sm:$0xff] }
 0x381   :  { %2434 = vmatpush2.msra.mxu1 %v1897_v28 }
 0x382   :  { %2435 = vmatprep.subr.mxu1 %v1894_v39 }
 0x383   :  { %2436 = vmatpush2.msra.mxu1 %v1893_v45  ;;  %2581 = vmatmul.mubr.f32.gmra.mxu0 %v2720_v25  ;;  %v1881_v25 = vld [vmem:[%s5827_s2 + $0x210] sm:$0xff] }
 0x384   :  { %2437 = vmatprep.subr.mxu1 %v1890_v52  ;;  %2639 = vmatprep.mubr.msk.f32.mxu0 %vm2143_vm1, %v5301_v21 }
 0x385   :  { %2438 = vmatpush2.msra.mxu1 %v1889_v49 }
 0x386   :  { %2439 = vmatprep.subr.mxu1 %v1886_v37 }
 0x387   :  { %2440 = vmatpush2.msra.mxu1 %v1885_v32  ;;  %2587 = vmatmul.mubr.f32.gmra.mxu0 %v2725_v62 }
 0x388   :  { %2441 = vmatprep.subr.mxu1 %v1882_v61 }
 0x389   :  { %2442 = vmatpush2.msra.mxu1 %v1881_v25 }
 0x38a   :  { %2444 = vmatmul.mubr.f32.vlgmr.msra.gmra.mxu1 %v5310_v41 }
 0x38b   :  { %2449 = vmatprep.mubr.f32.mxu1 %v2703_v7 }
 0x38e   :  { %2450 = vmatmul.mubr.f32.gmra.mxu1 %v5347_v56 }
 0x38f   :  { %2455 = vmatprep.mubr.f32.mxu1 %v2708_v57 }
 0x392   :  { %2456 = vmatmul.mubr.f32.gmra.mxu1 %v5386_v22 }
 0x393   :  { %2461 = vmatprep.mubr.f32.mxu1 %v2713_v19 }
 0x396   :  { %2462 = vmatmul.mubr.f32.gmra.mxu1 %v5423_v46 }
 0x397   :  { %2467 = vmatprep.mubr.f32.mxu1 %v2718_v0 }
 0x39a   :  { %2468 = vmatmul.mubr.f32.gmra.mxu1 %v5462_v4 }
 0x39b   :  { %2473 = vmatprep.mubr.f32.mxu1 %v2723_v5 }
 0x39e   :  { %2474 = vmatmul.mubr.f32.gmra.mxu1 %v5497_v6 }
 0x39f   :  { %2479 = vmatprep.mubr.f32.mxu1 %v2728_v12 }
 0x3a2   :  { %2480 = vmatmul.mubr.f32.gmra.mxu1 %v5532_v60 }
 0x3fd   :  { %v2338_v21 = vpop.f32.mrf.mxu1 }
 0x3fe   :  { %v2231_v41 = vpop.f32.mrf.mxu0 }
 0x3ff   :  { %v2339_v33 = vadd.f32 %v2338_v21, %v2231_v41  ;;  %v2340_v7 = vpop.f32.mrf.mxu1 }
 0x400   :  { %v2233_v56 = vpop.f32.mrf.mxu0 }
 0x401   :  { %2593 = vst [vmem:[%s5828_s3] sm:$0xff] %v2339_v33  ;;  %v2341_v29 = vadd.f32 %v2340_v7, %v2233_v56 }
 0x403   :  { %2594 = vst [vmem:[%s5828_s3 + $0x8] sm:$0xff] %v2341_v29  ;;  %v2344_v57 = vpop.f32.mrf.mxu1 }
 0x404   :  { %v2237_v51 = vpop.f32.mrf.mxu0 }
 0x405   :  { %v2345_v22 = vadd.f32 %v2344_v57, %v2237_v51  ;;  %v2346_v19 = vpop.f32.mrf.mxu1 }
 0x406   :  { %v2239_v20 = vpop.f32.mrf.mxu0 }
 0x407   :  { %2597 = vst [vmem:[%s5828_s3 + $0x20] sm:$0xff] %v2345_v22  ;;  %v2347_v46 = vadd.f32 %v2346_v19, %v2239_v20 }
 0x409   :  { %2598 = vst [vmem:[%s5828_s3 + $0x28] sm:$0xff] %v2347_v46  ;;  %v2350_v8 = vpop.f32.mrf.mxu1 }
 0x40a   :  { %v2243_v0 = vpop.f32.mrf.mxu0 }
 0x40b   :  { %v2351_v44 = vadd.f32 %v2350_v8, %v2243_v0  ;;  %v2352_v4 = vpop.f32.mrf.mxu1 }
 0x40c   :  { %v2245_v5 = vpop.f32.mrf.mxu0 }
 0x40d   :  { %2601 = vst [vmem:[%s5828_s3 + $0x40] sm:$0xff] %v2351_v44  ;;  %v2353_v6 = vadd.f32 %v2352_v4, %v2245_v5 }
 0x40f   :  { %2602 = vst [vmem:[%s5828_s3 + $0x48] sm:$0xff] %v2353_v6  ;;  %v2356_v12 = vpop.f32.mrf.mxu1 }
 0x410   :  { %v2249_v62 = vpop.f32.mrf.mxu0 }
 0x411   :  { %v2357_v60 = vadd.f32 %v2356_v12, %v2249_v62  ;;  %v2358_v26 = vpop.f32.mrf.mxu1 }
 0x412   :  { %v2251_v15 = vpop.f32.mrf.mxu0 }
 0x413   :  { %2605 = vst [vmem:[%s5828_s3 + $0x60] sm:$0xff] %v2357_v60  ;;  %v2359_v13 = vadd.f32 %v2358_v26, %v2251_v15 }
 0x415   :  { %2606 = vst [vmem:[%s5828_s3 + $0x68] sm:$0xff] %v2359_v13  ;;  %v2362_v48 = vpop.f32.mrf.mxu1 }
 0x416   :  { %v2255_v36 = vpop.f32.mrf.mxu0 }
 0x417   :  { %v2363_v43 = vadd.f32 %v2362_v48, %v2255_v36  ;;  %v2364_v18 = vpop.f32.mrf.mxu1 }
 0x418   :  { %v2257_v50 = vpop.f32.mrf.mxu0 }
 0x419   :  { %2609 = vst [vmem:[%s5828_s3 + $0x80] sm:$0xff] %v2363_v43  ;;  %v2365_v38 = vadd.f32 %v2364_v18, %v2257_v50 }
 0x41b   :  { %2610 = vst [vmem:[%s5828_s3 + $0x88] sm:$0xff] %v2365_v38  ;;  %v2368_v63 = vpop.f32.mrf.mxu1 }
 0x41c   :  { %v2261_v31 = vpop.f32.mrf.mxu0 }
 0x41d   :  { %v2369_v53 = vadd.f32 %v2368_v63, %v2261_v31  ;;  %v2370_v27 = vpop.f32.mrf.mxu1 }
 0x41e   :  { %v2263_v14 = vpop.f32.mrf.mxu0 }
 0x41f   :  { %2613 = vst [vmem:[%s5828_s3 + $0xa0] sm:$0xff] %v2369_v53  ;;  %v2371_v35 = vadd.f32 %v2370_v27, %v2263_v14 }
 0x421   :  { %2614 = vst [vmem:[%s5828_s3 + $0xa8] sm:$0xff] %v2371_v35  ;;  %v2374_v3 = vpop.f32.mrf.mxu1 }
 0x422   :  { %v2267_v11 = vpop.f32.mrf.mxu0 }
 0x423   :  { %v2375_v1 = vadd.f32 %v2374_v3, %v2267_v11  ;;  %v2376_v16 = vpop.f32.mrf.mxu1 }
 0x424   :  { %v2269_v58 = vpop.f32.mrf.mxu0 }
 0x425   :  { %2617 = vst [vmem:[%s5828_s3 + $0xc0] sm:$0x1] %v2375_v1  ;;  %v2377_v9 = vadd.f32 %v2376_v16, %v2269_v58 }
 0x427   :  { %2618 = vst [vmem:[%s5828_s3 + $0xc8] sm:$0x1] %v2377_v9 }
 0x42f   :  { %v2552_v17 = vpop.f32.mrf.mxu0 }
 0x431   :  { %v2554_v40 = vpop.f32.mrf.mxu0 }
 0x433   :  { %v2558_v54 = vpop.f32.mrf.mxu0 }
 0x435   :  { %v2560_v10 = vpop.f32.mrf.mxu0 }
 0x437   :  { %v2564_v42 = vpop.f32.mrf.mxu0 }
 0x439   :  { %v2566_v47 = vpop.f32.mrf.mxu0 }
 0x43b   :  { %v2570_v30 = vpop.f32.mrf.mxu0 }
 0x43d   :  { %v2572_v24 = vpop.f32.mrf.mxu0 }
 0x43f   :  { %v2576_v39 = vpop.f32.mrf.mxu0 }
 0x441   :  { %v2578_v32 = vpop.f32.mrf.mxu0 }
 0x443   :  { %v2582_v33 = vpop.f32.mrf.mxu0 }
 0x445   :  { %v2584_v51 = vpop.f32.mrf.mxu0 }
 0x447   :  { %v2588_v8 = vpop.f32.mrf.mxu0 }
 0x449   :  { %v2590_v6 = vpop.f32.mrf.mxu0 }
 0x44a   :  { %v2445_v34 = vpop.f32.mrf.mxu1 }
 0x44b   :  { %v2553_v55 = vadd.f32 %v2552_v17, %v2445_v34 }
 0x44c   :  { %v2447_v23 = vpop.f32.mrf.mxu1 }
 0x44d   :  { %2595 = vst [vmem:[%s5828_s3 + $0x10] sm:$0xff] %v2553_v55  ;;  %v2555_v2 = vadd.f32 %v2554_v40, %v2447_v23 }
 0x44e   :  { %v2451_v59 = vpop.f32.mrf.mxu1 }
 0x44f   :  { %2596 = vst.msk [vmem:[%s5828_s3 + $0x18] sm:$0xff] %vm2143_vm1, %v2555_v2  ;;  %v2559_v28 = vadd.f32 %v2558_v54, %v2451_v59 }
 0x450   :  { %v2453_v45 = vpop.f32.mrf.mxu1 }
 0x451   :  { %2599 = vst [vmem:[%s5828_s3 + $0x30] sm:$0xff] %v2559_v28  ;;  %v2561_v52 = vadd.f32 %v2560_v10, %v2453_v45 }
 0x452   :  { %v2457_v49 = vpop.f32.mrf.mxu1 }
 0x453   :  { %2600 = vst.msk [vmem:[%s5828_s3 + $0x38] sm:$0xff] %vm2143_vm1, %v2561_v52  ;;  %v2565_v37 = vadd.f32 %v2564_v42, %v2457_v49 }
 0x454   :  { %v2459_v61 = vpop.f32.mrf.mxu1 }
 0x455   :  { %2603 = vst [vmem:[%s5828_s3 + $0x50] sm:$0xff] %v2565_v37  ;;  %v2567_v25 = vadd.f32 %v2566_v47, %v2459_v61 }
 0x456   :  { %v2463_v21 = vpop.f32.mrf.mxu1 }
 0x457   :  { %2604 = vst.msk [vmem:[%s5828_s3 + $0x58] sm:$0xff] %vm2143_vm1, %v2567_v25  ;;  %v2571_v41 = vadd.f32 %v2570_v30, %v2463_v21 }
 0x458   :  { %v2465_v7 = vpop.f32.mrf.mxu1 }
 0x459   :  { %2607 = vst [vmem:[%s5828_s3 + $0x70] sm:$0xff] %v2571_v41  ;;  %v2573_v56 = vadd.f32 %v2572_v24, %v2465_v7 }
 0x45a   :  { %v2469_v29 = vpop.f32.mrf.mxu1 }
 0x45b   :  { %2608 = vst.msk [vmem:[%s5828_s3 + $0x78] sm:$0xff] %vm2143_vm1, %v2573_v56  ;;  %v2577_v57 = vadd.f32 %v2576_v39, %v2469_v29 }
 0x45c   :  { %v2471_v22 = vpop.f32.mrf.mxu1 }
 0x45d   :  { %2611 = vst [vmem:[%s5828_s3 + $0x90] sm:$0xff] %v2577_v57  ;;  %v2579_v19 = vadd.f32 %v2578_v32, %v2471_v22 }
 0x45e   :  { %v2475_v20 = vpop.f32.mrf.mxu1 }
 0x45f   :  { %2612 = vst.msk [vmem:[%s5828_s3 + $0x98] sm:$0xff] %vm2143_vm1, %v2579_v19  ;;  %v2583_v46 = vadd.f32 %v2582_v33, %v2475_v20 }
 0x460   :  { %v2477_v0 = vpop.f32.mrf.mxu1 }
 0x461   :  { %2615 = vst [vmem:[%s5828_s3 + $0xb0] sm:$0xff] %v2583_v46  ;;  %v2585_v44 = vadd.f32 %v2584_v51, %v2477_v0 }
 0x462   :  { %v2481_v4 = vpop.f32.mrf.mxu1 }
 0x463   :  { %2616 = vst.msk [vmem:[%s5828_s3 + $0xb8] sm:$0xff] %vm2143_vm1, %v2585_v44  ;;  %v2589_v5 = vadd.f32 %v2588_v8, %v2481_v4 }
 0x464   :  { %v2483_v12 = vpop.f32.mrf.mxu1 }
 0x465   :  { %2619 = vst [vmem:[%s5828_s3 + $0xd0] sm:$0x1] %v2589_v5  ;;  %v2591_v62 = vadd.f32 %v2590_v6, %v2483_v12 }
 0x467   :  { %2621 = vst.msk [vmem:[%s5828_s3 + $0xd8] sm:$0x1] %vm2620_vm2, %v2591_v62 }

</bundles_post_ra>
